<compile_context>
chip_gen: v5e
topology: v5e:2x2
jax: 0.10.0
libtpu: 0.0.40
codegen_flags: <defaults>
</compile_context>

<pallas_src>
import re

import jax
import jax.numpy as jnp
import numpy as np
from jax import lax
from jax.experimental import pallas as pl
from jax.experimental.pallas import tpu as pltpu

C_HID = 64  # conv channels (== input_dim // 2)


def resnet1d_kernel(x_ref, sel_ref, ml_ref, mr_ref, w1_ref, b1_ref,
                    w2_ref, b2_ref, wfc_ref, bfc_ref, out_ref):
    # x_ref   : (1, N)        ew    N = TB*L lanes, column r = b*L + l
    # sel_ref : (TB, N)       bf16  sel[b, r] = 2/L iff r//L == b and l even
    # ml_ref  : (1, N)        ew    1.0 iff (r % L) >= 1      (left-tap mask)
    # mr_ref  : (1, N)        ew    1.0 iff (r % L) <= L - 2  (right-tap mask)
    # w1_ref  : (64, 3)       ew    conv1 weight [c, k]
    # b1_ref  : (64, 1)       ew
    # w2_ref  : (64, 192)     bf16  conv2 weight [co, k*64 + ci]
    # b2_ref  : (64, 1)       f32
    # wfc_ref : (64, NCp)     bf16  fc weight^T, zero-padded to NCp lanes
    # bfc_ref : (1, NCp)      f32   fc bias, zero-padded
    # out_ref : (TB, NCp)     f32
    # ew = bf16 on v6e/v7x (bf16 VALUs), f32 on v5x/unknown.
    N = x_ref.shape[1]

    xr = x_ref[...]                                             # (1, N)
    ml = ml_ref[...]
    mr = mr_ref[...]

    # Zero-padded neighbour taps via circular lane rolls (non-negative shifts)
    # + boundary masks so taps never bleed across batch elements / seq ends.
    x_m = pltpu.roll(xr, shift=1, axis=1) * ml                  # x[b, l-1]
    x_p = pltpu.roll(xr, shift=N - 1, axis=1) * mr              # x[b, l+1]

    # --- Conv1d(1 -> 64, k=3, pad=1) + ReLU on the VPU (K=3 would waste MXU) ---
    h1 = (w1_ref[:, 0:1] * x_m + w1_ref[:, 1:2] * xr + w1_ref[:, 2:3] * x_p
          + b1_ref[...])
    h1 = jnp.maximum(h1, 0.0)                                   # (64, N) ew

    # --- Conv1d(64 -> 64, k=3, pad=1) + ReLU: taps built once, in bf16,
    #     one fused K=192 MXU matmul (f32 accumulation). ---
    h1_m = (pltpu.roll(h1, shift=1, axis=1) * ml).astype(jnp.bfloat16)
    h1_p = (pltpu.roll(h1, shift=N - 1, axis=1) * mr).astype(jnp.bfloat16)
    taps = jnp.concatenate([h1_m, h1.astype(jnp.bfloat16), h1_p],
                           axis=0)                              # (192, N) bf16
    h2 = jnp.dot(w2_ref[...], taps,
                 preferred_element_type=jnp.float32) + b2_ref[...]

    # --- MaxPool1d(2) fused with mean over length ---
    # pair max along length; odd columns (incl. the circular wrap at l = L-1)
    # are never selected by `sel`, so no extra masking is needed.
    pm_dt = jnp.bfloat16 if x_ref.dtype == jnp.bfloat16 else jnp.float32
    h2p = jnp.maximum(h2, 0.0).astype(pm_dt)
    pm = jnp.maximum(h2p, pltpu.roll(h2p, shift=N - 1, axis=1))  # (64, N)

    # Segmented mean as one bf16 MXU matmul: pooled[b,c] = sum_r sel[b,r]*pm[c,r]
    pooled = lax.dot_general(sel_ref[...], pm.astype(jnp.bfloat16),
                             dimension_numbers=(((1,), (1,)), ((), ())),
                             preferred_element_type=jnp.float32)  # (TB, 64)

    # --- Linear(64 -> num_classes), lane-dense (classes padded to 128) ---
    out = jnp.dot(pooled.astype(jnp.bfloat16), wfc_ref[...],
                  preferred_element_type=jnp.float32) + bfc_ref[...]
    out_ref[...] = out                                          # (TB, NCp) f32


def _tpu_generation():
    """Best-effort TPU generation from device_kind (0 if unknown)."""
    try:
        kind = jax.devices()[0].device_kind.lower()
    except Exception:
        return 0
    m = re.search(r"v(\d+)", kind)
    return int(m.group(1)) if m else 0


def _pick_batch_tile(batch, max_tb):
    """Return (padded_batch, TB): TB a multiple of 8, <= max_tb, dividing the
    padded batch into an even number (>= 2) of grid steps (keeps both v7x
    TensorCores busy on the 'parallel' axis)."""
    b_pad = ((max(batch, 16) + 15) // 16) * 16
    tb = 8
    cand = 8
    while cand <= min(max_tb, b_pad // 2):
        if b_pad % cand == 0 and (b_pad // cand) % 2 == 0:
            tb = cand
        cand += 8
    return b_pad, tb


def resnet1d_forward(x, params, batch_tile=None):
    """x: (B, L) float32; returns (B, num_classes) float32."""
    w1, b1, w2, b2, wfc, bfc = (params[k] for k in
                                ("w1", "b1", "w2", "b2", "wfc", "bfc"))
    B, L = x.shape
    NC = wfc.shape[0]
    assert L % 2 == 0 and L // 2 == C_HID, "module requires input_dim == 128"

    gen = _tpu_generation()
    bf16_vpu = gen >= 6                      # v6e / v7x have bf16 VALUs
    ew_dt = jnp.bfloat16 if bf16_vpu else jnp.float32
    max_tb = 128 if gen in (5, 6) else 64    # v7x: only 64 MiB VMEM per TC
    vmem_limit = (64 if gen in (5, 6) else 48) * 1024 * 1024

    if batch_tile is None:
        B_pad, TB = _pick_batch_tile(B, max_tb)
    else:
        TB = batch_tile
        B_pad = ((B + TB - 1) // TB) * TB
    N = TB * L
    NC_PAD = ((NC + 127) // 128) * 128

    # ---- parameter / input layout plumbing (host side, no kernel compute) ----
    xp = x if B_pad == B else jnp.pad(x, ((0, B_pad - B), (0, 0)))
    x_row = xp.reshape(1, B_pad * L).astype(ew_dt)               # lane-dense
    w1p = w1[:, 0, :].astype(ew_dt)                              # (64, 3)
    b1c = b1.reshape(C_HID, 1).astype(ew_dt)
    w2f = jnp.transpose(w2, (0, 2, 1)).reshape(C_HID, 3 * C_HID) \
             .astype(jnp.bfloat16)                               # (64, 192)
    b2c = b2.reshape(C_HID, 1).astype(jnp.float32)
    wfct = jnp.zeros((C_HID, NC_PAD), jnp.float32).at[:, :NC].set(wfc.T) \
              .astype(jnp.bfloat16)                              # (64, NCp)
    bfcp = jnp.zeros((1, NC_PAD), jnp.float32).at[:, :NC].set(
        bfc.reshape(1, NC))

    # Hoisted boundary masks + fused maxpool-mean selector (built once on host).
    r = np.arange(N)
    l_in_seq = r % L
    m_left = (l_in_seq >= 1).astype(np.float32).reshape(1, N)
    m_right = (l_in_seq <= L - 2).astype(np.float32).reshape(1, N)
    sel = ((r[None, :] // L == np.arange(TB)[:, None]) &
           (l_in_seq[None, :] % 2 == 0)).astype(np.float32) * (2.0 / L)

    m_left = jnp.asarray(m_left, dtype=ew_dt)
    m_right = jnp.asarray(m_right, dtype=ew_dt)
    sel = jnp.asarray(sel, dtype=jnp.bfloat16)   # 2/L = 2^-6 is exact in bf16

    out = pl.pallas_call(
        resnet1d_kernel,
        out_shape=jax.ShapeDtypeStruct((B_pad, NC_PAD), jnp.float32),
        grid=(B_pad // TB,),
        in_specs=[
            pl.BlockSpec((1, N), lambda i: (0, i)),               # x (lane-dense)
            pl.BlockSpec((TB, N), lambda i: (0, 0)),              # pool selector (bf16)
            pl.BlockSpec((1, N), lambda i: (0, 0)),               # left-tap mask
            pl.BlockSpec((1, N), lambda i: (0, 0)),               # right-tap mask
            pl.BlockSpec((C_HID, 3), lambda i: (0, 0)),           # conv1 weight
            pl.BlockSpec((C_HID, 1), lambda i: (0, 0)),           # conv1 bias
            pl.BlockSpec((C_HID, 3 * C_HID), lambda i: (0, 0)),   # conv2 weight (fused, bf16)
            pl.BlockSpec((C_HID, 1), lambda i: (0, 0)),           # conv2 bias
            pl.BlockSpec((C_HID, NC_PAD), lambda i: (0, 0)),      # fc weight^T (padded, bf16)
            pl.BlockSpec((1, NC_PAD), lambda i: (0, 0)),          # fc bias (padded)
        ],
        out_specs=pl.BlockSpec((TB, NC_PAD), lambda i: (i, 0)),
        compiler_params=pltpu.CompilerParams(
            dimension_semantics=("parallel",),
            vmem_limit_bytes=vmem_limit),
    )(x_row, sel, m_left, m_right, w1p, b1c, w2f, b2c, wfct, bfcp)
    return out[:B, :NC]


def reference_forward(x, params):
    """Pure-JAX reference mirroring the PyTorch forward (PyTorch param shapes)."""
    w1, b1, w2, b2, wfc, bfc = (params[k] for k in
                                ("w1", "b1", "w2", "b2", "wfc", "bfc"))
    B, L = x.shape
    xp = jnp.pad(x, ((0, 0), (1, 1)))                              # (B, L+2)
    p1 = jnp.stack([xp[:, k:k + L] for k in range(3)], axis=-1)    # (B, L, 3)
    h1 = jnp.einsum('blk,ck->blc', p1, w1[:, 0, :]) + b1
    h1 = jnp.maximum(h1, 0.0)
    h1p = jnp.pad(h1, ((0, 0), (1, 1), (0, 0)))                    # (B, L+2, 64)
    p2 = jnp.stack([h1p[:, k:k + L, :] for k in range(3)], axis=2)  # (B, L, 3, 64)
    h2 = jnp.einsum('blki,oik->blo', p2, w2) + b2
    h2 = jnp.maximum(h2, 0.0)
    hp = jnp.max(h2.reshape(B, L // 2, 2, C_HID), axis=2)          # MaxPool1d(2)
    pooled = jnp.mean(hp, axis=1)                                  # (B, 64)
    return pooled @ wfc.T + bfc


def init_params(key, input_dim, num_classes):
    ks = jax.random.split(key, 6)
    s = 0.1
    return {
        "w1": s * jax.random.normal(ks[0], (C_HID, 1, 3), jnp.float32),
        "b1": s * jax.random.normal(ks[1], (C_HID,), jnp.float32),
        "w2": s * jax.random.normal(ks[2], (C_HID, C_HID, 3), jnp.float32),
        "b2": s * jax.random.normal(ks[3], (C_HID,), jnp.float32),
        "wfc": s * jax.random.normal(ks[4], (num_classes, input_dim // 2),
                                     jnp.float32),
        "bfc": s * jax.random.normal(ks[5], (num_classes,), jnp.float32),
    }


if __name__ == "__main__":
    INPUT_DIM = 128      # the forward only type-checks when input_dim // 2 == 64
    NUM_CLASSES = 5
    BATCH = 16           # exercises the batched (TB=8, two-step) grid

    key = jax.random.PRNGKey(0)
    kx, kp = jax.random.split(key)
    x = jax.random.normal(kx, (BATCH, INPUT_DIM), jnp.float32)
    params = init_params(kp, INPUT_DIM, NUM_CLASSES)

    out = jax.block_until_ready(resnet1d_forward(x, params))
    ref = jax.block_until_ready(reference_forward(x, params))

    # Tolerance accounts for bf16 MXU matmuls (conv2 / selector / fc) and,
    # on v6e/v7x, bf16 elementwise conv1 (all with f32 accumulation).
    np.testing.assert_allclose(np.asarray(out), np.asarray(ref),
                               rtol=2.5e-2, atol=2.5e-2)
    assert out.shape == (BATCH, NUM_CLASSES)
    print("KERNEL_OK")
</pallas_src>

<mosaic_0001>
module attributes {stable_mosaic.version = 11 : i64} {
  func.func @resnet1d_kernel(%arg0: i32, %arg1: memref<1x1024xf32, #tpu.memory_space<vmem>>, %arg2: memref<8x1024xbf16, #tpu.memory_space<vmem>>, %arg3: memref<1x1024xf32, #tpu.memory_space<vmem>>, %arg4: memref<1x1024xf32, #tpu.memory_space<vmem>>, %arg5: memref<64x3xf32, #tpu.memory_space<vmem>>, %arg6: memref<64x1xf32, #tpu.memory_space<vmem>>, %arg7: memref<64x192xbf16, #tpu.memory_space<vmem>>, %arg8: memref<64x1xf32, #tpu.memory_space<vmem>>, %arg9: memref<64x128xbf16, #tpu.memory_space<vmem>>, %arg10: memref<1x128xf32, #tpu.memory_space<vmem>>, %arg11: memref<8x128xf32, #tpu.memory_space<vmem>>) attributes {dimension_semantics = [#tpu.dimension_semantics<parallel>], iteration_bounds = array<i64: 2>, scalar_prefetch = 0 : i64, scratch_operands = 0 : i64, tpu.core_type = #tpu.core_type<tc>, window_params = [{transform_indices = @transform_0, window_bounds = array<i64: 1, 1024>}, {pipeline_mode = #tpu.pipeline_mode<synchronous>, transform_indices = @transform_1, window_bounds = array<i64: 8, 1024>}, {pipeline_mode = #tpu.pipeline_mode<synchronous>, transform_indices = @transform_2, window_bounds = array<i64: 1, 1024>}, {pipeline_mode = #tpu.pipeline_mode<synchronous>, transform_indices = @transform_3, window_bounds = array<i64: 1, 1024>}, {pipeline_mode = #tpu.pipeline_mode<synchronous>, transform_indices = @transform_4, window_bounds = array<i64: 64, 3>}, {pipeline_mode = #tpu.pipeline_mode<synchronous>, transform_indices = @transform_5, window_bounds = array<i64: 64, 1>}, {pipeline_mode = #tpu.pipeline_mode<synchronous>, transform_indices = @transform_6, window_bounds = array<i64: 64, 192>}, {pipeline_mode = #tpu.pipeline_mode<synchronous>, transform_indices = @transform_7, window_bounds = array<i64: 64, 1>}, {pipeline_mode = #tpu.pipeline_mode<synchronous>, transform_indices = @transform_8, window_bounds = array<i64: 64, 128>}, {pipeline_mode = #tpu.pipeline_mode<synchronous>, transform_indices = @transform_9, window_bounds = array<i64: 1, 128>}, {transform_indices = @transform_10, window_bounds = array<i64: 8, 128>}]} {
    %c0 = arith.constant 0 : index
    %c0_0 = arith.constant 0 : index
    %0 = vector.load %arg1[%c0, %c0_0] : memref<1x1024xf32, #tpu.memory_space<vmem>>, vector<1x1024xf32>
    %c0_1 = arith.constant 0 : index
    %c0_2 = arith.constant 0 : index
    %1 = vector.load %arg3[%c0_1, %c0_2] : memref<1x1024xf32, #tpu.memory_space<vmem>>, vector<1x1024xf32>
    %c0_3 = arith.constant 0 : index
    %c0_4 = arith.constant 0 : index
    %2 = vector.load %arg4[%c0_3, %c0_4] : memref<1x1024xf32, #tpu.memory_space<vmem>>, vector<1x1024xf32>
    %c1_i32 = arith.constant 1 : i32
    %3 = tpu.dynamic_rotate %0 by %c1_i32 dim 1 : vector<1x1024xf32>, i32 -> vector<1x1024xf32>
    %4 = arith.mulf %3, %1 : vector<1x1024xf32>
    %c1023_i32 = arith.constant 1023 : i32
    %5 = tpu.dynamic_rotate %0 by %c1023_i32 dim 1 : vector<1x1024xf32>, i32 -> vector<1x1024xf32>
    %6 = arith.mulf %5, %2 : vector<1x1024xf32>
    %c0_5 = arith.constant 0 : index
    %c0_6 = arith.constant 0 : index
    %7 = vector.load %arg5[%c0_5, %c0_6] : memref<64x3xf32, #tpu.memory_space<vmem>>, vector<64x1xf32>
    %8 = vector.broadcast %7 : vector<64x1xf32> to vector<64x1024xf32>
    %9 = vector.broadcast %4 : vector<1x1024xf32> to vector<64x1024xf32>
    %10 = arith.mulf %8, %9 : vector<64x1024xf32>
    %c0_7 = arith.constant 0 : index
    %c1 = arith.constant 1 : index
    %11 = vector.load %arg5[%c0_7, %c1] : memref<64x3xf32, #tpu.memory_space<vmem>>, vector<64x1xf32>
    %12 = vector.broadcast %11 : vector<64x1xf32> to vector<64x1024xf32>
    %13 = vector.broadcast %0 : vector<1x1024xf32> to vector<64x1024xf32>
    %14 = arith.mulf %12, %13 : vector<64x1024xf32>
    %15 = arith.addf %10, %14 : vector<64x1024xf32>
    %c0_8 = arith.constant 0 : index
    %c2 = arith.constant 2 : index
    %16 = vector.load %arg5[%c0_8, %c2] : memref<64x3xf32, #tpu.memory_space<vmem>>, vector<64x1xf32>
    %17 = vector.broadcast %16 : vector<64x1xf32> to vector<64x1024xf32>
    %18 = vector.broadcast %6 : vector<1x1024xf32> to vector<64x1024xf32>
    %19 = arith.mulf %17, %18 : vector<64x1024xf32>
    %20 = arith.addf %15, %19 : vector<64x1024xf32>
    %c0_9 = arith.constant 0 : index
    %c0_10 = arith.constant 0 : index
    %21 = vector.load %arg6[%c0_9, %c0_10] : memref<64x1xf32, #tpu.memory_space<vmem>>, vector<64x1xf32>
    %22 = vector.broadcast %21 : vector<64x1xf32> to vector<64x1024xf32>
    %23 = arith.addf %20, %22 : vector<64x1024xf32>
    %cst = arith.constant 0.000000e+00 : f32
    %24 = vector.broadcast %cst : f32 to vector<64x1024xf32>
    %25 = arith.maximumf %23, %24 : vector<64x1024xf32>
    %c1_i32_11 = arith.constant 1 : i32
    %26 = tpu.dynamic_rotate %25 by %c1_i32_11 dim 1 : vector<64x1024xf32>, i32 -> vector<64x1024xf32>
    %27 = vector.broadcast %1 : vector<1x1024xf32> to vector<64x1024xf32>
    %28 = arith.mulf %26, %27 : vector<64x1024xf32>
    %29 = arith.truncf %28 : vector<64x1024xf32> to vector<64x1024xbf16>
    %c1023_i32_12 = arith.constant 1023 : i32
    %30 = tpu.dynamic_rotate %25 by %c1023_i32_12 dim 1 : vector<64x1024xf32>, i32 -> vector<64x1024xf32>
    %31 = vector.broadcast %2 : vector<1x1024xf32> to vector<64x1024xf32>
    %32 = arith.mulf %30, %31 : vector<64x1024xf32>
    %33 = arith.truncf %32 : vector<64x1024xf32> to vector<64x1024xbf16>
    %34 = arith.truncf %25 : vector<64x1024xf32> to vector<64x1024xbf16>
    %35 = tpu.concatenate %29, %34, %33 in 0 : vector<64x1024xbf16>, vector<64x1024xbf16>, vector<64x1024xbf16> -> vector<192x1024xbf16>
    %c0_13 = arith.constant 0 : index
    %c0_14 = arith.constant 0 : index
    %36 = vector.load %arg7[%c0_13, %c0_14] : memref<64x192xbf16, #tpu.memory_space<vmem>>, vector<64x192xbf16>
    %cst_15 = arith.constant dense<0.000000e+00> : vector<64x1024xf32>
    %37 = tpu.matmul %36, %35, %cst_15 {dimension_numbers = #tpu.dot_dimension_numbers<[1], [0], [0], [1], [0, 0, 1, 1], [], []>} : vector<64x192xbf16>, vector<192x1024xbf16>, vector<64x1024xf32> -> vector<64x1024xf32>
    %c0_16 = arith.constant 0 : index
    %c0_17 = arith.constant 0 : index
    %38 = vector.load %arg8[%c0_16, %c0_17] : memref<64x1xf32, #tpu.memory_space<vmem>>, vector<64x1xf32>
    %39 = vector.broadcast %38 : vector<64x1xf32> to vector<64x1024xf32>
    %40 = arith.addf %37, %39 : vector<64x1024xf32>
    %cst_18 = arith.constant 0.000000e+00 : f32
    %41 = vector.broadcast %cst_18 : f32 to vector<64x1024xf32>
    %42 = arith.maximumf %40, %41 : vector<64x1024xf32>
    %c1023_i32_19 = arith.constant 1023 : i32
    %43 = tpu.dynamic_rotate %42 by %c1023_i32_19 dim 1 : vector<64x1024xf32>, i32 -> vector<64x1024xf32>
    %44 = arith.maximumf %42, %43 : vector<64x1024xf32>
    %c0_20 = arith.constant 0 : index
    %c0_21 = arith.constant 0 : index
    %45 = vector.load %arg2[%c0_20, %c0_21] : memref<8x1024xbf16, #tpu.memory_space<vmem>>, vector<8x1024xbf16>
    %46 = arith.truncf %44 : vector<64x1024xf32> to vector<64x1024xbf16>
    %cst_22 = arith.constant dense<0.000000e+00> : vector<8x64xf32>
    %47 = tpu.matmul %45, %46, %cst_22 {dimension_numbers = #tpu.dot_dimension_numbers<[1], [1], [0], [0], [0, 0, 1, 0], [], []>} : vector<8x1024xbf16>, vector<64x1024xbf16>, vector<8x64xf32> -> vector<8x64xf32>
    %48 = arith.truncf %47 : vector<8x64xf32> to vector<8x64xbf16>
    %c0_23 = arith.constant 0 : index
    %c0_24 = arith.constant 0 : index
    %49 = vector.load %arg9[%c0_23, %c0_24] : memref<64x128xbf16, #tpu.memory_space<vmem>>, vector<64x128xbf16>
    %cst_25 = arith.constant dense<0.000000e+00> : vector<8x128xf32>
    %50 = tpu.matmul %48, %49, %cst_25 {dimension_numbers = #tpu.dot_dimension_numbers<[1], [0], [0], [1], [0, 0, 1, 1], [], []>} : vector<8x64xbf16>, vector<64x128xbf16>, vector<8x128xf32> -> vector<8x128xf32>
    %c0_26 = arith.constant 0 : index
    %c0_27 = arith.constant 0 : index
    %51 = vector.load %arg10[%c0_26, %c0_27] : memref<1x128xf32, #tpu.memory_space<vmem>>, vector<1x128xf32>
    %52 = vector.broadcast %51 : vector<1x128xf32> to vector<8x128xf32>
    %53 = arith.addf %50, %52 : vector<8x128xf32>
    %c0_28 = arith.constant 0 : index
    %c0_29 = arith.constant 0 : index
    %54 = vector.load %arg11[%c0_28, %c0_29] : memref<8x128xf32, #tpu.memory_space<vmem>>, vector<8x128xf32>
    tpu.vector_store %arg11[%c0_28, %c0_29], %53 {strides = array<i32>} : memref<8x128xf32, #tpu.memory_space<vmem>>, vector<8x128xf32>,
    return
  }
  func.func @transform_0(%arg0: i32) -> (i32, i32) {
    %c0_i32 = arith.constant 0 : i32
    %c0_i32_0 = arith.constant 0 : i32
    return %c0_i32, %arg0 : i32, i32
  }
  func.func @transform_1(%arg0: i32) -> (i32, i32) {
    %c0_i32 = arith.constant 0 : i32
    %c0_i32_0 = arith.constant 0 : i32
    %c0_i32_1 = arith.constant 0 : i32
    return %c0_i32, %c0_i32_0 : i32, i32
  }
  func.func @transform_2(%arg0: i32) -> (i32, i32) {
    %c0_i32 = arith.constant 0 : i32
    %c0_i32_0 = arith.constant 0 : i32
    %c0_i32_1 = arith.constant 0 : i32
    return %c0_i32, %c0_i32_0 : i32, i32
  }
  func.func @transform_3(%arg0: i32) -> (i32, i32) {
    %c0_i32 = arith.constant 0 : i32
    %c0_i32_0 = arith.constant 0 : i32
    %c0_i32_1 = arith.constant 0 : i32
    return %c0_i32, %c0_i32_0 : i32, i32
  }
  func.func @transform_4(%arg0: i32) -> (i32, i32) {
    %c0_i32 = arith.constant 0 : i32
    %c0_i32_0 = arith.constant 0 : i32
    %c0_i32_1 = arith.constant 0 : i32
    return %c0_i32, %c0_i32_0 : i32, i32
  }
  func.func @transform_5(%arg0: i32) -> (i32, i32) {
    %c0_i32 = arith.constant 0 : i32
    %c0_i32_0 = arith.constant 0 : i32
    %c0_i32_1 = arith.constant 0 : i32
    return %c0_i32, %c0_i32_0 : i32, i32
  }
  func.func @transform_6(%arg0: i32) -> (i32, i32) {
    %c0_i32 = arith.constant 0 : i32
    %c0_i32_0 = arith.constant 0 : i32
    %c0_i32_1 = arith.constant 0 : i32
    return %c0_i32, %c0_i32_0 : i32, i32
  }
  func.func @transform_7(%arg0: i32) -> (i32, i32) {
    %c0_i32 = arith.constant 0 : i32
    %c0_i32_0 = arith.constant 0 : i32
    %c0_i32_1 = arith.constant 0 : i32
    return %c0_i32, %c0_i32_0 : i32, i32
  }
  func.func @transform_8(%arg0: i32) -> (i32, i32) {
    %c0_i32 = arith.constant 0 : i32
    %c0_i32_0 = arith.constant 0 : i32
    %c0_i32_1 = arith.constant 0 : i32
    return %c0_i32, %c0_i32_0 : i32, i32
  }
  func.func @transform_9(%arg0: i32) -> (i32, i32) {
    %c0_i32 = arith.constant 0 : i32
    %c0_i32_0 = arith.constant 0 : i32
    %c0_i32_1 = arith.constant 0 : i32
    return %c0_i32, %c0_i32_0 : i32, i32
  }
  func.func @transform_10(%arg0: i32) -> (i32, i32) {
    %c0_i32 = arith.constant 0 : i32
    %c0_i32_0 = arith.constant 0 : i32
    return %arg0, %c0_i32 : i32, i32
  }
}

</mosaic_0001>

<bundles_post_ra>
// kernel: tpu_custom_call.1
= control target key start
LH: loop header
LB: loop body
LE: loop exit
PB: predicated region body
PF: predicated region fallthrough
CT: control target
= control target key end

     0   :  { %s7241_s0 = inlined_call_operand.vmem [shape: f32[1,2048], index: 0, kind: input, shape index: {}]   ;;  %s7242_s1 = inlined_call_operand.vmem [shape: bf16[8,1024], index: 1, kind: input, shape index: {}]   ;;  %s7243_s2 = inlined_call_operand.vmem [shape: f32[1,1024], index: 2, kind: input, shape index: {}]   ;;  %s7244_s3 = inlined_call_operand.vmem [shape: f32[1,1024], index: 3, kind: input, shape index: {}]   ;;  %s7245_s4 = inlined_call_operand.vmem [shape: f32[64,3], index: 4, kind: input, shape index: {}]   ;;  %s7246_s5 = inlined_call_operand.vmem [shape: f32[64,1], index: 5, kind: input, shape index: {}]   ;;  %s7247_s6 = inlined_call_operand.vmem [shape: bf16[64,192], index: 6, kind: input, shape index: {}]   ;;  %s7248_s7 = inlined_call_operand.vmem [shape: f32[64,1], index: 7, kind: input, shape index: {}]   ;;  %s7249_s8 = inlined_call_operand.vmem [shape: bf16[64,128], index: 8, kind: input, shape index: {}]   ;;  %s7250_s9 = inlined_call_operand.vmem [shape: f32[1,128], index: 9, kind: input, shape index: {}]   ;;  %s7251_s10 = inlined_call_operand.hbm [shape: f32[16,128], index: 10, kind: output, shape index: {}]  }
   0x1   :  { %7537 = sst [smem:[#allocation82_spill]] %s7241_s0 }
   0x2   :  { %7538 = sst [smem:[#allocation83_spill]] %s7242_s1 }
   0x3   :  { %15 = vsyncpa [#allocation3], 0 }
   0x4   :  { %17 = vsyncpa [#allocation3 + $0x1], 0  ;;  %s3833_s13 = smov 0   ;;  %s3835_s14 = smov 0  }
   0x5   :  { %s3837_s15 = smov 0   ;;  %s3839_s16 = smov 0  }
   0x6 LB: > { %s3374_s17 = sadd.s32 4294967295, %s3771_s16   ;;  %s3375_s18 = sadd.s32 4294967294, %s3771_s16   ;;  %s3771_s16 = sphi %s3839_s16, %s7961_s16   ;;  %s3767_s15 = sphi %s3837_s15, %s7960_s15   ;;  %s3763_s14 = sphi %s3835_s14, %s7959_s14   ;;  %s3759_s13 = sphi %s3833_s13, %s7958_s13  }
   0x7   : > { %s3856_s19 = sadd.s32 1, %s3771_s16   ;;  %s245_s20 = sadd.s32 1, %s3767_s15 }
   0x8   : > { %s242_s21 = ssub.s32 %s3771_s16, %s3856_s19  ;;  %p255_p0 = scmp.ne.s32.totalorder %s3767_s15, %s3763_s14 }
   0x9   : > { %p243_p1 = scmp.eq.s32.totalorder %s242_s21, 0  ;;  %p256_p2 = scmp.eq.s32.totalorder %s3374_s17, 1 }
   0xa   : > { %p261_p3 = scmp.ne.s32.totalorder %s3763_s14, %s3759_s13  ;;  %p262_p4 = scmp.eq.s32.totalorder %s3375_s18, 1 }
   0xb   : > { %s3866_s22 = scalar_select %p243_p1, %s3767_s15, %s245_s20  }
   0xc   : > { %p3868_p5 = por %p256_p2, %p255_p0  ;;  %p3872_p6 = por %p262_p4, %p261_p3 }
   0xd   : > { %p3378_p7 = scmp.ge.s32.totalorder %s3771_s16, 1  ;;  %p315_p8 = scmp.lt.s32.totalorder %s3771_s16, 3 }
   0xf   : > { %p316_p9 = pnand %p3378_p7, %p315_p8 }
  0x11   : > { %319 = sbr.rel (%p316_p9) target bundleno = 1509 (0x5e5), region = 60 }
  0x16   : > { %s3878_s25 = sshll.u32 %s3374_s17, 3  ;;  %v3773_v0 = vmov 0   ;;  %v3774_v1 = vmov 2   ;;  %v3775_v2 = vmov 1   ;;  %s7541_s0 = sld [smem:[#allocation82_spill]]  ;;  %v486_v11 = vld [vmem:[%s7245_s4 + $0x30] sm:$0xff]  ;;  %v394_v36 = vlaneseq }
  0x17   : > { %p353_p10 = scmp.lt.s32.totalorder %s3878_s25, 15  ;;  %3522 = vset.pattern.permute.xlu2 %v3773_v0  ;;  %3526 = vset.pattern.permute.xlu0 %v3774_v1  ;;  %s3776_s30 = smov 1   ;;  %v487_v12 = vld [vmem:[%s7245_s4 + $0x38] sm:$0xff]  ;;  %v484_v13 = vld [vmem:[%s7245_s4 + $0x20] sm:$0xff]  ;;  %v482_v14 = vld [vmem:[%s7245_s4 + $0x10] sm:$0xff]  ;;  %vm2284_vm2 = vcmask 523264  }
  0x18   : > { %3523 = vset.pattern.permute.xlu1 %v3775_v2  ;;  %s3777_s11 = smov 127   ;;  %v485_v15 = vld [vmem:[%s7245_s4 + $0x28] sm:$0xff]  ;;  %v935_v16 = vld [vmem:[%s7246_s5 + $0x38] sm:$0xff]  ;;  %v934_v17 = vld [vmem:[%s7246_s5 + $0x30] sm:$0xff]  ;;  %v4022_v40 = vand.u32 127, %v394_v36  ;;  %s7911_s1 = sld [smem:[#allocation83_spill]] }
  0x19   : > { %s354_s26 = scalar_select %p353_p10, %s3878_s25, 15  ;;  %v481_v18 = vld [vmem:[%s7245_s4 + $0x8] sm:$0xff]  ;;  %v483_v19 = vld [vmem:[%s7245_s4 + $0x18] sm:$0xff]  ;;  %v930_v20 = vld [vmem:[%s7246_s5 + $0x10] sm:$0xff] }
  0x1a   : > { %v929_v21 = vld [vmem:[%s7246_s5 + $0x8] sm:$0xff]  ;;  %v932_v23 = vld [vmem:[%s7246_s5 + $0x20] sm:$0xff]  ;;  %v931_v34 = vld [vmem:[%s7246_s5 + $0x18] sm:$0xff]  ;;  %vm396_vm0 = vcmp.lt.s32.totalorder %v4022_v40, 1  ;;  %vm446_vm1 = vcmp.lt.s32.totalorder %v4022_v40, 127  ;;  %s3314_s20 = scalar_lea.hbm %s7251_s10, %s3878_s25  ;;  %s3729_s18 = scalar_lea.hbm %s7251_s10, 16 }
  0x1b   : > { %v933_v25 = vld [vmem:[%s7246_s5 + $0x28] sm:$0xff]  ;;  %v480_v26 = vld [vmem:[%s7245_s4] sm:$0xff]  ;;  %s3318_s28 = sshll.u32 %s3314_s20, 4  ;;  %s3319_s28 = int_to_ptr.hbm [resolvable:$true] %s3318_s28 }
  0x1c   : > { %s355_s29 = scalar_lea.vmem %s7541_s0, %s354_s26  ;;  %v928_v35 = vld [vmem:[%s7246_s5] sm:$0xff]  ;;  %s3723_s0 = sshra.s32 %s3319_s28, 4  ;;  %s3724_s0 = int_to_ptr.hbm [resolvable:$true] %s3723_s0 }
  0x1d   : > { %v3888_v3 = vld [vmem:[%s355_s29] sm:$0xff]  ;;  %p3730_p0 = scmp.lt.s32.totalorder %s3724_s0, %s7251_s10 }
  0x1e   : > { %v3891_v4 = vperm.slane %v3888_v3, 4  ;;  %v3894_v5 = vperm.slane %v3888_v3, 2  ;;  %v3897_v6 = vperm.slane %v3888_v3, 0  ;;  %v3906_v7 = vperm.slane %v3888_v3, 7  ;;  %v4027_v41 = vld [vmem:[%s7243_s2] sm:$0xff] }
  0x1f   : > { %v3909_v8 = vperm.slane %v3888_v3, 3  ;;  %v3912_v9 = vperm.slane %v3888_v3, 1  ;;  %v3927_v10 = vperm.slane %v3888_v3, 6  ;;  %v4035_v44 = vperm.slane %v4027_v41, 0  ;;  %v4048_v48 = vld [vmem:[%s7244_s3] sm:$0xff] }
  0x20   : > { %386 = vrot.lane.b32.xlu2 %v3891_v4, %s3776_s30  ;;  %382 = vrot.lane.b32.xlu1 %v3894_v5, %s3776_s30  ;;  %v4038_v45 = vperm.slane %v4027_v41, 1  ;;  %v4056_v52 = vperm.slane %v4048_v48, 1  ;;  %v4059_v53 = vperm.slane %v4048_v48, 0 }
  0x21   : > { %378 = vrot.lane.b32.xlu0 %v3897_v6, %s3776_s30  ;;  %7542 = vst [vmem:[#allocation5_spill] sm:$0xff] %v3909_v8 }
  0x22   : > { %7543 = vst [vmem:[#allocation6_spill] sm:$0xff] %v3927_v10 }
  0x28   : > { %392 = vrot.lane.b32.xlu2 %v3906_v7, %s3776_s30  ;;  %384 = vrot.lane.b32.xlu1 %v3909_v8, %s3776_s30 }
  0x29   : > { %380 = vrot.lane.b32.xlu0 %v3912_v9, %s3776_s30 }
  0x30   : > { %434 = vrot.lane.b32.xlu2 %v3894_v5, %s3777_s11  ;;  %432 = vrot.lane.b32.xlu1 %v3912_v9, %s3777_s11 }
  0x31   : > { %430 = vrot.lane.b32.xlu0 %v3897_v6, %s3777_s11 }
  0x38   : > { %520 = vperm.xlu2 %3522, %v486_v11   ;;  %390 = vrot.lane.b32.xlu1 %v3927_v10, %s3776_s30 }
  0x39   : > { %436 = vrot.lane.b32.xlu0 %v3909_v8, %s3777_s11 }
  0x40   : > { %3524 = vset.pattern.permute.xlu2 %v3775_v2  ;;  %625 = vperm.xlu1 %3523, %v486_v11  }
  0x41   : > { %789 = vperm.xlu0 %3526, %v487_v12   ;;  %629 = vperm.xlu2 %3524, %v487_v12  }
  0x48   : > { %444 = vrot.lane.b32.xlu1 %v3906_v7, %s3777_s11 }
  0x49   : > { %777 = vperm.xlu0 %3526, %v484_v13   ;;  %3525 = vset.pattern.permute.xlu2 %v3774_v1 }
  0x4a   : > { %785 = vperm.xlu2 %3525, %v486_v11   ;;  %3527 = vset.pattern.permute.xlu1 %v3773_v0 }
  0x50   : > { %510 = vperm.xlu1 %3527, %v484_v13  }
  0x51   : > { %769 = vperm.xlu0 %3526, %v482_v14  }
  0x52   : > { %3528 = vset.pattern.permute.xlu2 %v3773_v0 }
  0x53   : > { %515 = vperm.xlu2 %3528, %v485_v15  }
  0x58   : > { %3529 = vset.pattern.permute.xlu1 %v3775_v2 }
  0x59   : > { %3536 = vset.pattern.permute.xlu0 %v3773_v0  ;;  %617 = vperm.xlu1 %3529, %v484_v13  }
  0x5a   : > { %525 = vperm.xlu0 %3536, %v487_v12  }
  0x5b   : > { %3530 = vset.pattern.permute.xlu2 %v3775_v2 }
  0x5c   : > { %621 = vperm.xlu2 %3530, %v485_v15  }
  0x61   : > { %3531 = vset.pattern.permute.xlu1 %v3774_v1 }
  0x62   : > { %973 = vperm.xlu0 %3536, %v935_v16   ;;  %781 = vperm.xlu1 %3531, %v485_v15  }
  0x64   : > { %3532 = vset.pattern.permute.xlu2 %v3773_v0 }
  0x65   : > { %968 = vperm.xlu2 %3532, %v934_v17  }
  0x6a   : > { %495 = vperm.xlu0 %3536, %v481_v18   ;;  %3533 = vset.pattern.permute.xlu1 %v3773_v0 }
  0x6b   : > { %500 = vperm.xlu1 %3533, %v482_v14  }
  0x6d   : > { %505 = vperm.xlu2 %3532, %v483_v19  }
  0x72   : > { %948 = vperm.xlu0 %3536, %v930_v20  }
  0x73   : > { %3534 = vset.pattern.permute.xlu1 %v3775_v2 }
  0x74   : > { %609 = vperm.xlu1 %3534, %v482_v14  }
  0x75   : > { %3535 = vset.pattern.permute.xlu2 %v3775_v2 }
  0x76   : > { %613 = vperm.xlu2 %3535, %v483_v19  }
  0x7a   : > { %943 = vperm.xlu0 %3536, %v929_v21   ;;  %v3980_v22 = vpop.permute.xlu2 %386 }
  0x7b   : > { %7544 = vst [vmem:[#allocation7_spill] sm:$0xff] %v3980_v22 }
  0x7c   : > { %3537 = vset.pattern.permute.xlu1 %v3774_v1 }
  0x7d   : > { %773 = vperm.xlu1 %3537, %v483_v19  }
  0x7e   : > { %3538 = vset.pattern.permute.xlu2 %v3773_v0 }
  0x7f   : > { %958 = vperm.xlu2 %3538, %v932_v23  }
  0x82   : > { %v3987_v24 = vpop.permute.xlu2 %392 }
  0x85   : > { %3539 = vset.pattern.permute.xlu1 %v3773_v0 }
  0x86   : > { %963 = vperm.xlu1 %3539, %v933_v25  }
  0x87   : > { %490 = vperm.xlu2 %3538, %v480_v26  }
  0x8a   : > { %v3996_v27 = vpop.permute.xlu2 %434 }
  0x8e   : > { %3540 = vset.pattern.permute.xlu1 %v3775_v2 }
  0x8f   : > { %3541 = vset.pattern.permute.xlu2 %v3775_v2  ;;  %601 = vperm.xlu1 %3540, %v480_v26  }
  0x90   : > { %605 = vperm.xlu2 %3541, %v481_v18  }
  0x92   : > { %v4000_v28 = vpop.permute.xlu1 %382  ;;  %v4002_v29 = vpop.permute.xlu2 %520 }
  0x93   : > { %7545 = vst [vmem:[#allocation8_spill] sm:$0xff] %v4002_v29  ;;  %v379_v30 = vpop.permute.xlu0 %378 }
  0x94   : > { %v404_v46 = vsel %vm396_vm0, %v3987_v24, %v379_v30 }
  0x95   : > { %v422_v50 = vmul.f32 %v4035_v44, %v404_v46 }
  0x97   : > { %3542 = vset.pattern.permute.xlu1 %v3774_v1  ;;  %v4071_v58 = vperm.slane %v422_v50, 0 }
  0x98   : > { %3543 = vset.pattern.permute.xlu2 %v3774_v1  ;;  %761 = vperm.xlu1 %3542, %v480_v26  }
  0x99   : > { %765 = vperm.xlu2 %3543, %v481_v18   ;;  %v584_v12 = vmul.f32 %v4071_v58, %v4002_v29 }
  0x9a   : > { %v4006_v31 = vpop.permute.xlu1 %384 }
  0x9b   : > { %v381_v32 = vpop.permute.xlu0 %380  ;;  %v4008_v33 = vpop.permute.xlu2 %629 }
  0x9c   : > { %7546 = vst [vmem:[#allocation9_spill] sm:$0xff] %v4008_v33  ;;  %v403_v47 = vsel %vm396_vm0, %v379_v30, %v381_v32 }
  0x9d   : > { %v423_v51 = vmul.f32 %v4038_v45, %v403_v47  ;;  %v4123_v47 = vperm.slane %v4048_v48, 2 }
  0x9f   : > { %v4073_v59 = vperm.slane %v423_v51, 0  ;;  %7558 = vst [vmem:[#allocation21_spill] sm:$0xff] %v4123_v47 }
  0xa0   : > { %3544 = vset.pattern.permute.xlu1 %v3773_v0 }
  0xa1   : > { %953 = vperm.xlu1 %3544, %v931_v34   ;;  %3545 = vset.pattern.permute.xlu2 %v3773_v0  ;;  %v585_v11 = vmul.f32 %v4073_v59, %v4002_v29 }
  0xa2   : > { %v433_v37 = vpop.permute.xlu1 %432  ;;  %938 = vperm.xlu2 %3545, %v928_v35   ;;  %v4110_v35 = vperm.slane %v4027_v41, 2 }
  0xa3   : > { %v4018_v38 = vpop.permute.xlu0 %430  ;;  %v452_v54 = vsel %vm446_vm1, %v433_v37, %v3996_v27 }
  0xa4   : > { %v4020_v39 = vpop.permute.xlu2 %785  ;;  %v453_v55 = vsel %vm446_vm1, %v4018_v38, %v433_v37  ;;  %v473_v60 = vmul.f32 %v4056_v52, %v452_v54  ;;  %7557 = vst [vmem:[#allocation20_spill] sm:$0xff] %v4110_v35  ;;  %v402_v37 = vsel %vm396_vm0, %v381_v32, %v4000_v28 }
  0xa5   : > { %7547 = vst [vmem:[#allocation10_spill] sm:$0xff] %v4020_v39  ;;  %v472_v61 = vmul.f32 %v4059_v53, %v453_v55  ;;  %v424_v46 = vmul.f32 %v4110_v35, %v402_v37 }
  0xa6   : > { %v4083_v1 = vperm.slane %v473_v60, 0  ;;  %v690_v60 = vmul.f32 %v4008_v33, %v3894_v5 }
  0xa7   : > { %v4085_v2 = vperm.slane %v472_v61, 0  ;;  %v4129_v51 = vperm.slane %v424_v46, 0  ;;  %v688_v61 = vmul.f32 %v4008_v33, %v3897_v6 }
  0xa8   : > { %v849_v17 = vmul.f32 %v4083_v1, %v4020_v39 }
  0xa9   : > { %v848_v18 = vmul.f32 %v4085_v2, %v4020_v39 }
  0xaa   : > { %v4030_v42 = vpop.permute.xlu1 %390 }
  0xab   : > { %7548 = vst [vmem:[#allocation11_spill] sm:$0xff] %v4030_v42  ;;  %v4032_v43 = vpop.permute.xlu0 %436 }
  0xac   : > { %v451_v50 = vsel %vm446_vm1, %v3996_v27, %v4032_v43 }
  0xad   : > { %v4050_v49 = vpop.permute.xlu2 %515  ;;  %v474_v32 = vmul.f32 %v4123_v47, %v451_v50  ;;  %v586_v50 = vmul.f32 %v4129_v51, %v4002_v29 }
  0xae   : > { %7549 = vst [vmem:[#allocation12_spill] sm:$0xff] %v4050_v49 }
  0xb2   : > { %v4067_v56 = vpop.permute.xlu1 %625 }
  0xb3   : > { %7550 = vst [vmem:[#allocation13_spill] sm:$0xff] %v4067_v56  ;;  %v4069_v57 = vpop.permute.xlu0 %789  ;;  %v681_v63 = vmul.f32 %v4067_v56, %v3912_v9  ;;  %v680_v0 = vmul.f32 %v4067_v56, %v3897_v6 }
  0xb4   : > { %7551 = vst [vmem:[#allocation14_spill] sm:$0xff] %v4069_v57  ;;  %v857_v37 = vmul.f32 %v4083_v1, %v4069_v57 }
  0xb5   : > { %v745_v14 = vadd.f32 %v681_v63, %v585_v11  ;;  %v744_v15 = vadd.f32 %v680_v0, %v584_v12  ;;  %v689_v11 = vmul.f32 %v4008_v33, %v3912_v9  ;;  %v4149_v12 = vperm.slane %v4027_v41, 7 }
  0xb6   : > { %v4077_v62 = vpop.permute.xlu2 %621 }
  0xb7   : > { %7552 = vst [vmem:[#allocation15_spill] sm:$0xff] %v4077_v62  ;;  %v913_v19 = vadd.f32 %v849_v17, %v745_v14  ;;  %v912_v20 = vadd.f32 %v848_v18, %v744_v15  ;;  %v397_v14 = vsel %vm396_vm0, %v4030_v42, %v3987_v24  ;;  %v4155_v15 = vperm.slane %v474_v32, 0 }
  0xb8   : > { %7561 = vst [vmem:[#allocation24_spill] sm:$0xff] %v4149_v12  ;;  %v429_v46 = vmul.f32 %v4149_v12, %v397_v14  ;;  %v4167_v24 = vperm.slane %v4048_v48, 7 }
  0xba   : > { %v4091_v13 = vpop.permute.xlu1 %444  ;;  %7562 = vst [vmem:[#allocation25_spill] sm:$0xff] %v4167_v24  ;;  %v4184_v47 = vperm.slane %v429_v46, 0 }
  0xbb   : > { %7553 = vst [vmem:[#allocation16_spill] sm:$0xff] %v4091_v13  ;;  %v4093_v16 = vpop.permute.xlu0 %777  ;;  %v454_v32 = vsel %vm446_vm1, %v4091_v13, %v4018_v38 }
  0xbc   : > { %7554 = vst [vmem:[#allocation17_spill] sm:$0xff] %v4093_v16  ;;  %v479_v38 = vmul.f32 %v4167_v24, %v454_v32 }
  0xbf   : > { %v4099_v21 = vpop.permute.xlu2 %968 }
  0xc0   : > { %7555 = vst [vmem:[#allocation18_spill] sm:$0xff] %v4099_v21  ;;  %v1025_v23 = vadd.f32 %v4099_v21, %v913_v19  ;;  %v1024_v25 = vadd.f32 %v4099_v21, %v912_v20  ;;  %v682_v20 = vmul.f32 %v4067_v56, %v3894_v5 }
  0xc2   : > { %v4103_v26 = vpop.permute.xlu1 %510  ;;  %v4105_v30 = vmax.f32 %v1025_v23, 0.0  ;;  %v4107_v34 = vmax.f32 %v1024_v25, 0.0  ;;  %v858_v23 = vmul.f32 %v4155_v15, %v4069_v57  ;;  %v856_v25 = vmul.f32 %v4085_v2, %v4069_v57 }
  0xc3   : > { %7556 = vst [vmem:[#allocation19_spill] sm:$0xff] %v4103_v26  ;;  %v4112_v36 = vpop.permute.xlu0 %769  ;;  %v746_v14 = vadd.f32 %v682_v20, %v586_v50  ;;  %v4198_v50 = vperm.slane %v479_v38, 0 }
  0xc4   : > { %1420 = vrot.lane.b32.xlu0 %v4105_v30, %s3777_s11  ;;  %1404 = vrot.lane.b32.xlu1 %v4107_v34, %s3777_s11  ;;  %v1704_v20 = vpack.c.bf16 %v4105_v30, %v4107_v34 }
  0xcb   : > { %v4132_v54 = vpop.permute.xlu1 %617 }
  0xcc   : > { %7559 = vst [vmem:[#allocation22_spill] sm:$0xff] %v4132_v54  ;;  %v4134_v55 = vpop.permute.xlu0 %525 }
  0xcd   : > { %7560 = vst [vmem:[#allocation23_spill] sm:$0xff] %v4134_v55  ;;  %v594_v63 = vmul.f32 %v4129_v51, %v4134_v55  ;;  %v592_v27 = vmul.f32 %v4071_v58, %v4134_v55  ;;  %v593_v0 = vmul.f32 %v4073_v59, %v4134_v55  ;;  %v599_v46 = vmul.f32 %v4184_v47, %v4134_v55 }
  0xcf   : > { %v754_v17 = vadd.f32 %v690_v60, %v594_v63  ;;  %v752_v18 = vadd.f32 %v688_v61, %v592_v27  ;;  %v753_v19 = vadd.f32 %v689_v11, %v593_v0  ;;  %v4175_v60 = vpop.permute.xlu2 %505 }
  0xd0   : > { %7563 = vst [vmem:[#allocation26_spill] sm:$0xff] %v4175_v60 }
  0xd1   : > { %v922_v61 = vadd.f32 %v858_v23, %v754_v17  ;;  %v920_v63 = vadd.f32 %v856_v25, %v752_v18  ;;  %v921_v27 = vadd.f32 %v857_v37, %v753_v19  ;;  %v850_v17 = vmul.f32 %v4155_v15, %v4020_v39 }
  0xd3   : > { %v914_v25 = vadd.f32 %v850_v17, %v746_v14 }
  0xd4   : > { %v4177_v0 = vpop.permute.xlu0 %973  ;;  %v4179_v11 = vpop.permute.xlu1 %781 }
  0xd5   : > { %7564 = vst [vmem:[#allocation27_spill] sm:$0xff] %v4177_v0  ;;  %v1034_v12 = vadd.f32 %v4177_v0, %v922_v61  ;;  %v1032_v42 = vadd.f32 %v4177_v0, %v920_v63  ;;  %v1033_v35 = vadd.f32 %v4177_v0, %v921_v27  ;;  %v1953_v61 = vunpack.c.h.b16 %v1704_v20 }
  0xd6   : > { %7565 = vst [vmem:[#allocation28_spill] sm:$0xff] %v4179_v11 }
  0xd7   : > { %v4189_v18 = vmax.f32 %v1034_v12, 0.0  ;;  %v1096_v19 = vmax.f32 %v1032_v42, 0.0  ;;  %v1097_v23 = vmax.f32 %v1033_v35, 0.0  ;;  %v1026_v42 = vadd.f32 %v4099_v21, %v914_v25  ;;  %v4204_v27 = vpop.permute.xlu2 %613 }
  0xd8   : > { %v695_v35 = vmul.f32 %v4008_v33, %v3906_v7  ;;  %v1952_v12 = vunpack.c.l.b16 %v1704_v20  ;;  %7567 = vst [vmem:[#allocation30_spill] sm:$0xff] %v4204_v27  ;;  %v863_v25 = vmul.f32 %v4198_v50, %v4069_v57 }
  0xd9   : > { %7566 = vst [vmem:[#allocation29_spill] sm:$0xff] %v4189_v18  ;;  %1438 = vrot.lane.b32.xlu0 %v4189_v18, %s3777_s11  ;;  %1406 = vrot.lane.b32.xlu2 %v1096_v19, %s3777_s11  ;;  %v1708_v37 = vpack.c.bf16 %v1097_v23, %v1096_v19  ;;  %v4208_v38 = vmax.f32 %v1026_v42, 0.0  ;;  %v570_v18 = vmul.f32 %v4129_v51, %v4103_v26 }
  0xda   : > { %1422 = vrot.lane.b32.xlu1 %v1097_v23, %s3777_s11  ;;  %v759_v13 = vadd.f32 %v695_v35, %v599_v46  ;;  %v687_v46 = vmul.f32 %v4067_v56, %v3906_v7  ;;  %v855_v35 = vmul.f32 %v4198_v50, %v4020_v39 }
  0xdb   : > { %v1960_v32 = vunpack.c.l.b16 %v1708_v37  ;;  %v1961_v63 = vunpack.c.h.b16 %v1708_v37  ;;  %7569 = vst [vmem:[#allocation32_spill] sm:$0xff] %v4208_v38  ;;  %v665_v37 = vmul.f32 %v4132_v54, %v3912_v9 }
  0xdc   : > { %v927_v20 = vadd.f32 %v863_v25, %v759_v13  ;;  %v591_v13 = vmul.f32 %v4184_v47, %v4002_v29 }
  0xdd   : > { %v4206_v14 = vpop.permute.xlu1 %500  ;;  %v1992_v17 = vpack.c.b16 %v1960_v32, %v1952_v12  ;;  %v1993_v24 = vpack.c.b16 %v1961_v63, %v1953_v61  ;;  %v568_v12 = vmul.f32 %v4071_v58, %v4103_v26 }
  0xde   : > { %7568 = vst [vmem:[#allocation31_spill] sm:$0xff] %v4206_v14  ;;  %v1039_v42 = vadd.f32 %v4177_v0, %v927_v20  ;;  %v751_v61 = vadd.f32 %v687_v46, %v591_v13  ;;  %v833_v20 = vmul.f32 %v4083_v1, %v4093_v16 }
  0xdf   : > { %2297 = vmatpush.bf16.msra.mxu0 %v1992_v17  ;;  %2355 = vmatpush.bf16.msra.mxu2 %v1993_v24  ;;  %v664_v24 = vmul.f32 %v4132_v54, %v3897_v6  ;;  %v4235_v17 = vpop.permute.xlu2 %958 }
  0xe0   : > { %7571 = vst [vmem:[#allocation34_spill] sm:$0xff] %v4235_v17  ;;  %v4237_v25 = vmax.f32 %v1039_v42, 0.0  ;;  %v919_v10 = vadd.f32 %v855_v35, %v751_v61 }
  0xe1   : > { %1132 = vrot.lane.b32.xlu0 %v4105_v30, %s3776_s30  ;;  %1436 = vrot.lane.b32.xlu2 %v4208_v38, %s3777_s11  ;;  %v569_v30 = vmul.f32 %v4073_v59, %v4103_v26  ;;  %v728_v63 = vadd.f32 %v664_v24, %v568_v12  ;;  %v832_v38 = vmul.f32 %v4085_v2, %v4093_v16 }
  0xe2   : > { %1116 = vrot.lane.b32.xlu1 %v4107_v34, %s3776_s30  ;;  %7572 = vst [vmem:[#allocation35_spill] sm:$0xff] %v4237_v25  ;;  %v1031_v42 = vadd.f32 %v4099_v21, %v919_v10  ;;  %v674_v10 = vmul.f32 %v4077_v62, %v3894_v5 }
  0xe3   : > { %v729_v32 = vadd.f32 %v665_v37, %v569_v30  ;;  %v896_v46 = vadd.f32 %v832_v38, %v728_v63  ;;  %v578_v38 = vmul.f32 %v4129_v51, %v4050_v49  ;;  %v842_v63 = vmul.f32 %v4155_v15, %v4179_v11 }
  0xe4   : > { %v4254_v12 = vmax.f32 %v1031_v42, 0.0 }
  0xe5   : > { %v897_v37 = vadd.f32 %v833_v20, %v729_v32  ;;  %v1008_v30 = vadd.f32 %v4235_v17, %v896_v46  ;;  %v576_v32 = vmul.f32 %v4071_v58, %v4050_v49  ;;  %v840_v20 = vmul.f32 %v4085_v2, %v4179_v11 }
  0xe6   : > { %v4233_v34 = vpop.permute.xlu1 %609  ;;  %7574 = vst [vmem:[#allocation37_spill] sm:$0xff] %v4254_v12  ;;  %v841_v46 = vmul.f32 %v4083_v1, %v4179_v11  ;;  %v738_v42 = vadd.f32 %v674_v10, %v578_v38  ;;  %v834_v10 = vmul.f32 %v4155_v15, %v4093_v16 }
  0xe7   : > { %7570 = vst [vmem:[#allocation33_spill] sm:$0xff] %v4233_v34  ;;  %v1009_v24 = vadd.f32 %v4235_v17, %v897_v37  ;;  %v4256_v61 = vmax.f32 %v1008_v30, 0.0  ;;  %v577_v37 = vmul.f32 %v4073_v59, %v4050_v49 }
  0xe8   : > { %v906_v0 = vadd.f32 %v842_v63, %v738_v42 }
  0xe9   : > { %1230 = vrot.lane.b32.xlu0 %v4237_v25, %s3776_s30  ;;  %1118 = vrot.lane.b32.xlu2 %v1096_v19, %s3776_s30  ;;  %v4252_v35 = vmax.f32 %v1009_v24, 0.0  ;;  %v4258_v25 = vpop.permute.xlu2 %490  ;;  %v672_v19 = vmul.f32 %v4077_v62, %v3897_v6  ;;  %v666_v24 = vmul.f32 %v4132_v54, %v3894_v5 }
  0xea   : > { %1134 = vrot.lane.b32.xlu1 %v1097_v23, %s3776_s30  ;;  %v673_v23 = vmul.f32 %v4077_v62, %v3912_v9 }
  0xeb   : > { %v736_v30 = vadd.f32 %v672_v19, %v576_v32  ;;  %v730_v33 = vadd.f32 %v666_v24, %v570_v18  ;;  %v1696_v18 = vpack.c.bf16 %v4252_v35, %v4256_v61  ;;  %v649_v24 = vmul.f32 %v4233_v34, %v3912_v9 }
  0xed   : > { %v904_v21 = vadd.f32 %v840_v20, %v736_v30  ;;  %v1937_v63 = vunpack.c.h.b16 %v1696_v18 }
  0xef   : > { %v4250_v13 = vpop.permute.xlu1 %773 }
  0xf0   : > { %7573 = vst [vmem:[#allocation36_spill] sm:$0xff] %v4250_v13 }
  0xf1   : > { %1416 = vrot.lane.b32.xlu0 %v4252_v35, %s3777_s11  ;;  %1228 = vrot.lane.b32.xlu2 %v4254_v12, %s3776_s30  ;;  %v737_v12 = vadd.f32 %v673_v23, %v577_v37  ;;  %v4295_v19 = vpop.permute.xlu2 %605  ;;  %v583_v37 = vmul.f32 %v4184_v47, %v4050_v49 }
  0xf2   : > { %1400 = vrot.lane.b32.xlu1 %v4256_v61, %s3777_s11 }
  0xf3   : > { %v905_v57 = vadd.f32 %v841_v46, %v737_v12  ;;  %v898_v12 = vadd.f32 %v834_v10, %v730_v33  ;;  %v671_v33 = vmul.f32 %v4132_v54, %v3906_v7  ;;  %v847_v46 = vmul.f32 %v4198_v50, %v4179_v11 }
  0xf8   : > { %v4288_v39 = vpop.permute.xlu1 %963 }
  0xf9   : > { %7575 = vst [vmem:[#allocation38_spill] sm:$0xff] %v4288_v39  ;;  %v1018_v29 = vadd.f32 %v4288_v39, %v906_v0  ;;  %v1016_v55 = vadd.f32 %v4288_v39, %v904_v21  ;;  %v1017_v8 = vadd.f32 %v4288_v39, %v905_v57  ;;  %v4305_v0 = vpop.permute.xlu0 %495  ;;  %v679_v57 = vmul.f32 %v4077_v62, %v3906_v7 }
  0xfa   : > { %v1936_v21 = vunpack.c.l.b16 %v1696_v18  ;;  %v648_v18 = vmul.f32 %v4233_v34, %v3897_v6  ;;  %v552_v62 = vmul.f32 %v4071_v58, %v4206_v14 }
  0xfb   : > { %v4297_v23 = vmax.f32 %v1018_v29, 0.0  ;;  %v4299_v38 = vmax.f32 %v1016_v55, 0.0  ;;  %v4301_v32 = vmax.f32 %v1017_v8, 0.0  ;;  %v1010_v8 = vadd.f32 %v4235_v17, %v898_v12 }
  0xfc   : > { %v575_v12 = vmul.f32 %v4184_v47, %v4103_v26  ;;  %v657_v26 = vmul.f32 %v4204_v27, %v3912_v9 }
  0xfd   : > { %7576 = vst [vmem:[#allocation39_spill] sm:$0xff] %v4297_v23  ;;  %1434 = vrot.lane.b32.xlu0 %v4297_v23, %s3777_s11  ;;  %1402 = vrot.lane.b32.xlu2 %v4299_v38, %s3777_s11  ;;  %v1700_v29 = vpack.c.bf16 %v4301_v32, %v4299_v38  ;;  %v553_v23 = vmul.f32 %v4073_v59, %v4206_v14  ;;  %v4334_v11 = vmax.f32 %v1010_v8, 0.0 }
  0xfe   : > { %1418 = vrot.lane.b32.xlu1 %v4301_v32, %s3777_s11  ;;  %v735_v49 = vadd.f32 %v671_v33, %v575_v12  ;;  %v816_v33 = vmul.f32 %v4085_v2, %v4112_v36  ;;  %v640_v12 = vmul.f32 %v4295_v19, %v3897_v6 }
  0xff   : > { %v1944_v55 = vunpack.c.l.b16 %v1700_v29  ;;  %v1945_v20 = vunpack.c.h.b16 %v1700_v29  ;;  %v743_v29 = vadd.f32 %v679_v57, %v583_v37  ;;  %7577 = vst [vmem:[#allocation40_spill] sm:$0xff] %v4334_v11  ;;  %v839_v57 = vmul.f32 %v4198_v50, %v4093_v16 }
 0x101   : > { %v4326_v42 = vpop.permute.xlu1 %601  ;;  %v1984_v30 = vpack.c.b16 %v1944_v55, %v1936_v21  ;;  %v1985_v10 = vpack.c.b16 %v1945_v20, %v1937_v63  ;;  %v911_v21 = vadd.f32 %v847_v46, %v743_v29  ;;  %v713_v55 = vadd.f32 %v649_v24, %v553_v23  ;;  %v4338_v63 = vpop.permute.xlu2 %765 }
 0x102   : > { %v712_v20 = vadd.f32 %v648_v18, %v552_v62  ;;  %v817_v23 = vmul.f32 %v4083_v1, %v4112_v36  ;;  %v4355_v37 = vpop.permute.xlu0 %948  ;;  %v903_v46 = vadd.f32 %v839_v57, %v735_v49  ;;  %v561_v62 = vmul.f32 %v4073_v59, %v4175_v60 }
 0x103   : > { %2298 = vmatpush.bf16.msra.mxu0 %v1984_v30  ;;  %2356 = vmatpush.bf16.msra.mxu2 %v1985_v10  ;;  %v1023_v8 = vadd.f32 %v4288_v39, %v911_v21  ;;  %v633_v24 = vmul.f32 %v4326_v42, %v3912_v9  ;;  %v656_v10 = vmul.f32 %v4204_v27, %v3897_v6 }
 0x104   : > { %v881_v30 = vadd.f32 %v817_v23, %v713_v55  ;;  %v641_v18 = vmul.f32 %v4295_v19, %v3912_v9  ;;  %v880_v49 = vadd.f32 %v816_v33, %v712_v20  ;;  %v536_v29 = vmul.f32 %v4071_v58, %v4258_v25 }
 0x105   : > { %1128 = vrot.lane.b32.xlu0 %v4252_v35, %s3776_s30  ;;  %1432 = vrot.lane.b32.xlu2 %v4334_v11, %s3777_s11  ;;  %v560_v35 = vmul.f32 %v4071_v58, %v4175_v60  ;;  %v537_v21 = vmul.f32 %v4073_v59, %v4258_v25  ;;  %v544_v57 = vmul.f32 %v4071_v58, %v4305_v0  ;;  %v4377_v23 = vmax.f32 %v1023_v8, 0.0 }
 0x106   : > { %1112 = vrot.lane.b32.xlu1 %v4256_v61, %s3776_s30  ;;  %v632_v61 = vmul.f32 %v4326_v42, %v3897_v6  ;;  %v545_v6 = vmul.f32 %v4073_v59, %v4305_v0  ;;  %v808_v11 = vmul.f32 %v4085_v2, %v4338_v63  ;;  %v809_v20 = vmul.f32 %v4083_v1, %v4338_v63 }
 0x107   : > { %7578 = vst [vmem:[#allocation41_spill] sm:$0xff] %v4377_v23  ;;  %v697_v39 = vadd.f32 %v633_v24, %v537_v21  ;;  %v993_v8 = vadd.f32 %v4355_v37, %v881_v30  ;;  %v704_v59 = vadd.f32 %v640_v12, %v544_v57  ;;  %v992_v24 = vadd.f32 %v4355_v37, %v880_v49 }
 0x108   : > { %v696_v33 = vadd.f32 %v632_v61, %v536_v29  ;;  %v705_v54 = vadd.f32 %v641_v18, %v545_v6  ;;  %v824_v9 = vmul.f32 %v4085_v2, %v4250_v13  ;;  %v825_v30 = vmul.f32 %v4083_v1, %v4250_v13 }
 0x109   : > { %v4396_v61 = vpop.permute.xlu2 %938  ;;  %v872_v12 = vadd.f32 %v808_v11, %v704_v59  ;;  %v1015_v57 = vadd.f32 %v4235_v17, %v903_v46  ;;  %v720_v6 = vadd.f32 %v656_v10, %v560_v35  ;;  %v721_v49 = vadd.f32 %v657_v26, %v561_v62 }
 0x10a   : > { %v4375_v55 = vpop.permute.xlu1 %761  ;;  %v873_v18 = vadd.f32 %v809_v20, %v705_v54  ;;  %v826_v54 = vmul.f32 %v4155_v15, %v4250_v13 }
 0x10b   : > { %v800_v16 = vmul.f32 %v4085_v2, %v4375_v55  ;;  %v801_v58 = vmul.f32 %v4083_v1, %v4375_v55  ;;  %v1056_v2 = vmax.f32 %v992_v24, 0.0  ;;  %v562_v1 = vmul.f32 %v4129_v51, %v4175_v60 }
 0x10c   : > { %v888_v11 = vadd.f32 %v824_v9, %v720_v6  ;;  %v889_v46 = vadd.f32 %v825_v30, %v721_v49  ;;  %v4422_v10 = vmax.f32 %v1015_v57, 0.0  ;;  %v554_v30 = vmul.f32 %v4129_v51, %v4206_v14 }
 0x10d   : > { %1226 = vrot.lane.b32.xlu0 %v4377_v23, %s3776_s30  ;;  %1114 = vrot.lane.b32.xlu2 %v4299_v38, %s3776_s30  ;;  %v864_v29 = vadd.f32 %v800_v16, %v696_v33  ;;  %v865_v21 = vadd.f32 %v801_v58, %v697_v39  ;;  %v658_v38 = vmul.f32 %v4204_v27, %v3894_v5  ;;  %v4412_v33 = vmax.f32 %v993_v8, 0.0 }
 0x10e   : > { %1130 = vrot.lane.b32.xlu1 %v4301_v32, %s3776_s30  ;;  %v4410_v32 = vpop.permute.xlu0 %943  ;;  %7579 = vst [vmem:[#allocation42_spill] sm:$0xff] %v4422_v10  ;;  %v650_v58 = vmul.f32 %v4233_v34, %v3894_v5 }
 0x10f   : > { %v976_v39 = vadd.f32 %v4396_v61, %v864_v29  ;;  %v977_v16 = vadd.f32 %v4396_v61, %v865_v21  ;;  %v984_v35 = vadd.f32 %v4410_v32, %v872_v12  ;;  %v985_v26 = vadd.f32 %v4410_v32, %v873_v18 }
 0x110   : > { %v722_v20 = vadd.f32 %v658_v38, %v562_v1  ;;  %v1688_v9 = vpack.c.bf16 %v4412_v33, %v1056_v2  ;;  %v714_v49 = vadd.f32 %v650_v58, %v554_v30 }
 0x111   : > { %v4428_v24 = vmax.f32 %v976_v39, 0.0  ;;  %v4430_v29 = vmax.f32 %v977_v16, 0.0  ;;  %v4440_v57 = vmax.f32 %v984_v35, 0.0  ;;  %v4442_v38 = vmax.f32 %v985_v26, 0.0 }
 0x112   : > { %v890_v21 = vadd.f32 %v826_v54, %v722_v20  ;;  %v1920_v1 = vunpack.c.l.b16 %v1688_v9  ;;  %v818_v54 = vmul.f32 %v4155_v15, %v4112_v36 }
 0x113   : > { %v4420_v62 = vpop.permute.xlu1 %953  ;;  %v1680_v16 = vpack.c.bf16 %v4430_v29, %v4428_v24  ;;  %v1684_v35 = vpack.c.bf16 %v4442_v38, %v4440_v57 }
 0x114   : > { %v1000_v8 = vadd.f32 %v4420_v62, %v888_v11  ;;  %v1001_v59 = vadd.f32 %v4420_v62, %v889_v46  ;;  %v1002_v6 = vadd.f32 %v4420_v62, %v890_v21  ;;  %v1921_v46 = vunpack.c.h.b16 %v1688_v9 }
 0x115   : > { %1412 = vrot.lane.b32.xlu0 %v4412_v33, %s3777_s11  ;;  %1224 = vrot.lane.b32.xlu2 %v4422_v10, %s3776_s30  ;;  %v882_v26 = vadd.f32 %v818_v54, %v714_v49  ;;  %v1904_v58 = vunpack.c.l.b16 %v1680_v16  ;;  %v1905_v30 = vunpack.c.h.b16 %v1680_v16  ;;  %v1912_v9 = vunpack.c.l.b16 %v1684_v35 }
 0x116   : > { %1396 = vrot.lane.b32.xlu1 %v1056_v2, %s3777_s11  ;;  %v1064_v12 = vmax.f32 %v1000_v8, 0.0  ;;  %v1065_v18 = vmax.f32 %v1001_v59, 0.0  ;;  %v4451_v8 = vmax.f32 %v1002_v6, 0.0  ;;  %v559_v16 = vmul.f32 %v4184_v47, %v4206_v14 }
 0x117   : > { %v994_v10 = vadd.f32 %v4355_v37, %v882_v26  ;;  %v1968_v6 = vpack.c.b16 %v1912_v9, %v1904_v58  ;;  %v538_v58 = vmul.f32 %v4129_v51, %v4258_v25 }
 0x118   : > { %v1692_v39 = vpack.c.bf16 %v1065_v18, %v1064_v12 }
 0x119   : > { %v4458_v49 = vmax.f32 %v994_v10, 0.0  ;;  %v4472_v10 = vperm.slane %v3888_v3, 5  ;;  %v831_v3 = vmul.f32 %v4198_v50, %v4250_v13 }
 0x11a   : > { %v1928_v11 = vunpack.c.l.b16 %v1692_v39  ;;  %v1929_v20 = vunpack.c.h.b16 %v1692_v39  ;;  %v1913_v39 = vunpack.c.h.b16 %v1684_v35 }
 0x11b   : > { %7580 = vst [vmem:[#allocation43_spill] sm:$0xff] %v4472_v10 }
 0x11c   : > { %v1976_v59 = vpack.c.b16 %v1928_v11, %v1920_v1  ;;  %v1977_v21 = vpack.c.b16 %v1929_v20, %v1921_v46  ;;  %v1969_v23 = vpack.c.b16 %v1913_v39, %v1905_v30  ;;  %v655_v1 = vmul.f32 %v4233_v34, %v3906_v7 }
 0x11d   : > { %1430 = vrot.lane.b32.xlu0 %v4451_v8, %s3777_s11  ;;  %1398 = vrot.lane.b32.xlu2 %v1064_v12, %s3777_s11  ;;  %v567_v20 = vmul.f32 %v4184_v47, %v4175_v60  ;;  %v802_v30 = vmul.f32 %v4155_v15, %v4375_v55 }
 0x11e   : > { %1414 = vrot.lane.b32.xlu1 %v1065_v18, %s3777_s11  ;;  %2299 = vmatpush.bf16.msra.mxu0 %v1976_v59  ;;  %v719_v54 = vadd.f32 %v655_v1, %v559_v16  ;;  %v642_v1 = vmul.f32 %v4295_v19, %v3894_v5  ;;  %v546_v16 = vmul.f32 %v4129_v51, %v4305_v0 }
 0x11f   : > { %2357 = vmatpush.bf16.msra.mxu2 %v1977_v21 }
 0x122   : > { %2300 = vmatpush.bf16.msra.mxu0 %v1968_v6 }
 0x123   : > { %2358 = vmatpush.bf16.msra.mxu2 %v1969_v23  ;;  %v823_v23 = vmul.f32 %v4198_v50, %v4112_v36 }
 0x125   : > { %1428 = vrot.lane.b32.xlu2 %v4458_v49, %s3777_s11  ;;  %1108 = vrot.lane.b32.xlu0 %v1056_v2, %s3776_s30  ;;  %v887_v11 = vadd.f32 %v823_v23, %v719_v54  ;;  %v663_v2 = vmul.f32 %v4204_v27, %v3906_v7  ;;  %v810_v54 = vmul.f32 %v4155_v15, %v4338_v63 }
 0x126   : > { %438 = vrot.lane.b32.xlu1 %v3891_v4, %s3777_s11  ;;  %v639_v15 = vmul.f32 %v4326_v42, %v3906_v7 }
 0x127   : > { %v999_v46 = vadd.f32 %v4355_v37, %v887_v11  ;;  %v727_v26 = vadd.f32 %v663_v2, %v567_v20  ;;  %v706_v11 = vadd.f32 %v642_v1, %v546_v16  ;;  %v647_v16 = vmul.f32 %v4295_v19, %v3906_v7 }
 0x129   : > { %v4487_v59 = vmax.f32 %v999_v46, 0.0  ;;  %v874_v46 = vadd.f32 %v810_v54, %v706_v11 }
 0x12b   : > { %7582 = vst [vmem:[#allocation45_spill] sm:$0xff] %v4487_v59  ;;  %v986_v51 = vadd.f32 %v4410_v32, %v874_v46 }
 0x12d   : > { %440 = vrot.lane.b32.xlu2 %v4472_v10, %s3777_s11  ;;  %1126 = vrot.lane.b32.xlu0 %v1065_v18, %s3776_s30  ;;  %v634_v18 = vmul.f32 %v4326_v42, %v3894_v5 }
 0x12e   : > { %1110 = vrot.lane.b32.xlu1 %v1064_v12, %s3776_s30  ;;  %v895_v12 = vadd.f32 %v831_v3, %v727_v26 }
 0x12f   : > { %v698_v9 = vadd.f32 %v634_v18, %v538_v58  ;;  %v543_v18 = vmul.f32 %v4184_v47, %v4258_v25 }
 0x130   : > { %v1007_v21 = vadd.f32 %v4420_v62, %v895_v12 }
 0x131   : > { %v866_v6 = vadd.f32 %v802_v30, %v698_v9  ;;  %v4545_v30 = vmax.f32 %v986_v51, 0.0  ;;  %v703_v9 = vadd.f32 %v639_v15, %v543_v18  ;;  %v551_v51 = vmul.f32 %v4184_v47, %v4305_v0 }
 0x132   : > { %v4504_v39 = vmax.f32 %v1007_v21, 0.0  ;;  %v815_v15 = vmul.f32 %v4198_v50, %v4338_v63 }
 0x133   : > { %v4485_v35 = vpop.permute.xlu2 %1406  ;;  %v978_v23 = vadd.f32 %v4396_v61, %v866_v6  ;;  %v711_v18 = vadd.f32 %v647_v16, %v551_v51 }
 0x134   : > { %7581 = vst [vmem:[#allocation44_spill] sm:$0xff] %v4485_v35 }
 0x135   : > { %1124 = vrot.lane.b32.xlu2 %v4412_v33, %s3776_s30  ;;  %1392 = vrot.lane.b32.xlu0 %v4428_v24, %s3777_s11  ;;  %7584 = vst [vmem:[#allocation47_spill] sm:$0xff] %v4504_v39  ;;  %v4521_v3 = vmax.f32 %v978_v23, 0.0 }
 0x136   : > { %1220 = vrot.lane.b32.xlu1 %v4487_v59, %s3776_s30  ;;  %v1421_v2 = vpop.permute.xlu0 %1420  ;;  %v4519_v20 = vpop.permute.xlu1 %1404 }
 0x137   : > { %7585 = vst [vmem:[#allocation48_spill] sm:$0xff] %v4519_v20  ;;  %v1574_v12 = vsel %vm446_vm1, %v4519_v20, %v1421_v2 }
 0x138   : > { %v1632_v6 = vmul.f32 %v1574_v12, %v4059_v53 }
 0x13b   : > { %v4502_v33 = vpop.permute.xlu2 %1436 }
 0x13c   : > { %7583 = vst [vmem:[#allocation46_spill] sm:$0xff] %v4502_v33  ;;  %v1566_v5 = vsel %vm446_vm1, %v1421_v2, %v4502_v33 }
 0x13d   : > { %1222 = vrot.lane.b32.xlu2 %v4504_v39, %s3776_s30  ;;  %1410 = vrot.lane.b32.xlu0 %v4442_v38, %s3777_s11  ;;  %v1633_v21 = vmul.f32 %v1566_v5, %v4056_v52 }
 0x13e   : > { %1394 = vrot.lane.b32.xlu1 %v4440_v57, %s3777_s11 }
 0x13f   : > { %v1672_v7 = vpack.c.bf16 %v1633_v21, %v1632_v6 }
 0x143   : > { %v1119_v26 = vpop.permute.xlu2 %1118 }
 0x145   : > { %1408 = vrot.lane.b32.xlu2 %v4430_v29, %s3777_s11  ;;  %1104 = vrot.lane.b32.xlu0 %v4428_v24, %s3776_s30  ;;  %v807_v24 = vmul.f32 %v4198_v50, %v4375_v55 }
 0x146   : > { %1424 = vrot.lane.b32.xlu1 %v4521_v3, %s3777_s11 }
 0x147   : > { %v871_v11 = vadd.f32 %v807_v24, %v703_v9  ;;  %v2112_v24 = vunpack.c.l.b16 %v1672_v7 }
 0x14b   : > { %v4543_v58 = vpop.permute.xlu0 %1438  ;;  %v4564_v5 = vpop.permute.xlu2 %1228 }
 0x14c   : > { %7586 = vst [vmem:[#allocation49_spill] sm:$0xff] %v4543_v58  ;;  %v1423_v1 = vpop.permute.xlu1 %1422 }
 0x14d   : > { %v1567_v54 = vsel %vm446_vm1, %v1423_v1, %v4543_v58  ;;  %v1575_v23 = vsel %vm446_vm1, %v4485_v35, %v1423_v1  ;;  %1426 = vrot.lane.b32.xlu2 %v4545_v30, %s3777_s11  ;;  %1122 = vrot.lane.b32.xlu0 %v4442_v38, %s3776_s30  ;;  %7587 = vst [vmem:[#allocation50_spill] sm:$0xff] %v4564_v5  ;;  %v2113_v1 = vunpack.c.h.b16 %v1672_v7 }
 0x14e   : > { %v1640_v2 = vmul.f32 %v1575_v23, %v4059_v53  ;;  %v1641_v46 = vmul.f32 %v1567_v54, %v4056_v52  ;;  %1106 = vrot.lane.b32.xlu1 %v4440_v57, %s3776_s30  ;;  %v983_v38 = vadd.f32 %v4396_v61, %v871_v11  ;;  %v879_v57 = vadd.f32 %v815_v15, %v711_v18 }
 0x150   : > { %v1676_v12 = vpack.c.bf16 %v1641_v46, %v1640_v2  ;;  %v4575_v47 = vmax.f32 %v983_v38, 0.0  ;;  %v991_v2 = vadd.f32 %v4410_v32, %v879_v57 }
 0x152   : > { %v2120_v9 = vunpack.c.l.b16 %v1676_v12  ;;  %v2121_v54 = vunpack.c.h.b16 %v1676_v12  ;;  %7589 = vst [vmem:[#allocation52_spill] sm:$0xff] %v4575_v47  ;;  %v4592_v7 = vmax.f32 %v991_v2, 0.0 }
 0x153   : > { %v4571_v23 = vpop.permute.xlu0 %1132 }
 0x154   : > { %7588 = vst [vmem:[#allocation51_spill] sm:$0xff] %v4571_v23  ;;  %v1117_v21 = vpop.permute.xlu1 %1116  ;;  %v2152_v6 = vpack.c.b16 %v2120_v9, %v2112_v24  ;;  %v2153_v35 = vpack.c.b16 %v2121_v54, %v2113_v1 }
 0x155   : > { %1120 = vrot.lane.b32.xlu2 %v4430_v29, %s3776_s30  ;;  %v1286_v50 = vsel %vm396_vm0, %v1117_v21, %v4571_v23  ;;  %v1294_v16 = vsel %vm396_vm0, %v4564_v5, %v1117_v21  ;;  %7592 = vst [vmem:[#allocation55_spill] sm:$0xff] %v4592_v7 }
 0x156   : > { %2330 = vmatpush.bf16.msra.mxu1 %v2152_v6  ;;  %2388 = vmatpush.bf16.msra.mxu3 %v2153_v35  ;;  %v1344_v29 = vmul.f32 %v1294_v16, %v4035_v44  ;;  %v1345_v46 = vmul.f32 %v1286_v50, %v4038_v45 }
 0x157   : > { %1216 = vrot.lane.b32.xlu1 %v4575_v47, %s3776_s30  ;;  %v4585_v11 = vpop.permute.xlu2 %1402 }
 0x158   : > { %7590 = vst [vmem:[#allocation53_spill] sm:$0xff] %v4585_v11  ;;  %v1384_v24 = vpack.c.bf16 %v1345_v46, %v1344_v29 }
 0x15a   : > { %v1792_v54 = vunpack.c.l.b16 %v1384_v24  ;;  %v1793_v21 = vunpack.c.h.b16 %v1384_v24 }
 0x15b   : > { %v4590_v35 = vpop.permute.xlu0 %1230 }
 0x15c   : > { %7591 = vst [vmem:[#allocation54_spill] sm:$0xff] %v4590_v35  ;;  %v1295_v51 = vsel %vm396_vm0, %v4590_v35, %v1119_v26  ;;  %v4597_v15 = vpop.permute.xlu1 %1134 }
 0x15d   : > { %7593 = vst [vmem:[#allocation56_spill] sm:$0xff] %v4597_v15  ;;  %v1352_v12 = vmul.f32 %v1295_v51, %v4035_v44  ;;  %v1287_v38 = vsel %vm396_vm0, %v1119_v26, %v4597_v15  ;;  %1218 = vrot.lane.b32.xlu2 %v4592_v7, %s3776_s30 }
 0x15e   : > { %v1353_v18 = vmul.f32 %v1287_v38, %v4038_v45 }
 0x15f   : > { %v4606_v9 = vpop.permute.xlu2 %1432 }
 0x160   : > { %7594 = vst [vmem:[#allocation57_spill] sm:$0xff] %v4606_v9  ;;  %v1388_v1 = vpack.c.bf16 %v1353_v18, %v1352_v12 }
 0x162   : > { %v1800_v57 = vunpack.c.l.b16 %v1388_v1  ;;  %v1801_v6 = vunpack.c.h.b16 %v1388_v1 }
 0x163   : > { %v1417_v2 = vpop.permute.xlu0 %1416 }
 0x164   : > { %v1832_v50 = vpack.c.b16 %v1800_v57, %v1792_v54  ;;  %v1833_v16 = vpack.c.b16 %v1801_v6, %v1793_v21  ;;  %v4608_v26 = vpop.permute.xlu1 %1400  ;;  %v1564_v38 = vsel %vm446_vm1, %v1417_v2, %v4606_v9 }
 0x165   : > { %7595 = vst [vmem:[#allocation58_spill] sm:$0xff] %v4608_v26  ;;  %v1572_v29 = vsel %vm446_vm1, %v4608_v26, %v1417_v2  ;;  %v1617_v46 = vmul.f32 %v1564_v38, %v4056_v52 }
 0x166   : > { %2301 = vmatpush.bf16.msra.mxu0 %v1832_v50  ;;  %2359 = vmatpush.bf16.msra.mxu2 %v1833_v16  ;;  %v1616_v12 = vmul.f32 %v1572_v29, %v4059_v53 }
 0x167   : > { %v1115_v51 = vpop.permute.xlu2 %1114 }
 0x168   : > { %v1664_v50 = vpack.c.bf16 %v1617_v46, %v1616_v12 }
 0x16a   : > { %v2096_v2 = vunpack.c.l.b16 %v1664_v50  ;;  %v2097_v29 = vunpack.c.h.b16 %v1664_v50 }
 0x16f   : > { %v4618_v18 = vpop.permute.xlu0 %1434  ;;  %v4620_v24 = vpop.permute.xlu2 %1224 }
 0x170   : > { %7596 = vst [vmem:[#allocation59_spill] sm:$0xff] %v4618_v18  ;;  %v1419_v1 = vpop.permute.xlu1 %1418 }
 0x171   : > { %7597 = vst [vmem:[#allocation60_spill] sm:$0xff] %v4620_v24  ;;  %v1565_v54 = vsel %vm446_vm1, %v1419_v1, %v4618_v18  ;;  %v1573_v57 = vsel %vm446_vm1, %v4585_v11, %v1419_v1 }
 0x172   : > { %v1624_v21 = vmul.f32 %v1573_v57, %v4059_v53  ;;  %v1625_v6 = vmul.f32 %v1565_v54, %v4056_v52 }
 0x174   : > { %v1668_v16 = vpack.c.bf16 %v1625_v6, %v1624_v21 }
 0x176   : > { %v2104_v38 = vunpack.c.l.b16 %v1668_v16  ;;  %v2105_v26 = vunpack.c.h.b16 %v1668_v16 }
 0x177   : > { %v4630_v35 = vpop.permute.xlu0 %1128  ;;  %v4632_v5 = vpop.permute.xlu2 %1398 }
 0x178   : > { %7598 = vst [vmem:[#allocation61_spill] sm:$0xff] %v4630_v35  ;;  %v1113_v20 = vpop.permute.xlu1 %1112  ;;  %v2144_v7 = vpack.c.b16 %v2104_v38, %v2096_v2  ;;  %v2145_v47 = vpack.c.b16 %v2105_v26, %v2097_v29 }
 0x179   : > { %7599 = vst [vmem:[#allocation62_spill] sm:$0xff] %v4632_v5  ;;  %v1284_v1 = vsel %vm396_vm0, %v1113_v20, %v4630_v35  ;;  %v1292_v46 = vsel %vm396_vm0, %v4620_v24, %v1113_v20 }
 0x17a   : > { %2331 = vmatpush.bf16.msra.mxu1 %v2144_v7  ;;  %2389 = vmatpush.bf16.msra.mxu3 %v2145_v47  ;;  %v1328_v12 = vmul.f32 %v1292_v46, %v4035_v44  ;;  %v1329_v54 = vmul.f32 %v1284_v1, %v4038_v45 }
 0x17c   : > { %v1376_v50 = vpack.c.bf16 %v1329_v54, %v1328_v12 }
 0x17e   : > { %v1776_v2 = vunpack.c.l.b16 %v1376_v50  ;;  %v1777_v29 = vunpack.c.h.b16 %v1376_v50 }
 0x17f   : > { %v4642_v57 = vpop.permute.xlu0 %1226  ;;  %v4644_v21 = vpop.permute.xlu2 %1428 }
 0x180   : > { %7600 = vst [vmem:[#allocation63_spill] sm:$0xff] %v4642_v57  ;;  %v1293_v47 = vsel %vm396_vm0, %v4642_v57, %v1115_v51  ;;  %v4649_v7 = vpop.permute.xlu1 %1130 }
 0x181   : > { %7601 = vst [vmem:[#allocation64_spill] sm:$0xff] %v4644_v21  ;;  %v1336_v26 = vmul.f32 %v1293_v47, %v4035_v44  ;;  %v1285_v20 = vsel %vm396_vm0, %v1115_v51, %v4649_v7 }
 0x182   : > { %7602 = vst [vmem:[#allocation65_spill] sm:$0xff] %v4649_v7  ;;  %v1337_v6 = vmul.f32 %v1285_v20, %v4038_v45  ;;  %v4672_v20 = vperm.slane %v4027_v41, 4 }
 0x184   : > { %v1380_v16 = vpack.c.bf16 %v1337_v6, %v1336_v26  ;;  %v4669_v26 = vperm.slane %v4027_v41, 3  ;;  %7606 = vst [vmem:[#allocation69_spill] sm:$0xff] %v4672_v20  ;;  %v401_v6 = vsel %vm396_vm0, %v4000_v28, %v4006_v31 }
 0x186   : > { %v1784_v38 = vunpack.c.l.b16 %v1380_v16  ;;  %v1785_v1 = vunpack.c.h.b16 %v1380_v16  ;;  %7605 = vst [vmem:[#allocation68_spill] sm:$0xff] %v4669_v26 }
 0x187   : > { %v1413_v46 = vpop.permute.xlu0 %1412  ;;  %v4656_v24 = vpop.permute.xlu2 %440 }
 0x188   : > { %7603 = vst [vmem:[#allocation66_spill] sm:$0xff] %v4656_v24  ;;  %v4658_v57 = vpop.permute.xlu1 %1396  ;;  %v1824_v11 = vpack.c.b16 %v1784_v38, %v1776_v2  ;;  %v1825_v39 = vpack.c.b16 %v1785_v1, %v1777_v29  ;;  %v1562_v51 = vsel %vm446_vm1, %v1413_v46, %v4644_v21 }
 0x189   : > { %7604 = vst [vmem:[#allocation67_spill] sm:$0xff] %v4658_v57  ;;  %v1570_v12 = vsel %vm446_vm1, %v4658_v57, %v1413_v46  ;;  %v1601_v54 = vmul.f32 %v1562_v51, %v4056_v52  ;;  %v425_v46 = vmul.f32 %v4669_v26, %v401_v6  ;;  %v4697_v51 = vperm.slane %v4048_v48, 3 }
 0x18a   : > { %2302 = vmatpush.bf16.msra.mxu0 %v1824_v11  ;;  %2360 = vmatpush.bf16.msra.mxu2 %v1825_v39  ;;  %v1600_v47 = vmul.f32 %v1570_v12, %v4059_v53  ;;  %v400_v39 = vsel %vm396_vm0, %v4006_v31, %v3980_v22  ;;  %v4700_v12 = vperm.slane %v4048_v48, 4 }
 0x18b   : > { %v426_v28 = vmul.f32 %v4672_v20, %v400_v39  ;;  %7609 = vst [vmem:[#allocation72_spill] sm:$0xff] %v4697_v51 }
 0x18c   : > { %v1656_v1 = vpack.c.bf16 %v1601_v54, %v1600_v47  ;;  %7610 = vst [vmem:[#allocation73_spill] sm:$0xff] %v4700_v12 }
 0x18e   : > { %v2080_v57 = vunpack.c.l.b16 %v1656_v1  ;;  %v2081_v21 = vunpack.c.h.b16 %v1656_v1 }
 0x18f   : > { %v4674_v11 = vpop.permute.xlu0 %1430  ;;  %v4684_v16 = vpop.permute.xlu2 %1124 }
 0x190   : > { %7607 = vst [vmem:[#allocation70_spill] sm:$0xff] %v4674_v11  ;;  %v1415_v50 = vpop.permute.xlu1 %1414 }
 0x191   : > { %7608 = vst [vmem:[#allocation71_spill] sm:$0xff] %v4684_v16  ;;  %v1563_v41 = vsel %vm446_vm1, %v1415_v50, %v4674_v11  ;;  %v1571_v2 = vsel %vm446_vm1, %v4632_v5, %v1415_v50  ;;  %v4702_v5 = vperm.slane %v425_v46, 0  ;;  %v7618_v11 = vld [vmem:[#allocation14_spill] sm:$0xff] }
 0x192   : > { %v1608_v38 = vmul.f32 %v1571_v2, %v4059_v53  ;;  %v1609_v29 = vmul.f32 %v1563_v41, %v4056_v52  ;;  %v4704_v2 = vperm.slane %v426_v28, 0 }
 0x194   : > { %v1660_v31 = vpack.c.bf16 %v1609_v29, %v1608_v38  ;;  %7611 = vst [vmem:[#allocation74_spill] sm:$0xff] %v4704_v2  ;;  %v684_v38 = vmul.f32 %v4067_v56, %v3891_v4  ;;  %v7612_v29 = vld [vmem:[#allocation5_spill] sm:$0xff] }
 0x195   : > { %v683_v1 = vmul.f32 %v4067_v56, %v7612_v29 }
 0x196   : > { %v2088_v59 = vunpack.c.l.b16 %v1660_v31  ;;  %v2089_v50 = vunpack.c.h.b16 %v1660_v31  ;;  %v7615_v31 = vld [vmem:[#allocation8_spill] sm:$0xff] }
 0x197   : > { %v1109_v54 = vpop.permute.xlu0 %1108 }
 0x198   : > { %v439_v47 = vpop.permute.xlu1 %438  ;;  %v2136_v6 = vpack.c.b16 %v2088_v59, %v2080_v57  ;;  %v2137_v41 = vpack.c.b16 %v2089_v50, %v2081_v21  ;;  %v7613_v59 = vld [vmem:[#allocation23_spill] sm:$0xff]  ;;  %v4720_v21 = vpop.permute.xlu2 %1222  ;;  %v587_v50 = vmul.f32 %v4702_v5, %v7615_v31 }
 0x199   : > { %v449_v39 = vsel %vm446_vm1, %v439_v47, %v4656_v24  ;;  %v450_v48 = vsel %vm446_vm1, %v4032_v43, %v439_v47  ;;  %v595_v57 = vmul.f32 %v4702_v5, %v7613_v59  ;;  %7614 = vst [vmem:[#allocation5_spill] sm:$0xff] %v4720_v21  ;;  %v588_v43 = vmul.f32 %v4704_v2, %v7615_v31 }
 0x19a   : > { %v475_v46 = vmul.f32 %v4697_v51, %v450_v48  ;;  %v476_v28 = vmul.f32 %v4700_v12, %v449_v39  ;;  %2332 = vmatpush.bf16.msra.mxu1 %v2136_v6  ;;  %2390 = vmatpush.bf16.msra.mxu3 %v2137_v41  ;;  %v7616_v48 = vld [vmem:[#allocation9_spill] sm:$0xff]  ;;  %v747_v41 = vadd.f32 %v683_v1, %v587_v50  ;;  %v7617_v12 = vld [vmem:[#allocation10_spill] sm:$0xff] }
 0x19b   : > { %v691_v39 = vmul.f32 %v7616_v48, %v7612_v29  ;;  %v748_v6 = vadd.f32 %v684_v38, %v588_v43  ;;  %v692_v1 = vmul.f32 %v7616_v48, %v3891_v4  ;;  %v7620_v43 = vld [vmem:[#allocation18_spill] sm:$0xff] }
 0x19c   : > { %v4726_v47 = vperm.slane %v475_v46, 0  ;;  %v4728_v20 = vperm.slane %v476_v28, 0  ;;  %v596_v46 = vmul.f32 %v4704_v2, %v7613_v59 }
 0x19d   : > { %v755_v24 = vadd.f32 %v691_v39, %v595_v57  ;;  %v7621_v39 = vld [vmem:[#allocation27_spill] sm:$0xff] }
 0x19e   : > { %v852_v56 = vmul.f32 %v4728_v20, %v7617_v12  ;;  %v859_v22 = vmul.f32 %v4726_v47, %v7618_v11  ;;  %v851_v7 = vmul.f32 %v4726_v47, %v7617_v12  ;;  %v860_v57 = vmul.f32 %v4728_v20, %v7618_v11  ;;  %v7623_v11 = vld [vmem:[#allocation22_spill] sm:$0xff] }
 0x19f   : > { %v4738_v31 = vpop.permute.xlu0 %1126  ;;  %v667_v48 = vmul.f32 %v7623_v11, %v7612_v29 }
 0x1a0   : > { %7619 = vst [vmem:[#allocation75_spill] sm:$0xff] %v4738_v31  ;;  %v1111_v28 = vpop.permute.xlu1 %1110  ;;  %v916_v35 = vadd.f32 %v852_v56, %v748_v6  ;;  %v923_v18 = vadd.f32 %v859_v22, %v755_v24  ;;  %v915_v38 = vadd.f32 %v851_v7, %v747_v41  ;;  %v756_v24 = vadd.f32 %v692_v1, %v596_v46  ;;  %v4759_v41 = vpop.permute.xlu2 %1408  ;;  %v7626_v1 = vld [vmem:[#allocation17_spill] sm:$0xff] }
 0x1a1   : > { %v1283_v12 = vsel %vm396_vm0, %v1111_v28, %v4738_v31  ;;  %v1291_v56 = vsel %vm396_vm0, %v4720_v21, %v1111_v28  ;;  %v7625_v28 = vld [vmem:[#allocation19_spill] sm:$0xff] }
 0x1a2   : > { %v1028_v50 = vadd.f32 %v7620_v43, %v916_v35  ;;  %v1035_v9 = vadd.f32 %v7621_v39, %v923_v18  ;;  %v1027_v22 = vadd.f32 %v7620_v43, %v915_v38  ;;  %v924_v18 = vadd.f32 %v860_v57, %v756_v24  ;;  %v7627_v57 = vld [vmem:[#allocation15_spill] sm:$0xff] }
 0x1a3   : > { %v1320_v31 = vmul.f32 %v1291_v56, %v4035_v44  ;;  %v1321_v59 = vmul.f32 %v1283_v12, %v4038_v45  ;;  %v571_v38 = vmul.f32 %v4702_v5, %v7625_v28  ;;  %v835_v12 = vmul.f32 %v4726_v47, %v7626_v1 }
 0x1a4   : > { %v4755_v7 = vmax.f32 %v1028_v50, 0.0  ;;  %v4757_v6 = vmax.f32 %v1035_v9, 0.0  ;;  %v4761_v35 = vmax.f32 %v1027_v22, 0.0  ;;  %v1282_v9 = vsel %vm396_vm0, %v1109_v54, %v4684_v16 }
 0x1a5   : > { %v675_v50 = vmul.f32 %v7627_v57, %v7612_v29  ;;  %v1036_v24 = vadd.f32 %v7621_v39, %v924_v18  ;;  %v731_v21 = vadd.f32 %v667_v48, %v571_v38  ;;  %v1313_v16 = vmul.f32 %v1282_v9, %v4038_v45  ;;  %v7630_v18 = vld [vmem:[#allocation28_spill] sm:$0xff] }
 0x1a6   : > { %7622 = vst [vmem:[#allocation76_spill] sm:$0xff] %v4755_v7  ;;  %1468 = vrot.lane.b32.xlu2 %v4755_v7, %s3777_s11  ;;  %1454 = vrot.lane.b32.xlu1 %v4757_v6, %s3777_s11  ;;  %v7629_v7 = vld [vmem:[#allocation12_spill] sm:$0xff]  ;;  %v1372_v26 = vpack.c.bf16 %v1321_v59, %v1320_v31  ;;  %v676_v51 = vmul.f32 %v7627_v57, %v3891_v4 }
 0x1a7   : > { %1452 = vrot.lane.b32.xlu0 %v4761_v35, %s3777_s11  ;;  %v4776_v46 = vpop.permute.xlu0 %1392  ;;  %v579_v43 = vmul.f32 %v4702_v5, %v7629_v7  ;;  %v899_v15 = vadd.f32 %v835_v12, %v731_v21  ;;  %v580_v58 = vmul.f32 %v4704_v2, %v7629_v7  ;;  %v572_v48 = vmul.f32 %v4704_v2, %v7625_v28 }
 0x1a8   : > { %7624 = vst [vmem:[#allocation77_spill] sm:$0xff] %v4776_v46  ;;  %v4784_v56 = vpop.permute.xlu1 %1220  ;;  %v843_v38 = vmul.f32 %v4726_v47, %v7630_v18  ;;  %v563_v59 = vmul.f32 %v4702_v5, %v4175_v60  ;;  %v4804_v31 = vmax.f32 %v1036_v24, 0.0  ;;  %v668_v21 = vmul.f32 %v7623_v11, %v3891_v4 }
 0x1a9   : > { %7628 = vst [vmem:[#allocation78_spill] sm:$0xff] %v4784_v56  ;;  %v1290_v22 = vsel %vm396_vm0, %v4784_v56, %v1109_v54  ;;  %v739_v33 = vadd.f32 %v675_v50, %v579_v43  ;;  %v651_v9 = vmul.f32 %v4233_v34, %v7612_v29  ;;  %v7633_v43 = vld [vmem:[#allocation32_spill] sm:$0xff]  ;;  %v1768_v50 = vunpack.c.l.b16 %v1372_v26  ;;  %v4816_v56 = vpop.permute.xlu2 %1426 }
 0x1aa   : > { %v1312_v23 = vmul.f32 %v1290_v22, %v4035_v44  ;;  %7631 = vst [vmem:[#allocation79_spill] sm:$0xff] %v4804_v31  ;;  %v1769_v24 = vunpack.c.h.b16 %v1372_v26  ;;  %v1011_v28 = vadd.f32 %v4235_v17, %v899_v15  ;;  %v844_v39 = vmul.f32 %v4728_v20, %v7630_v18 }
 0x1ab   : > { %v836_v11 = vmul.f32 %v4728_v20, %v7626_v1  ;;  %v555_v57 = vmul.f32 %v4702_v5, %v4206_v14  ;;  %v907_v2 = vadd.f32 %v843_v38, %v739_v33  ;;  %v740_v60 = vadd.f32 %v676_v51, %v580_v58 }
 0x1ac   : > { %v1368_v54 = vpack.c.bf16 %v1313_v16, %v1312_v23  ;;  %v659_v23 = vmul.f32 %v4204_v27, %v7612_v29  ;;  %v7632_v16 = vld [vmem:[#allocation29_spill] sm:$0xff]  ;;  %v732_v34 = vadd.f32 %v668_v21, %v572_v48  ;;  %v827_v18 = vmul.f32 %v4726_v47, %v4250_v13 }
 0x1ad   : > { %v715_v1 = vadd.f32 %v651_v9, %v555_v57  ;;  %v635_v14 = vmul.f32 %v4326_v42, %v7612_v29  ;;  %v908_v51 = vadd.f32 %v844_v39, %v740_v60  ;;  %v4843_v38 = vmax.f32 %v1011_v28, 0.0 }
 0x1ae   : > { %1150 = vrot.lane.b32.xlu2 %v7632_v16, %s3776_s30  ;;  %1148 = vrot.lane.b32.xlu1 %v7633_v43, %s3776_s30  ;;  %v1760_v12 = vunpack.c.l.b16 %v1368_v54  ;;  %v1761_v22 = vunpack.c.h.b16 %v1368_v54  ;;  %v723_v15 = vadd.f32 %v659_v23, %v563_v59  ;;  %v900_v48 = vadd.f32 %v836_v11, %v732_v34  ;;  %v7635_v59 = vld [vmem:[#allocation38_spill] sm:$0xff] }
 0x1af   : > { %1470 = vrot.lane.b32.xlu0 %v4804_v31, %s3777_s11  ;;  %v1411_v7 = vpop.permute.xlu0 %1410  ;;  %v819_v31 = vmul.f32 %v4726_v47, %v4112_v36  ;;  %v1019_v57 = vadd.f32 %v7635_v59, %v907_v2  ;;  %v547_v9 = vmul.f32 %v4702_v5, %v4305_v0 }
 0x1b0   : > { %v4827_v10 = vpop.permute.xlu1 %1394  ;;  %v1816_v26 = vpack.c.b16 %v1768_v50, %v1760_v12  ;;  %v1817_v54 = vpack.c.b16 %v1769_v24, %v1761_v22  ;;  %v643_v12 = vmul.f32 %v4295_v19, %v7612_v29  ;;  %v1561_v33 = vsel %vm446_vm1, %v1411_v7, %v4816_v56 }
 0x1b1   : > { %7634 = vst [vmem:[#allocation29_spill] sm:$0xff] %v4827_v10  ;;  %v1569_v58 = vsel %vm446_vm1, %v4827_v10, %v1411_v7  ;;  %v883_v21 = vadd.f32 %v819_v31, %v715_v1  ;;  %v891_v23 = vadd.f32 %v827_v18, %v723_v15  ;;  %v539_v29 = vmul.f32 %v4702_v5, %v4258_v25 }
 0x1b2   : > { %2303 = vmatpush.bf16.msra.mxu0 %v1816_v26  ;;  %2361 = vmatpush.bf16.msra.mxu2 %v1817_v54  ;;  %v803_v50 = vmul.f32 %v4726_v47, %v4375_v55  ;;  %v811_v7 = vmul.f32 %v4726_v47, %v4338_v63  ;;  %v1592_v60 = vmul.f32 %v1569_v58, %v4059_v53  ;;  %v4872_v18 = vmax.f32 %v1019_v57, 0.0  ;;  %v4883_v26 = vpop.permute.xlu2 %1120  ;;  %v7639_v58 = vld [vmem:[#allocation40_spill] sm:$0xff] }
 0x1b3   : > { %v1593_v34 = vmul.f32 %v1561_v33, %v4056_v52  ;;  %v707_v11 = vadd.f32 %v643_v12, %v547_v9  ;;  %v1568_v5 = vsel %vm446_vm1, %v4776_v46, %v4759_v41  ;;  %v1020_v47 = vadd.f32 %v7635_v59, %v908_v51  ;;  %7636 = vst [vmem:[#allocation32_spill] sm:$0xff] %v4883_v26 }
 0x1b4   : > { %v1012_v39 = vadd.f32 %v4235_v17, %v900_v48  ;;  %v699_v28 = vadd.f32 %v635_v14, %v539_v29  ;;  %v4876_v31 = vpack.c.bf16 %v4761_v35, %v7633_v43  ;;  %v4880_v22 = vpack.c.bf16 %v4757_v6, %v7632_v16 }
 0x1b5   : > { %v995_v24 = vadd.f32 %v4355_v37, %v883_v21  ;;  %v1003_v54 = vadd.f32 %v4420_v62, %v891_v23  ;;  %v875_v12 = vadd.f32 %v811_v7, %v707_v11  ;;  %v1652_v43 = vpack.c.bf16 %v1593_v34, %v1592_v60  ;;  %v7640_v21 = vld [vmem:[#allocation39_spill] sm:$0xff] }
 0x1b6   : > { %1448 = vrot.lane.b32.xlu2 %v4843_v38, %s3777_s11  ;;  %1166 = vrot.lane.b32.xlu1 %v4757_v6, %s3776_s30  ;;  %v867_v15 = vadd.f32 %v803_v50, %v699_v28  ;;  %v4892_v6 = vmax.f32 %v1020_v47, 0.0  ;;  %v4894_v16 = vmax.f32 %v1012_v39, 0.0  ;;  %v4898_v51 = vpack.c.bf16 %v4843_v38, %v7639_v58 }
 0x1b7   : > { %1164 = vrot.lane.b32.xlu0 %v4761_v35, %s3776_s30  ;;  %v4866_v2 = vpop.permute.xlu0 %1104  ;;  %v1584_v35 = vmul.f32 %v1568_v5, %v4059_v53  ;;  %v1962_v57 = vunpack.c.l.b16 %v4880_v22  ;;  %v4904_v9 = vpack.c.bf16 %v4872_v18, %v7640_v21  ;;  %v4906_v53 = vmax.f32 %v995_v24, 0.0 }
 0x1b8   : > { %v4870_v1 = vpop.permute.xlu1 %1424  ;;  %7637 = vst [vmem:[#allocation80_spill] sm:$0xff] %v4892_v6  ;;  %v979_v23 = vadd.f32 %v4396_v61, %v867_v15  ;;  %v987_v29 = vadd.f32 %v4410_v32, %v875_v12  ;;  %v2072_v7 = vunpack.c.l.b16 %v1652_v43  ;;  %v2073_v34 = vunpack.c.h.b16 %v1652_v43 }
 0x1b9   : > { %v1560_v14 = vsel %vm446_vm1, %v4759_v41, %v4870_v1  ;;  %7638 = vst [vmem:[#allocation81_spill] sm:$0xff] %v4894_v16  ;;  %v1954_v41 = vunpack.c.l.b16 %v4876_v31  ;;  %v1938_v11 = vunpack.c.l.b16 %v4898_v51  ;;  %v1946_v24 = vunpack.c.l.b16 %v4904_v9 }
 0x1ba   : > { %v1585_v33 = vmul.f32 %v1560_v14, %v4056_v52  ;;  %v4908_v52 = vmax.f32 %v1003_v54, 0.0  ;;  %v4924_v54 = vpack.c.bf16 %v4906_v53, %v4458_v49  ;;  %v4930_v12 = vmax.f32 %v979_v23, 0.0  ;;  %v4934_v43 = vpop.permute.xlu2 %1218 }
 0x1bb   : > { %v1994_v28 = vpack.c.b16 %v1962_v57, %v1954_v41  ;;  %7642 = vst [vmem:[#allocation39_spill] sm:$0xff] %v4934_v43  ;;  %v1986_v41 = vpack.c.b16 %v1946_v24, %v1938_v11  ;;  %v7643_v11 = vld [vmem:[#allocation33_spill] sm:$0xff]  ;;  %v7646_v24 = vld [vmem:[#allocation31_spill] sm:$0xff]  ;;  %v820_v10 = vmul.f32 %v4728_v20, %v4112_v36 }
 0x1bc   : > { %v1648_v48 = vpack.c.bf16 %v1585_v33, %v1584_v35  ;;  %v4928_v15 = vpack.c.bf16 %v4908_v52, %v4451_v8  ;;  %v4932_v35 = vmax.f32 %v987_v29, 0.0  ;;  %v1922_v57 = vunpack.c.l.b16 %v4924_v54 }
 0x1bd   : > { %v4946_v29 = vpack.c.bf16 %v4930_v12, %v4521_v3 }
 0x1be   : > { %1466 = vrot.lane.b32.xlu2 %v4892_v6, %s3777_s11  ;;  %1464 = vrot.lane.b32.xlu1 %v4894_v16, %s3777_s11  ;;  %v2064_v50 = vunpack.c.l.b16 %v1648_v48  ;;  %v2065_v60 = vunpack.c.h.b16 %v1648_v48  ;;  %v1930_v23 = vunpack.c.l.b16 %v4928_v15 }
 0x1bf   : > { %1450 = vrot.lane.b32.xlu0 %v4872_v18, %s3777_s11  ;;  %v4920_v14 = vpop.permute.xlu0 %1122 }
 0x1c0   : > { %v1107_v5 = vpop.permute.xlu1 %1106  ;;  %v2128_v47 = vpack.c.b16 %v2072_v7, %v2064_v50  ;;  %v2129_v39 = vpack.c.b16 %v2073_v34, %v2065_v60  ;;  %7641 = vst [vmem:[#allocation40_spill] sm:$0xff] %v4920_v14  ;;  %v4950_v50 = vpack.c.bf16 %v4932_v35, %v4545_v30  ;;  %v660_v7 = vmul.f32 %v4204_v27, %v3891_v4 }
 0x1c1   : > { %v1289_v33 = vsel %vm396_vm0, %v4934_v43, %v1107_v5  ;;  %v1281_v48 = vsel %vm396_vm0, %v1107_v5, %v4920_v14  ;;  %v652_v5 = vmul.f32 %v7643_v11, %v3891_v4 }
 0x1c2   : > { %2333 = vmatpush.bf16.msra.mxu1 %v2128_v47  ;;  %2391 = vmatpush.bf16.msra.mxu3 %v2129_v39  ;;  %v1304_v60 = vmul.f32 %v1289_v33, %v4035_v44  ;;  %v1305_v34 = vmul.f32 %v1281_v48, %v4038_v45  ;;  %v7645_v47 = vld [vmem:[#allocation74_spill] sm:$0xff]  ;;  %v1914_v43 = vunpack.c.l.b16 %v4950_v50 }
 0x1c3   : > { %v556_v33 = vmul.f32 %v7645_v47, %v7646_v24 }
 0x1c4   : > { %v1364_v14 = vpack.c.bf16 %v1305_v34, %v1304_v60  ;;  %v1939_v34 = vunpack.c.h.b16 %v4898_v51  ;;  %v1931_v51 = vunpack.c.h.b16 %v4928_v15  ;;  %v636_v15 = vmul.f32 %v4326_v42, %v3891_v4 }
 0x1c6   : > { %2413 = vmatpush.bf16.msrb.mxu1 %v1994_v28  ;;  %1160 = vrot.lane.b32.xlu2 %v4843_v38, %s3776_s30  ;;  %v1280_v38 = vsel %vm396_vm0, %v4866_v2, %v4883_v26  ;;  %v828_v28 = vmul.f32 %v4728_v20, %v4250_v13 }
 0x1c7   : > { %1146 = vrot.lane.b32.xlu1 %v7640_v21, %s3776_s30  ;;  %1144 = vrot.lane.b32.xlu0 %v7639_v58, %s3776_s30  ;;  %v7644_v21 = vld [vmem:[#allocation26_spill] sm:$0xff]  ;;  %v1978_v58 = vpack.c.b16 %v1930_v23, %v1922_v57  ;;  %v1297_v16 = vmul.f32 %v1280_v38, %v4038_v45  ;;  %v716_v57 = vadd.f32 %v652_v5, %v556_v33  ;;  %v1752_v45 = vunpack.c.l.b16 %v1364_v14 }
 0x1c8   : > { %v564_v39 = vmul.f32 %v7645_v47, %v7644_v21  ;;  %v1915_v5 = vunpack.c.h.b16 %v4950_v50  ;;  %v804_v50 = vmul.f32 %v4728_v20, %v4375_v55 }
 0x1c9   : > { %v4974_v48 = vpop.permute.xlu1 %1216  ;;  %v884_v13 = vadd.f32 %v820_v10, %v716_v57 }
 0x1ca   : > { %2414 = vmatpush.bf16.msrb.mxu1 %v1986_v41  ;;  %7647 = vst [vmem:[#allocation33_spill] sm:$0xff] %v4974_v48  ;;  %v1906_v41 = vunpack.c.l.b16 %v4946_v29  ;;  %v1288_v46 = vsel %vm396_vm0, %v4974_v48, %v4866_v2  ;;  %v724_v6 = vadd.f32 %v660_v7, %v564_v39  ;;  %v1955_v2 = vunpack.c.h.b16 %v4876_v31  ;;  %v7649_v39 = vld [vmem:[#allocation6_spill] sm:$0xff]  ;;  %v7681_v48 = vld [vmem:[#allocation64_spill] sm:$0xff] }
 0x1cb   : > { %v1296_v26 = vmul.f32 %v1288_v46, %v4035_v44  ;;  %v1963_v7 = vunpack.c.h.b16 %v4880_v22  ;;  %v1947_v31 = vunpack.c.h.b16 %v4904_v9 }
 0x1cc   : > { %v892_v23 = vadd.f32 %v828_v28, %v724_v6  ;;  %v1970_v17 = vpack.c.b16 %v1914_v43, %v1906_v41  ;;  %v996_v43 = vadd.f32 %v4355_v37, %v884_v13  ;;  %v1923_v13 = vunpack.c.h.b16 %v4924_v54 }
 0x1cd   : > { %v1360_v59 = vpack.c.bf16 %v1297_v16, %v1296_v26  ;;  %v1753_v26 = vunpack.c.h.b16 %v1364_v14  ;;  %v1995_v60 = vpack.c.b16 %v1963_v7, %v1955_v2  ;;  %v1987_v22 = vpack.c.b16 %v1947_v31, %v1939_v34  ;;  %v7656_v34 = vld [vmem:[#allocation49_spill] sm:$0xff] }
 0x1ce   : > { %2415 = vmatpush.bf16.msrb.mxu1 %v1978_v58  ;;  %1446 = vrot.lane.b32.xlu2 %v4908_v52, %s3777_s11  ;;  %v1004_v10 = vadd.f32 %v4420_v62, %v892_v23  ;;  %v1979_v9 = vpack.c.b16 %v1931_v51, %v1923_v13  ;;  %v1907_v14 = vunpack.c.h.b16 %v4946_v29  ;;  %v644_v54 = vmul.f32 %v4295_v19, %v3891_v4 }
 0x1cf   : > { %1444 = vrot.lane.b32.xlu1 %v4906_v53, %s3777_s11  ;;  %1162 = vrot.lane.b32.xlu0 %v4872_v18, %s3776_s30  ;;  %v1744_v44 = vunpack.c.l.b16 %v1360_v59  ;;  %v1745_v46 = vunpack.c.h.b16 %v1360_v59  ;;  %v7648_v59 = vld [vmem:[#allocation43_spill] sm:$0xff]  ;;  %v548_v29 = vmul.f32 %v7645_v47, %v4305_v0 }
 0x1d0   : > { %v4998_v18 = vmax.f32 %v1004_v10, 0.0  ;;  %v1971_v38 = vpack.c.b16 %v1915_v5, %v1907_v14  ;;  %v7654_v10 = vld [vmem:[#allocation21_spill] sm:$0xff] }
 0x1d1   : > { %v1808_v6 = vpack.c.b16 %v1752_v45, %v1744_v44  ;;  %v1809_v16 = vpack.c.b16 %v1753_v26, %v1745_v46  ;;  %v708_v28 = vadd.f32 %v644_v54, %v548_v29  ;;  %v3466_v45 = vld [vmem:[%s7247_s6 + $0x4] sm:$0xf]  ;;  %v3385_v26 = vld [vmem:[%s7247_s6 + $0x8] sm:$0xf0] }
 0x1d2   : > { %2416 = vmatpush.bf16.msrb.mxu1 %v1970_v17  ;;  %v5000_v17 = vmax.f32 %v996_v43, 0.0 }
 0x1d3   : > { %2304 = vmatpush.bf16.msra.mxu0 %v1808_v6  ;;  %2362 = vmatpush.bf16.msra.mxu2 %v1809_v16  ;;  %v7655_v16 = vld [vmem:[#allocation72_spill] sm:$0xff] }
 0x1d6   : > { %388 = vrot.lane.b32.xlu2 %v7648_v59, %s3776_s30 }
 0x1d7   : > { %2471 = vmatpush.bf16.msrb.mxu0 %v1995_v60  ;;  %1462 = vrot.lane.b32.xlu1 %v4998_v18, %s3777_s11  ;;  %v5080_v60 = vor.u32 %v3466_v45, %v3385_v26 }
 0x1d8   : > { %1460 = vrot.lane.b32.xlu0 %v5000_v17, %s3777_s11 }
 0x1d9   : > { %3417 = vmatmul.msk.bf16.vlgmr.msra.gmra.mxu3 %vm2284_vm2, %v5080_v60  ;;  %3413 = vmatmul.msk.bf16.vlgmr.msra.gmra.mxu1 %vm2284_vm2, %v5080_v60 }
 0x1db   : > { %2472 = vmatpush.bf16.msrb.mxu0 %v1987_v22 }
 0x1de   : > { %1142 = vrot.lane.b32.xlu2 %v4451_v8, %s3776_s30  ;;  %v812_v8 = vmul.f32 %v4728_v20, %v4338_v63 }
 0x1df   : > { %2473 = vmatpush.bf16.msrb.mxu0 %v1979_v9  ;;  %1140 = vrot.lane.b32.xlu1 %v4458_v49, %s3776_s30  ;;  %v540_v49 = vmul.f32 %v7645_v47, %v4258_v25 }
 0x1e0   : > { %442 = vrot.lane.b32.xlu0 %v7649_v39, %s3777_s11  ;;  %v876_v58 = vadd.f32 %v812_v8, %v708_v28 }
 0x1e1   : > { %v700_v33 = vadd.f32 %v636_v15, %v540_v49  ;;  %v7659_v15 = vld [vmem:[#allocation56_spill] sm:$0xff] }
 0x1e2   : > { %v988_v41 = vadd.f32 %v4410_v32, %v876_v58 }
 0x1e3   : > { %2474 = vmatpush.bf16.msrb.mxu0 %v1971_v38  ;;  %v868_v4 = vadd.f32 %v804_v50, %v700_v33  ;;  %v7660_v33 = vld [vmem:[#allocation51_spill] sm:$0xff] }
 0x1e4   : > { %v5038_v57 = vmax.f32 %v988_v41, 0.0 }
 0x1e5   : > { %v980_v47 = vadd.f32 %v4396_v61, %v868_v4 }
 0x1e6   : > { %1440 = vrot.lane.b32.xlu2 %v4930_v12, %s3777_s11  ;;  %7650 = vst [vmem:[#allocation26_spill] sm:$0xff] %v5038_v57 }
 0x1e7   : > { %1158 = vrot.lane.b32.xlu1 %v4908_v52, %s3776_s30  ;;  %v5040_v20 = vmax.f32 %v980_v47, 0.0 }
 0x1e8   : > { %1156 = vrot.lane.b32.xlu0 %v4906_v53, %s3776_s30 }
 0x1e9   : > { %7651 = vst [vmem:[#allocation74_spill] sm:$0xff] %v5040_v20 }
 0x1ee   : > { %1458 = vrot.lane.b32.xlu2 %v5038_v57, %s3777_s11 }
 0x1ef   : > { %1456 = vrot.lane.b32.xlu1 %v5040_v20, %s3777_s11  ;;  %v7703_v20 = vld [vmem:[#allocation18_spill] sm:$0xff] }
 0x1f0   : > { %1442 = vrot.lane.b32.xlu0 %v4932_v35, %s3777_s11 }
 0x1f6   : > { %1152 = vrot.lane.b32.xlu2 %v4930_v12, %s3776_s30  ;;  %v7653_v12 = vld [vmem:[#allocation46_spill] sm:$0xff] }
 0x1f7   : > { %1138 = vrot.lane.b32.xlu1 %v4545_v30, %s3776_s30 }
 0x1f8   : > { %1136 = vrot.lane.b32.xlu0 %v4521_v3, %s3776_s30  ;;  %v3383_v3 = vld [vmem:[%s7247_s6] sm:$0xf] }
 0x200   : > { %1154 = vrot.lane.b32.xlu0 %v4932_v35, %s3776_s30  ;;  %v5056_v53 = vpop.permute.xlu2 %1468  ;;  %v3467_v35 = vld [vmem:[%s7247_s6 + $0x4] sm:$0xf0] }
 0x201   : > { %7652 = vst [vmem:[#allocation31_spill] sm:$0xff] %v5056_v53  ;;  %v5073_v46 = vor.u32 %v3467_v35, %v3383_v3 }
 0x203   : > { %2363 = vmatmul.bf16.vlgmr.msra.gmra.mxu2 %v5073_v46  ;;  %2305 = vmatmul.bf16.vlgmr.msra.gmra.mxu0 %v5073_v46 }
 0x208   : > { %v1151_v52 = vpop.permute.xlu2 %1150 }
 0x209   : > { %v1279_v29 = vsel %vm396_vm0, %v7659_v15, %v1151_v52 }
 0x210   : > { %v1449_v7 = vpop.permute.xlu2 %1448 }
 0x218   : > { %v1455_v23 = vpop.permute.xlu1 %1454  ;;  %v5098_v38 = vpop.permute.xlu2 %1466 }
 0x219   : > { %v1453_v2 = vpop.permute.xlu0 %1452  ;;  %v1559_v31 = vsel %vm446_vm1, %v7656_v34, %v1455_v23  ;;  %7658 = vst [vmem:[#allocation6_spill] sm:$0xff] %v5098_v38  ;;  %v3469_v34 = vld [vmem:[%s7247_s6 + $0x14] sm:$0xf0] }
 0x21a   : > { %v1550_v44 = vsel %vm446_vm1, %v1453_v2, %v5056_v53  ;;  %v1558_v30 = vsel %vm446_vm1, %v7653_v12, %v1453_v2  ;;  %v1642_v9 = vmul.f32 %v1559_v31, %v7654_v10  ;;  %v3468_v31 = vld [vmem:[%s7247_s6 + $0x14] sm:$0xf] }
 0x21b   : > { %v1634_v6 = vmul.f32 %v1558_v30, %v7654_v10  ;;  %v1635_v43 = vmul.f32 %v1550_v44, %v7655_v16  ;;  %v7663_v44 = vld [vmem:[#allocation20_spill] sm:$0xff] }
 0x21c   : > { %v1354_v12 = vmul.f32 %v1279_v29, %v7663_v44  ;;  %v7664_v30 = vld [vmem:[#allocation68_spill] sm:$0xff] }
 0x21d   : > { %v1673_v14 = vpack.c.bf16 %v1635_v43, %v1634_v6  ;;  %v3391_v43 = vld [vmem:[%s7247_s6 + $0x10] sm:$0xf] }
 0x21f   : > { %v2114_v8 = vunpack.c.l.b16 %v1673_v14  ;;  %v2115_v50 = vunpack.c.h.b16 %v1673_v14 }
 0x220   : > { %v1149_v22 = vpop.permute.xlu1 %1148 }
 0x221   : > { %v5087_v13 = vpop.permute.xlu0 %1470  ;;  %v1278_v58 = vsel %vm396_vm0, %v7660_v33, %v1149_v22 }
 0x222   : > { %7657 = vst [vmem:[#allocation43_spill] sm:$0xff] %v5087_v13  ;;  %v1551_v51 = vsel %vm446_vm1, %v1455_v23, %v5087_v13  ;;  %v1346_v45 = vmul.f32 %v1278_v58, %v7663_v44 }
 0x223   : > { %v1643_v5 = vmul.f32 %v1551_v51, %v7655_v16 }
 0x225   : > { %v1677_v54 = vpack.c.bf16 %v1643_v5, %v1642_v9  ;;  %v5132_v9 = vpop.permute.xlu2 %1160  ;;  %v5134_v5 = vor.u32 %v3469_v34, %v3391_v43 }
 0x226   : > { %7666 = vst [vmem:[#allocation72_spill] sm:$0xff] %v5132_v9 }
 0x227   : > { %v2122_v49 = vunpack.c.l.b16 %v1677_v54  ;;  %v2123_v28 = vunpack.c.h.b16 %v1677_v54  ;;  %7667 = vst [vmem:[#allocation49_spill] sm:$0xff] %v5134_v5  ;;  %v3393_v54 = vld [vmem:[%s7247_s6 + $0x18] sm:$0xf0]  ;;  %2368 = vmatmul.bf16.gmra.mxu2 %v5134_v5  ;;  %2310 = vmatmul.bf16.gmra.mxu0 %v5134_v5 }
 0x228   : > { %v5106_v4 = vpop.permute.xlu1 %1166 }
 0x229   : > { %7661 = vst [vmem:[#allocation46_spill] sm:$0xff] %v5106_v4  ;;  %v1271_v41 = vsel %vm396_vm0, %v1151_v52, %v5106_v4  ;;  %v5111_v47 = vpop.permute.xlu0 %1164  ;;  %v2154_v23 = vpack.c.b16 %v2122_v49, %v2114_v8  ;;  %v2155_v2 = vpack.c.b16 %v2123_v28, %v2115_v50  ;;  %v5139_v49 = vor.u32 %v3468_v31, %v3393_v54 }
 0x22a   : > { %7662 = vst [vmem:[#allocation21_spill] sm:$0xff] %v5111_v47  ;;  %v1355_v3 = vmul.f32 %v1271_v41, %v7664_v30  ;;  %v1270_v35 = vsel %vm396_vm0, %v1149_v22, %v5111_v47  ;;  %v7665_v22 = vld [vmem:[#allocation57_spill] sm:$0xff] }
 0x22b   : > { %v1347_v26 = vmul.f32 %v1270_v35, %v7664_v30  ;;  %2446 = vmatpush.bf16.msrb.mxu3 %v2154_v23  ;;  %2504 = vmatpush.bf16.msrb.mxu2 %v2155_v2  ;;  %v1556_v51 = vsel %vm446_vm1, %v7665_v22, %v1449_v7  ;;  %7668 = vst [vmem:[#allocation56_spill] sm:$0xff] %v5139_v49 }
 0x22c   : > { %v1389_v6 = vpack.c.bf16 %v1355_v3, %v1354_v12  ;;  %3418 = vmatmul.msk.bf16.gmra.mxu3 %vm2284_vm2, %v5139_v49  ;;  %v1618_v41 = vmul.f32 %v1556_v51, %v7654_v10  ;;  %3414 = vmatmul.msk.bf16.gmra.mxu1 %vm2284_vm2, %v5139_v49  ;;  %v7670_v12 = vld [vmem:[#allocation59_spill] sm:$0xff] }
 0x22d   : > { %v1385_v52 = vpack.c.bf16 %v1347_v26, %v1346_v45  ;;  %v1447_v34 = vpop.permute.xlu2 %1446 }
 0x22e   : > { %v1802_v14 = vunpack.c.l.b16 %v1389_v6  ;;  %v1803_v8 = vunpack.c.h.b16 %v1389_v6 }
 0x22f   : > { %v1794_v15 = vunpack.c.l.b16 %v1385_v52  ;;  %v1795_v29 = vunpack.c.h.b16 %v1385_v52 }
 0x230   : > { %v5141_v50 = vpop.permute.xlu1 %1464 }
 0x231   : > { %7669 = vst [vmem:[#allocation51_spill] sm:$0xff] %v5141_v50  ;;  %v1548_v28 = vsel %vm446_vm1, %v1449_v7, %v5141_v50  ;;  %v1451_v33 = vpop.permute.xlu0 %1450  ;;  %v1834_v58 = vpack.c.b16 %v1802_v14, %v1794_v15  ;;  %v1835_v35 = vpack.c.b16 %v1803_v8, %v1795_v29  ;;  %v7690_v50 = vld [vmem:[#allocation16_spill] sm:$0xff] }
 0x232   : > { %v1619_v23 = vmul.f32 %v1548_v28, %v7655_v16  ;;  %v1549_v2 = vsel %vm446_vm1, %v1451_v33, %v5098_v38  ;;  %v1557_v7 = vsel %vm446_vm1, %v7670_v12, %v1451_v33  ;;  %v7671_v33 = vld [vmem:[#allocation61_spill] sm:$0xff]  ;;  %v3399_v12 = vld [vmem:[%s7247_s6 + $0x20] sm:$0xf] }
 0x233   : > { %v1627_v3 = vmul.f32 %v1549_v2, %v7655_v16  ;;  %2417 = vmatpush.bf16.msrb.mxu1 %v1834_v58  ;;  %v1626_v26 = vmul.f32 %v1557_v7, %v7654_v10  ;;  %2475 = vmatpush.bf16.msrb.mxu0 %v1835_v35  ;;  %v3471_v7 = vld [vmem:[%s7247_s6 + $0x24] sm:$0xf0] }
 0x234   : > { %v1665_v45 = vpack.c.bf16 %v1619_v23, %v1618_v41  ;;  %v7672_v41 = vld [vmem:[#allocation65_spill] sm:$0xff] }
 0x235   : > { %v1669_v6 = vpack.c.bf16 %v1627_v3, %v1626_v26  ;;  %v3470_v3 = vld [vmem:[%s7247_s6 + $0x24] sm:$0xf]  ;;  %v3401_v26 = vld [vmem:[%s7247_s6 + $0x28] sm:$0xf0] }
 0x236   : > { %v2098_v52 = vunpack.c.l.b16 %v1665_v45  ;;  %v2099_v43 = vunpack.c.h.b16 %v1665_v45  ;;  %v5184_v45 = vor.u32 %v3471_v7, %v3399_v12 }
 0x237   : > { %v2106_v22 = vunpack.c.l.b16 %v1669_v6  ;;  %v2107_v51 = vunpack.c.h.b16 %v1669_v6  ;;  %v389_v6 = vpop.permute.xlu2 %388 }
 0x238   : > { %7674 = vst [vmem:[#allocation68_spill] sm:$0xff] %v5184_v45  ;;  %2373 = vmatmul.bf16.gmra.mxu2 %v5184_v45  ;;  %2315 = vmatmul.bf16.gmra.mxu0 %v5184_v45  ;;  %v7699_v45 = vld [vmem:[#allocation10_spill] sm:$0xff] }
 0x239   : > { %v1147_v31 = vpop.permute.xlu1 %1146  ;;  %v1145_v14 = vpop.permute.xlu0 %1144  ;;  %v2146_v54 = vpack.c.b16 %v2106_v22, %v2098_v52  ;;  %v2147_v15 = vpack.c.b16 %v2107_v51, %v2099_v43  ;;  %v5192_v43 = vor.u32 %v3470_v3, %v3401_v26 }
 0x23a   : > { %v1268_v28 = vsel %vm396_vm0, %v1145_v14, %v5132_v9  ;;  %v1276_v29 = vsel %vm396_vm0, %v7671_v33, %v1145_v14  ;;  %v1277_v23 = vsel %vm396_vm0, %v7672_v41, %v1147_v31  ;;  %v7680_v41 = vld [vmem:[#allocation11_spill] sm:$0xff] }
 0x23b   : > { %2447 = vmatpush.bf16.msrb.mxu3 %v2146_v54  ;;  %2505 = vmatpush.bf16.msrb.mxu2 %v2147_v15  ;;  %v1330_v8 = vmul.f32 %v1276_v29, %v7663_v44  ;;  %v1331_v58 = vmul.f32 %v1268_v28, %v7664_v30  ;;  %7675 = vst [vmem:[#allocation57_spill] sm:$0xff] %v5192_v43  ;;  %v3707_v54 = vld [vmem:[%s7243_s2] sm:$0xff]  ;;  %v7678_v29 = vld [vmem:[#allocation70_spill] sm:$0xff] }
 0x23c   : > { %v1338_v22 = vmul.f32 %v1277_v23, %v7663_v44  ;;  %v5201_v15 = vperm.slane %v3707_v54, 5  ;;  %3419 = vmatmul.msk.bf16.gmra.mxu3 %vm2284_vm2, %v5192_v43  ;;  %3415 = vmatmul.msk.bf16.gmra.mxu1 %vm2284_vm2, %v5192_v43  ;;  %v398_v23 = vsel %vm396_vm0, %v389_v6, %v7680_v41 }
 0x23d   : > { %v1377_v51 = vpack.c.bf16 %v1331_v58, %v1330_v8  ;;  %v1555_v8 = vsel %vm446_vm1, %v7678_v29, %v1447_v34  ;;  %v5213_v58 = vperm.slane %v3707_v54, 6 }
 0x23e   : > { %7676 = vst [vmem:[#allocation59_spill] sm:$0xff] %v5201_v15  ;;  %v1610_v41 = vmul.f32 %v1555_v8, %v7654_v10 }
 0x23f   : > { %7679 = vst [vmem:[#allocation61_spill] sm:$0xff] %v5213_v58  ;;  %v1778_v12 = vunpack.c.l.b16 %v1377_v51  ;;  %v1779_v3 = vunpack.c.h.b16 %v1377_v51  ;;  %v428_v51 = vmul.f32 %v5213_v58, %v398_v23 }
 0x241   : > { %v1445_v2 = vpop.permute.xlu1 %1444  ;;  %v5182_v35 = vpop.permute.xlu0 %1162  ;;  %v5239_v8 = vperm.slane %v428_v51, 0 }
 0x242   : > { %7673 = vst [vmem:[#allocation20_spill] sm:$0xff] %v5182_v35  ;;  %v1269_v52 = vsel %vm396_vm0, %v1147_v31, %v5182_v35  ;;  %v7677_v31 = vld [vmem:[#allocation7_spill] sm:$0xff] }
 0x243   : > { %v1339_v14 = vmul.f32 %v1269_v52, %v7664_v30  ;;  %v399_v28 = vsel %vm396_vm0, %v7677_v31, %v389_v6 }
 0x244   : > { %v427_v52 = vmul.f32 %v5201_v15, %v399_v28  ;;  %v7691_v15 = vld [vmem:[#allocation66_spill] sm:$0xff] }
 0x245   : > { %v1381_v33 = vpack.c.bf16 %v1339_v14, %v1338_v22  ;;  %v1554_v22 = vsel %vm446_vm1, %v7681_v48, %v1445_v2 }
 0x247   : > { %v1786_v7 = vunpack.c.l.b16 %v1381_v33  ;;  %v1787_v26 = vunpack.c.h.b16 %v1381_v33  ;;  %v1602_v33 = vmul.f32 %v1554_v22, %v7654_v10 }
 0x249   : > { %v5222_v14 = vpop.permute.xlu1 %1462  ;;  %v1826_v29 = vpack.c.b16 %v1786_v7, %v1778_v12  ;;  %v1827_v6 = vpack.c.b16 %v1787_v26, %v1779_v3  ;;  %v1143_v7 = vpop.permute.xlu2 %1142 }
 0x24a   : > { %7682 = vst [vmem:[#allocation65_spill] sm:$0xff] %v5222_v14  ;;  %v1547_v54 = vsel %vm446_vm1, %v1447_v34, %v5222_v14  ;;  %v5227_v31 = vpop.permute.xlu0 %1460  ;;  %v5237_v34 = vperm.slane %v427_v52, 0  ;;  %v7686_v52 = vld [vmem:[#allocation23_spill] sm:$0xff]  ;;  %v7688_v14 = vld [vmem:[#allocation8_spill] sm:$0xff] }
 0x24b   : > { %7683 = vst [vmem:[#allocation7_spill] sm:$0xff] %v5227_v31  ;;  %v1611_v28 = vmul.f32 %v1547_v54, %v7655_v16  ;;  %v1546_v48 = vsel %vm446_vm1, %v1445_v2, %v5227_v31  ;;  %2418 = vmatpush.bf16.msrb.mxu1 %v1826_v29  ;;  %2476 = vmatpush.bf16.msrb.mxu0 %v1827_v6  ;;  %v3708_v54 = vld [vmem:[%s7244_s3] sm:$0xff] }
 0x24c   : > { %v1603_v35 = vmul.f32 %v1546_v48, %v7655_v16  ;;  %v5244_v2 = vperm.slane %v3708_v54, 5  ;;  %v5246_v22 = vperm.slane %v3708_v54, 6  ;;  %v589_v9 = vmul.f32 %v5237_v34, %v7688_v14 }
 0x24d   : > { %v1661_v12 = vpack.c.bf16 %v1611_v28, %v1610_v41  ;;  %v597_v41 = vmul.f32 %v5237_v34, %v7686_v52  ;;  %v598_v13 = vmul.f32 %v5239_v8, %v7686_v52 }
 0x24e   : > { %v1657_v3 = vpack.c.bf16 %v1603_v35, %v1602_v33  ;;  %7684 = vst [vmem:[#allocation70_spill] sm:$0xff] %v5244_v2  ;;  %v7687_v35 = vld [vmem:[#allocation9_spill] sm:$0xff] }
 0x24f   : > { %v2090_v23 = vunpack.c.l.b16 %v1661_v12  ;;  %v2091_v26 = vunpack.c.h.b16 %v1661_v12  ;;  %7685 = vst [vmem:[#allocation11_spill] sm:$0xff] %v5246_v22  ;;  %v693_v51 = vmul.f32 %v7687_v35, %v7648_v59  ;;  %v694_v28 = vmul.f32 %v7687_v35, %v7649_v39  ;;  %v3407_v33 = vld [vmem:[%s7247_s6 + $0x30] sm:$0xf]  ;;  %v3473_v12 = vld [vmem:[%s7247_s6 + $0x34] sm:$0xf0] }
 0x250   : > { %v2082_v48 = vunpack.c.l.b16 %v1657_v3  ;;  %v2083_v29 = vunpack.c.h.b16 %v1657_v3  ;;  %v3472_v3 = vld [vmem:[%s7247_s6 + $0x34] sm:$0xf]  ;;  %v5265_v38 = vor.u32 %v3473_v12, %v3407_v33  ;;  %v3409_v35 = vld [vmem:[%s7247_s6 + $0x38] sm:$0xf0] }
 0x251   : > { %v1141_v6 = vpop.permute.xlu1 %1140  ;;  %v7693_v33 = vld [vmem:[#allocation13_spill] sm:$0xff]  ;;  %v758_v5 = vadd.f32 %v694_v28, %v598_v13 }
 0x252   : > { %v443_v54 = vpop.permute.xlu0 %442  ;;  %v2138_v58 = vpack.c.b16 %v2090_v23, %v2082_v48  ;;  %v2139_v31 = vpack.c.b16 %v2091_v26, %v2083_v29  ;;  %7689 = vst [vmem:[#allocation64_spill] sm:$0xff] %v5265_v38  ;;  %v590_v23 = vmul.f32 %v5239_v8, %v7688_v14  ;;  %v5278_v26 = vor.u32 %v3472_v3, %v3409_v35 }
 0x253   : > { %v447_v47 = vsel %vm446_vm1, %v443_v54, %v7690_v50  ;;  %v448_v4 = vsel %vm446_vm1, %v7691_v15, %v443_v54  ;;  %v685_v12 = vmul.f32 %v7693_v33, %v7648_v59  ;;  %v686_v50 = vmul.f32 %v7693_v33, %v7649_v39  ;;  %2378 = vmatmul.bf16.gmra.mxu2 %v5265_v38  ;;  %v7694_v15 = vld [vmem:[#allocation15_spill] sm:$0xff]  ;;  %v7696_v54 = vld [vmem:[#allocation22_spill] sm:$0xff] }
 0x254   : > { %7692 = vst [vmem:[#allocation23_spill] sm:$0xff] %v5278_v26  ;;  %v477_v48 = vmul.f32 %v5244_v2, %v448_v4  ;;  %v478_v29 = vmul.f32 %v5246_v22, %v447_v47  ;;  %2448 = vmatpush.bf16.msrb.mxu3 %v2138_v58  ;;  %2506 = vmatpush.bf16.msrb.mxu2 %v2139_v31  ;;  %v7695_v47 = vld [vmem:[#allocation75_spill] sm:$0xff]  ;;  %v7698_v2 = vld [vmem:[#allocation14_spill] sm:$0xff] }
 0x255   : > { %3420 = vmatmul.msk.bf16.gmra.mxu3 %vm2284_vm2, %v5278_v26  ;;  %v5291_v14 = vmul.f32 %v7694_v15, %v7648_v59  ;;  %v5295_v4 = vmul.f32 %v7694_v15, %v7649_v39  ;;  %v1275_v58 = vsel %vm396_vm0, %v7695_v47, %v1143_v7  ;;  %v5306_v35 = vmul.f32 %v7696_v54, %v7648_v59  ;;  %v1441_v47 = vpop.permute.xlu2 %1440 }
 0x256   : > { %v5300_v31 = vperm.slane %v477_v48, 0  ;;  %v5302_v3 = vperm.slane %v478_v29, 0  ;;  %2320 = vmatmul.bf16.gmra.mxu0 %v5265_v38  ;;  %3416 = vmatmul.msk.bf16.gmra.mxu1 %vm2284_vm2, %v5278_v26  ;;  %v757_v33 = vadd.f32 %v693_v51, %v597_v41  ;;  %v749_v15 = vadd.f32 %v685_v12, %v589_v9  ;;  %v7697_v48 = vld [vmem:[#allocation71_spill] sm:$0xff] }
 0x257   : > { %v750_v22 = vadd.f32 %v686_v50, %v590_v23  ;;  %v1274_v29 = vsel %vm396_vm0, %v7697_v48, %v1141_v6  ;;  %v1322_v9 = vmul.f32 %v1275_v58, %v7663_v44  ;;  %v5329_v51 = vmul.f32 %v7696_v54, %v7649_v39 }
 0x258   : > { %v861_v53 = vmul.f32 %v5300_v31, %v7698_v2  ;;  %v853_v38 = vmul.f32 %v5300_v31, %v7699_v45  ;;  %v854_v26 = vmul.f32 %v5302_v3, %v7699_v45  ;;  %v862_v52 = vmul.f32 %v5302_v3, %v7698_v2 }
 0x259   : > { %v5323_v41 = vpop.permute.xlu1 %1158  ;;  %v5333_v23 = vmul.f32 %v4204_v27, %v7648_v59  ;;  %v1314_v43 = vmul.f32 %v1274_v29, %v7663_v44  ;;  %v7702_v27 = vld [vmem:[#allocation27_spill] sm:$0xff] }
 0x25a   : > { %7700 = vst [vmem:[#allocation9_spill] sm:$0xff] %v5323_v41  ;;  %v1267_v12 = vsel %vm396_vm0, %v1143_v7, %v5323_v41  ;;  %v5338_v45 = vpop.permute.xlu0 %1156  ;;  %v925_v50 = vadd.f32 %v861_v53, %v757_v33  ;;  %v917_v58 = vadd.f32 %v853_v38, %v749_v15  ;;  %v918_v48 = vadd.f32 %v854_v26, %v750_v22 }
 0x25b   : > { %7701 = vst [vmem:[#allocation8_spill] sm:$0xff] %v5338_v45  ;;  %v1323_v2 = vmul.f32 %v1267_v12, %v7664_v30  ;;  %v1266_v54 = vsel %vm396_vm0, %v1141_v6, %v5338_v45  ;;  %v1552_v53 = vsel %vm446_vm1, %v4870_v1, %v1441_v47  ;;  %v926_v22 = vadd.f32 %v862_v52, %v758_v5  ;;  %v7704_v5 = vld [vmem:[#allocation19_spill] sm:$0xff]  ;;  %v7706_v12 = vld [vmem:[#allocation12_spill] sm:$0xff] }
 0x25c   : > { %v1315_v49 = vmul.f32 %v1266_v54, %v7664_v30  ;;  %v1037_v57 = vadd.f32 %v7702_v27, %v925_v50  ;;  %v1029_v7 = vadd.f32 %v7703_v20, %v917_v58  ;;  %v1030_v41 = vadd.f32 %v7703_v20, %v918_v48 }
 0x25d   : > { %v1373_v38 = vpack.c.bf16 %v1323_v2, %v1322_v9  ;;  %v653_v26 = vmul.f32 %v7643_v11, %v7648_v59  ;;  %v637_v20 = vmul.f32 %v4326_v42, %v7648_v59  ;;  %v5364_v1 = vmul.f32 %v4326_v42, %v7649_v39 }
 0x25e   : > { %v1369_v33 = vpack.c.bf16 %v1315_v49, %v1314_v43  ;;  %v5354_v6 = vmax.f32 %v1037_v57, 0.0  ;;  %v5356_v13 = vmax.f32 %v1029_v7, 0.0  ;;  %v5358_v28 = vmax.f32 %v1030_v41, 0.0  ;;  %v7708_v7 = vld [vmem:[#allocation17_spill] sm:$0xff] }
 0x25f   : > { %v1770_v15 = vunpack.c.l.b16 %v1373_v38  ;;  %v1771_v29 = vunpack.c.h.b16 %v1373_v38  ;;  %v573_v49 = vmul.f32 %v5237_v34, %v7704_v5  ;;  %v5374_v43 = vmul.f32 %v4295_v19, %v7648_v59  ;;  %v5389_v59 = vpop.permute.xlu2 %1458 }
 0x260   : > { %1486 = vrot.lane.b32.xlu2 %v5354_v6, %s3777_s11  ;;  %1484 = vrot.lane.b32.xlu1 %v5356_v13, %s3777_s11  ;;  %v1762_v57 = vunpack.c.l.b16 %v1369_v33  ;;  %v5378_v9 = vmul.f32 %v4295_v19, %v7649_v39  ;;  %v1586_v42 = vmul.f32 %v1552_v53, %v7654_v10  ;;  %v1763_v52 = vunpack.c.h.b16 %v1369_v33  ;;  %7707 = vst [vmem:[#allocation66_spill] sm:$0xff] %v5389_v59 }
 0x261   : > { %1500 = vrot.lane.b32.xlu0 %v5358_v28, %s3777_s11  ;;  %v5383_v41 = vpop.permute.xlu1 %1456  ;;  %v581_v50 = vmul.f32 %v5237_v34, %v7706_v12  ;;  %v582_v58 = vmul.f32 %v5239_v8, %v7706_v12  ;;  %v1038_v54 = vadd.f32 %v7702_v27, %v926_v22  ;;  %v837_v53 = vmul.f32 %v5300_v31, %v7708_v7  ;;  %v7709_v22 = vld [vmem:[#allocation28_spill] sm:$0xff] }
 0x262   : > { %7705 = vst [vmem:[#allocation16_spill] sm:$0xff] %v5383_v41  ;;  %v1544_v19 = vsel %vm446_vm1, %v1441_v47, %v5383_v41  ;;  %v1443_v48 = vpop.permute.xlu0 %1442  ;;  %v1818_v2 = vpack.c.b16 %v1770_v15, %v1762_v57  ;;  %v1819_v45 = vpack.c.b16 %v1771_v29, %v1763_v52  ;;  %v733_v27 = vadd.f32 %v5306_v35, %v573_v49 }
 0x263   : > { %v1587_v38 = vmul.f32 %v1544_v19, %v7655_v16  ;;  %v1545_v33 = vsel %vm446_vm1, %v1443_v48, %v5389_v59  ;;  %v1553_v12 = vsel %vm446_vm1, %v4816_v56, %v1443_v48  ;;  %v845_v57 = vmul.f32 %v5300_v31, %v7709_v22 }
 0x264   : > { %v1594_v47 = vmul.f32 %v1553_v12, %v7654_v10  ;;  %v1595_v15 = vmul.f32 %v1545_v33, %v7655_v16  ;;  %2419 = vmatpush.bf16.msrb.mxu1 %v1818_v2  ;;  %2477 = vmatpush.bf16.msrb.mxu0 %v1819_v45  ;;  %v741_v41 = vadd.f32 %v5291_v14, %v581_v50  ;;  %v5414_v10 = vmax.f32 %v1038_v54, 0.0  ;;  %v7710_v45 = vld [vmem:[#allocation76_spill] sm:$0xff] }
 0x265   : > { %v1649_v19 = vpack.c.bf16 %v1587_v38, %v1586_v42  ;;  %v574_v59 = vmul.f32 %v5239_v8, %v7704_v5  ;;  %v557_v56 = vmul.f32 %v5237_v34, %v7646_v24  ;;  %v742_v16 = vadd.f32 %v5295_v4, %v582_v58  ;;  %v7711_v58 = vld [vmem:[#allocation79_spill] sm:$0xff] }
 0x266   : > { %v1653_v29 = vpack.c.bf16 %v1595_v15, %v1594_v47  ;;  %v565_v35 = vmul.f32 %v5237_v34, %v7644_v21  ;;  %v901_v42 = vadd.f32 %v837_v53, %v733_v27  ;;  %v541_v14 = vmul.f32 %v5237_v34, %v4258_v25  ;;  %v7712_v15 = vld [vmem:[#allocation36_spill] sm:$0xff]  ;;  %v7713_v27 = vld [vmem:[#allocation34_spill] sm:$0xff] }
 0x267   : > { %v2066_v49 = vunpack.c.l.b16 %v1649_v19  ;;  %v2067_v52 = vunpack.c.h.b16 %v1649_v19  ;;  %v909_v48 = vadd.f32 %v845_v57, %v741_v41  ;;  %v549_v4 = vmul.f32 %v5237_v34, %v4305_v0 }
 0x268   : > { %1180 = vrot.lane.b32.xlu2 %v7710_v45, %s3776_s30  ;;  %1502 = vrot.lane.b32.xlu1 %v5414_v10, %s3777_s11  ;;  %v2074_v5 = vunpack.c.l.b16 %v1653_v29  ;;  %v2075_v50 = vunpack.c.h.b16 %v1653_v29  ;;  %v846_v2 = vmul.f32 %v5302_v3, %v7709_v22  ;;  %v734_v54 = vadd.f32 %v5329_v51, %v574_v59  ;;  %v5442_v59 = vpop.permute.xlu2 %1152 }
 0x269   : > { %1182 = vrot.lane.b32.xlu0 %v7711_v58, %s3776_s30  ;;  %v838_v53 = vmul.f32 %v5302_v3, %v7708_v7  ;;  %v717_v38 = vadd.f32 %v653_v26, %v557_v56  ;;  %v821_v41 = vmul.f32 %v5300_v31, %v4112_v36  ;;  %v829_v34 = vmul.f32 %v5300_v31, %v7712_v15  ;;  %v7714_v7 = vld [vmem:[#allocation38_spill] sm:$0xff] }
 0x26a   : > { %v1137_v33 = vpop.permute.xlu0 %1136  ;;  %v2130_v12 = vpack.c.b16 %v2074_v5, %v2066_v49  ;;  %v2131_v47 = vpack.c.b16 %v2075_v50, %v2067_v52  ;;  %v1013_v57 = vadd.f32 %v7713_v27, %v901_v42  ;;  %v725_v19 = vadd.f32 %v5333_v23, %v565_v35  ;;  %v1139_v42 = vpop.permute.xlu1 %1138 }
 0x26b   : > { %v701_v22 = vadd.f32 %v637_v20, %v541_v14  ;;  %v542_v51 = vmul.f32 %v5239_v8, %v4258_v25  ;;  %v5446_v26 = vpack.c.bf16 %v5356_v13, %v7710_v45  ;;  %v1021_v56 = vadd.f32 %v7714_v7, %v909_v48  ;;  %v7715_v20 = vld [vmem:[#allocation32_spill] sm:$0xff] }
 0x26c   : > { %2449 = vmatpush.bf16.msrb.mxu3 %v2130_v12  ;;  %2507 = vmatpush.bf16.msrb.mxu2 %v2131_v47  ;;  %v550_v29 = vmul.f32 %v5239_v8, %v4305_v0  ;;  %v1264_v23 = vsel %vm396_vm0, %v1137_v33, %v5442_v59  ;;  %v1272_v25 = vsel %vm396_vm0, %v7715_v20, %v1137_v33  ;;  %v5461_v0 = vmax.f32 %v1013_v57, 0.0 }
 0x26d   : > { %v910_v35 = vadd.f32 %v846_v2, %v742_v16  ;;  %v902_v49 = vadd.f32 %v838_v53, %v734_v54  ;;  %v1710_v52 = vpack.c.bf16 %v5354_v6, %v7711_v58  ;;  %v885_v14 = vadd.f32 %v821_v41, %v717_v38 }
 0x26e   : > { %v893_v45 = vadd.f32 %v829_v34, %v725_v19  ;;  %v805_v5 = vmul.f32 %v5300_v31, %v4375_v55  ;;  %v709_v16 = vadd.f32 %v5374_v43, %v549_v4  ;;  %v813_v50 = vmul.f32 %v5300_v31, %v4338_v63  ;;  %v7716_v43 = vld [vmem:[#allocation40_spill] sm:$0xff] }
 0x26f   : > { %3421 = vmatmul.msk.bf16.vlgmr.msrb.gmra.mxu3 %vm2284_vm2, %v5080_v60  ;;  %3425 = vmatmul.msk.bf16.vlgmr.msrb.gmra.mxu2 %vm2284_vm2, %v5080_v60  ;;  %v702_v48 = vadd.f32 %v5364_v1, %v542_v51  ;;  %v1298_v58 = vmul.f32 %v1272_v25, %v7663_v44  ;;  %v1299_v2 = vmul.f32 %v1264_v23, %v7664_v30  ;;  %v1956_v54 = vunpack.c.l.b16 %v5446_v26  ;;  %v7717_v23 = vld [vmem:[#allocation81_spill] sm:$0xff] }
 0x270   : > { %1198 = vrot.lane.b32.xlu2 %v5354_v6, %s3776_s30  ;;  %1196 = vrot.lane.b32.xlu1 %v5356_v13, %s3776_s30  ;;  %v710_v53 = vadd.f32 %v5378_v9, %v550_v29  ;;  %v1273_v31 = vsel %vm396_vm0, %v7716_v43, %v1139_v42  ;;  %v5484_v1 = vmax.f32 %v1021_v56, 0.0  ;;  %v1022_v4 = vadd.f32 %v7714_v7, %v910_v35 }
 0x271   : > { %1480 = vrot.lane.b32.xlu0 %v5461_v0, %s3777_s11  ;;  %v1014_v6 = vadd.f32 %v7713_v27, %v902_v49  ;;  %v1964_v13 = vunpack.c.l.b16 %v1710_v52  ;;  %v997_v33 = vadd.f32 %v4355_v37, %v885_v14  ;;  %v1005_v9 = vadd.f32 %v4420_v62, %v893_v45 }
 0x272   : > { %v5488_v38 = vpop.permute.xlu0 %1154  ;;  %v869_v12 = vadd.f32 %v805_v5, %v701_v22  ;;  %v877_v41 = vadd.f32 %v813_v50, %v709_v16  ;;  %v806_v34 = vmul.f32 %v5302_v3, %v4375_v55  ;;  %v814_v57 = vmul.f32 %v5302_v3, %v4338_v63  ;;  %v7718_v55 = vld [vmem:[#allocation80_spill] sm:$0xff] }
 0x273   : > { %v1265_v47 = vsel %vm396_vm0, %v1139_v42, %v5488_v38  ;;  %v1306_v27 = vmul.f32 %v1273_v31, %v7663_v44  ;;  %v1361_v19 = vpack.c.bf16 %v1299_v2, %v1298_v58  ;;  %v1957_v7 = vunpack.c.h.b16 %v5446_v26 }
 0x274   : > { %v1307_v51 = vmul.f32 %v1265_v47, %v7664_v30  ;;  %v5502_v56 = vmax.f32 %v1022_v4, 0.0  ;;  %v5504_v22 = vmax.f32 %v1014_v6, 0.0  ;;  %v1965_v29 = vunpack.c.h.b16 %v1710_v52 }
 0x275   : > { %v1698_v20 = vpack.c.bf16 %v5461_v0, %v7717_v23  ;;  %v1702_v35 = vpack.c.bf16 %v5484_v1, %v7718_v55  ;;  %v5510_v63 = vmax.f32 %v997_v33, 0.0  ;;  %v5512_v44 = vmax.f32 %v1005_v9, 0.0 }
 0x276   : > { %v1365_v25 = vpack.c.bf16 %v1307_v51, %v1306_v27  ;;  %v981_v30 = vadd.f32 %v4396_v61, %v869_v12  ;;  %v989_v26 = vadd.f32 %v4410_v32, %v877_v41  ;;  %v5516_v49 = vadd.f32 %v806_v34, %v702_v48  ;;  %v7719_v41 = vld [vmem:[#allocation74_spill] sm:$0xff] }
 0x277   : > { %v5518_v42 = vadd.f32 %v814_v57, %v710_v53  ;;  %v1746_v52 = vunpack.c.l.b16 %v1361_v19  ;;  %v1747_v45 = vunpack.c.h.b16 %v1361_v19  ;;  %v1996_v16 = vpack.c.b16 %v1964_v13, %v1956_v54  ;;  %v7720_v57 = vld [vmem:[#allocation26_spill] sm:$0xff] }
 0x278   : > { %1482 = vrot.lane.b32.xlu1 %v5484_v1, %s3777_s11  ;;  %1496 = vrot.lane.b32.xlu2 %v5504_v22, %s3777_s11  ;;  %v1754_v14 = vunpack.c.l.b16 %v1365_v25  ;;  %v1755_v5 = vunpack.c.h.b16 %v1365_v25  ;;  %v1997_v50 = vpack.c.b16 %v1965_v29, %v1957_v7  ;;  %v1940_v2 = vunpack.c.l.b16 %v1698_v20  ;;  %v7721_v29 = vld [vmem:[#allocation30_spill] sm:$0xff] }
 0x279   : > { %1498 = vrot.lane.b32.xlu0 %v5502_v56, %s3777_s11  ;;  %v1948_v53 = vunpack.c.l.b16 %v1702_v35  ;;  %v1690_v43 = vpack.c.bf16 %v5510_v63, %v5000_v17  ;;  %v1694_v31 = vpack.c.bf16 %v5512_v44, %v4998_v18  ;;  %v5530_v4 = vmax.f32 %v981_v30, 0.0 }
 0x27a   : > { %v1810_v58 = vpack.c.b16 %v1754_v14, %v1746_v52  ;;  %v1811_v48 = vpack.c.b16 %v1755_v5, %v1747_v45  ;;  %v5532_v6 = vmax.f32 %v989_v26, 0.0  ;;  %v1941_v33 = vunpack.c.h.b16 %v1698_v20 }
 0x27b   : > { %v1949_v9 = vunpack.c.h.b16 %v1702_v35  ;;  %v1988_v54 = vpack.c.b16 %v1948_v53, %v1940_v2  ;;  %v566_v13 = vmul.f32 %v5239_v8, %v7644_v21  ;;  %v1924_v12 = vunpack.c.l.b16 %v1690_v43  ;;  %v7722_v35 = vld [vmem:[#allocation56_spill] sm:$0xff]  ;;  %v7731_v2 = vld [vmem:[#allocation42_spill] sm:$0xff] }
 0x27c   : > { %2420 = vmatpush.bf16.msrb.mxu1 %v1810_v58  ;;  %2478 = vmatpush.bf16.msrb.mxu0 %v1811_v48  ;;  %v1932_v47 = vunpack.c.l.b16 %v1694_v31  ;;  %v1682_v34 = vpack.c.bf16 %v5530_v4, %v7719_v41  ;;  %v1686_v27 = vpack.c.bf16 %v5532_v6, %v7720_v57  ;;  %v1925_v21 = vunpack.c.h.b16 %v1690_v43  ;;  %v7723_v58 = vld [vmem:[#allocation49_spill] sm:$0xff] }
 0x27d   : > { %v1989_v19 = vpack.c.b16 %v1949_v9, %v1941_v33  ;;  %v1933_v51 = vunpack.c.h.b16 %v1694_v31  ;;  %v558_v7 = vmul.f32 %v5239_v8, %v7646_v24  ;;  %v662_v20 = vmul.f32 %v7721_v29, %v7649_v39  ;;  %v7730_v48 = vld [vmem:[#allocation41_spill] sm:$0xff]  ;;  %v7733_v31 = vld [vmem:[#allocation47_spill] sm:$0xff]  ;;  %v5648_v33 = vpop.f32.mrf.mxu1 }
 0x27e   : > { %v654_v25 = vmul.f32 %v7643_v11, %v7649_v39  ;;  %v1980_v24 = vpack.c.b16 %v1932_v47, %v1924_v12  ;;  %v1908_v8 = vunpack.c.l.b16 %v1682_v34  ;;  %v1909_v52 = vunpack.c.h.b16 %v1682_v34  ;;  %v7732_v43 = vld [vmem:[#allocation45_spill] sm:$0xff]  ;;  %7735 = vst [vmem:[#allocation15_spill] sm:$0xff] %v5648_v33  ;;  %v7739_v34 = vld [vmem:[#allocation31_spill] sm:$0xff] }
 0x27f   : > { %2421 = vmatmul.bf16.vlgmr.msrb.gmra.mxu1 %v5073_v46  ;;  %2479 = vmatmul.bf16.vlgmr.msrb.gmra.mxu0 %v5073_v46  ;;  %v726_v30 = vadd.f32 %v662_v20, %v566_v13  ;;  %v1981_v26 = vpack.c.b16 %v1933_v51, %v1925_v21  ;;  %v1917_v14 = vunpack.c.h.b16 %v1686_v27  ;;  %v7738_v13 = vld [vmem:[#allocation52_spill] sm:$0xff]  ;;  %v7741_v21 = vld [vmem:[#allocation73_spill] sm:$0xff]  ;;  %v7743_v20 = vld [vmem:[#allocation55_spill] sm:$0xff] }
 0x280   : > { %2529 = vmatpush.bf16.msra.mxu1 %v1996_v16  ;;  %2587 = vmatpush.bf16.msra.mxu0 %v1997_v50 }
 0x281   : > { %1176 = vrot.lane.b32.xlu1 %v7717_v23, %s3776_s30  ;;  %1178 = vrot.lane.b32.xlu2 %v7718_v55, %s3776_s30  ;;  %v830_v23 = vmul.f32 %v5302_v3, %v7712_v15  ;;  %v822_v55 = vmul.f32 %v5302_v3, %v4112_v36  ;;  %v718_v15 = vadd.f32 %v654_v25, %v558_v7  ;;  %v7742_v7 = vld [vmem:[#allocation70_spill] sm:$0xff] }
 0x282   : > { %1192 = vrot.lane.b32.xlu0 %v5461_v0, %s3776_s30  ;;  %3422 = vmatmul.msk.bf16.gmra.mxu3 %vm2284_vm2, %v7722_v35  ;;  %v1916_v0 = vunpack.c.l.b16 %v1686_v27  ;;  %v1973_v36 = vpack.c.b16 %v1917_v14, %v1909_v52 }
 0x283   : > { %3426 = vmatmul.msk.bf16.gmra.mxu2 %vm2284_vm2, %v7722_v35  ;;  %v894_v11 = vadd.f32 %v830_v23, %v726_v30  ;;  %v886_v39 = vadd.f32 %v822_v55, %v718_v15  ;;  %v7744_v23 = vld [vmem:[#allocation43_spill] sm:$0xff] }
 0x284   : > { %2530 = vmatpush.bf16.msra.mxu1 %v1988_v54  ;;  %2588 = vmatpush.bf16.msra.mxu0 %v1989_v19  ;;  %v1972_v45 = vpack.c.b16 %v1916_v0, %v1908_v8  ;;  %v5656_v54 = vpop.f32.mrf.mxu3 }
 0x285   : > { %v1006_v3 = vadd.f32 %v4420_v62, %v894_v11  ;;  %v998_v5 = vadd.f32 %v4355_v37, %v886_v39  ;;  %v7724_v62 = vld [vmem:[#allocation57_spill] sm:$0xff]  ;;  %v982_v37 = vadd.f32 %v4396_v61, %v5516_v49  ;;  %v7729_v49 = vld [vmem:[#allocation35_spill] sm:$0xff]  ;;  %7737 = vst [vmem:[#allocation22_spill] sm:$0xff] %v5656_v54  ;;  %v5681_v55 = vpop.f32.mrf.mxu1  ;;  %v7762_v54 = vld [vmem:[#allocation72_spill] sm:$0xff] }
 0x286   : > { %v5650_v9 = vpop.f32.mrf.mxu2  ;;  %7745 = vst [vmem:[#allocation14_spill] sm:$0xff] %v5681_v55 }
 0x287   : > { %v5570_v16 = vmax.f32 %v1006_v3, 0.0  ;;  %v5572_v50 = vmax.f32 %v998_v5, 0.0  ;;  %7736 = vst [vmem:[#allocation75_spill] sm:$0xff] %v5650_v9  ;;  %v2206_v3 = vld [vmem:[%s7248_s7 + $0x30] sm:$0xff]  ;;  %v2207_v5 = vld [vmem:[%s7248_s7 + $0x38] sm:$0xff] }
 0x288   : > { %2531 = vmatpush.bf16.msra.mxu1 %v1980_v24  ;;  %2589 = vmatpush.bf16.msra.mxu0 %v1981_v26 }
 0x289   : > { %1194 = vrot.lane.b32.xlu1 %v5484_v1, %s3776_s30  ;;  %1476 = vrot.lane.b32.xlu2 %v5510_v63, %s3777_s11  ;;  %v5594_v1 = vmax.f32 %v982_v37, 0.0 }
 0x28a   : > { %1478 = vrot.lane.b32.xlu0 %v5512_v44, %s3777_s11 }
 0x28c   : > { %2532 = vmatpush.bf16.msra.mxu1 %v1972_v45  ;;  %2590 = vmatpush.bf16.msra.mxu0 %v1973_v36  ;;  %v5691_v30 = vpop.f32.mrf.mxu3  ;;  %v7748_v45 = vld [vmem:[#allocation46_spill] sm:$0xff] }
 0x28d   : > { %7747 = vst [vmem:[#allocation27_spill] sm:$0xff] %v5691_v30 }
 0x28e   : > { %v5683_v24 = vpop.f32.mrf.mxu2 }
 0x28f   : > { %2426 = vmatmul.bf16.gmra.mxu1 %v7723_v58  ;;  %2484 = vmatmul.bf16.gmra.mxu0 %v7723_v58  ;;  %7746 = vst [vmem:[#allocation10_spill] sm:$0xff] %v5683_v24  ;;  %v7768_v24 = vld [vmem:[#allocation65_spill] sm:$0xff] }
 0x291   : > { %1494 = vrot.lane.b32.xlu2 %v5570_v16, %s3777_s11  ;;  %1492 = vrot.lane.b32.xlu1 %v5572_v50, %s3777_s11 }
 0x292   : > { %1172 = vrot.lane.b32.xlu0 %v5000_v17, %s3776_s30  ;;  %3423 = vmatmul.msk.bf16.gmra.mxu3 %vm2284_vm2, %v7724_v62  ;;  %v7725_v17 = vld [vmem:[#allocation68_spill] sm:$0xff] }
 0x293   : > { %3427 = vmatmul.msk.bf16.gmra.mxu2 %vm2284_vm2, %v7724_v62 }
 0x299   : > { %1188 = vrot.lane.b32.xlu2 %v5510_v63, %s3776_s30  ;;  %1174 = vrot.lane.b32.xlu1 %v4998_v18, %s3776_s30  ;;  %v990_v18 = vadd.f32 %v4410_v32, %v5518_v42  ;;  %v7726_v63 = vld [vmem:[#allocation23_spill] sm:$0xff]  ;;  %v7728_v32 = vld [vmem:[#allocation37_spill] sm:$0xff] }
 0x29a   : > { %1190 = vrot.lane.b32.xlu0 %v5512_v44, %s3776_s30  ;;  %v7727_v44 = vld [vmem:[#allocation64_spill] sm:$0xff] }
 0x29b   : > { %v5610_v61 = vmax.f32 %v990_v18, 0.0  ;;  %v2204_v18 = vld [vmem:[%s7248_s7 + $0x20] sm:$0xff] }
 0x29f   : > { %2431 = vmatmul.bf16.gmra.mxu1 %v7725_v17  ;;  %2489 = vmatmul.bf16.gmra.mxu0 %v7725_v17 }
 0x2a1   : > { %1474 = vrot.lane.b32.xlu2 %v5532_v6, %s3777_s11  ;;  %1472 = vrot.lane.b32.xlu1 %v5530_v4, %s3777_s11 }
 0x2a2   : > { %1488 = vrot.lane.b32.xlu0 %v5594_v1, %s3777_s11  ;;  %3424 = vmatmul.msk.bf16.gmra.mxu3 %vm2284_vm2, %v7726_v63 }
 0x2a3   : > { %3428 = vmatmul.msk.bf16.gmra.mxu2 %vm2284_vm2, %v7726_v63 }
 0x2a9   : > { %1168 = vrot.lane.b32.xlu2 %v7719_v41, %s3776_s30  ;;  %1490 = vrot.lane.b32.xlu1 %v5610_v61, %s3777_s11 }
 0x2aa   : > { %1170 = vrot.lane.b32.xlu0 %v7720_v57, %s3776_s30 }
 0x2af   : > { %2436 = vmatmul.bf16.gmra.mxu1 %v7727_v44  ;;  %2494 = vmatmul.bf16.gmra.mxu0 %v7727_v44  ;;  %v5733_v55 = vpop.f32.mrf.mxu3 }
 0x2b0   : > { %7755 = vst [vmem:[#allocation17_spill] sm:$0xff] %v5733_v55 }
 0x2b1   : > { %1186 = vrot.lane.b32.xlu2 %v5532_v6, %s3776_s30  ;;  %1184 = vrot.lane.b32.xlu1 %v5530_v4, %s3776_s30  ;;  %v5646_v6 = vpop.f32.mrf.mxu0 }
 0x2b2   : > { %1516 = vrot.lane.b32.xlu0 %v7728_v32, %s3777_s11  ;;  %7734 = vst [vmem:[#allocation13_spill] sm:$0xff] %v5646_v6 }
 0x2b9   : > { %1212 = vrot.lane.b32.xlu2 %v5358_v28, %s3776_s30  ;;  %1518 = vrot.lane.b32.xlu1 %v7729_v49, %s3777_s11  ;;  %v5670_v19 = vpop.f32.mrf.mxu0 }
 0x2ba   : > { %1214 = vrot.lane.b32.xlu0 %v5414_v10, %s3776_s30  ;;  %v1487_v42 = vpop.permute.xlu2 %1486  ;;  %7740 = vst [vmem:[#allocation71_spill] sm:$0xff] %v5670_v19 }
 0x2bb   : > { %v1543_v25 = vsel %vm446_vm1, %v7744_v23, %v1487_v42 }
 0x2bc   : > { %v1644_v15 = vmul.f32 %v1543_v25, %v7741_v21  ;;  %v7751_v25 = vld [vmem:[#allocation21_spill] sm:$0xff] }
 0x2c1   : > { %1514 = vrot.lane.b32.xlu2 %v7730_v48, %s3777_s11  ;;  %1512 = vrot.lane.b32.xlu1 %v7731_v2, %s3777_s11 }
 0x2c2   : > { %1208 = vrot.lane.b32.xlu0 %v5504_v22, %s3776_s30  ;;  %v1181_v53 = vpop.permute.xlu2 %1180 }
 0x2c9   : > { %1508 = vrot.lane.b32.xlu2 %v7732_v43, %s3777_s11  ;;  %1210 = vrot.lane.b32.xlu1 %v5502_v56, %s3776_s30 }
 0x2ca   : > { %1510 = vrot.lane.b32.xlu0 %v7733_v31, %s3777_s11  ;;  %v5644_v4 = vpop.permute.xlu2 %1198 }
 0x2d1   : > { %1206 = vrot.lane.b32.xlu2 %v5570_v16, %s3776_s30  ;;  %1204 = vrot.lane.b32.xlu1 %v5572_v50, %s3776_s30 }
 0x2d2   : > { %1504 = vrot.lane.b32.xlu0 %v7738_v13, %s3777_s11  ;;  %v1485_v12 = vpop.permute.xlu1 %1484  ;;  %v5660_v47 = vpop.permute.xlu2 %1496 }
 0x2d3   : > { %v5662_v41 = vpop.permute.xlu0 %1500  ;;  %v1542_v57 = vsel %vm446_vm1, %v7739_v34, %v1485_v12 }
 0x2d4   : > { %v1534_v27 = vsel %vm446_vm1, %v1485_v12, %v5662_v41  ;;  %v1636_v51 = vmul.f32 %v1542_v57, %v7741_v21 }
 0x2d5   : > { %v1637_v29 = vmul.f32 %v1534_v27, %v7742_v7  ;;  %v7749_v27 = vld [vmem:[#allocation69_spill] sm:$0xff] }
 0x2d7   : > { %v1674_v26 = vpack.c.bf16 %v1637_v29, %v1636_v51  ;;  %v7750_v29 = vld [vmem:[#allocation59_spill] sm:$0xff] }
 0x2d9   : > { %1506 = vrot.lane.b32.xlu1 %v7743_v20, %s3777_s11  ;;  %1200 = vrot.lane.b32.xlu2 %v5594_v1, %s3776_s30  ;;  %v2117_v12 = vunpack.c.h.b16 %v1674_v26 }
 0x2da   : > { %1202 = vrot.lane.b32.xlu0 %v5610_v61, %s3776_s30  ;;  %v5687_v8 = vpop.permute.xlu1 %1502  ;;  %s349_s30 = sand.u32 1, %s3763_s14  }
 0x2db   : > { %v5689_v0 = vpop.permute.xlu2 %1178  ;;  %v1535_v52 = vsel %vm446_vm1, %v1487_v42, %v5687_v8  ;;  %v1183_v14 = vpop.permute.xlu0 %1182  ;;  %v2116_v42 = vunpack.c.l.b16 %v1674_v26  ;;  %s3379_s12 = sshll.u32 %s349_s30, 3  ;;  %s3304_s29 = scalar_lea.sflag [#allocation3], %s349_s30 }
 0x2dc   : > { %v1645_v11 = vmul.f32 %v1535_v52, %v7742_v7  ;;  %v1255_v39 = vsel %vm396_vm0, %v1183_v14, %v5644_v4  ;;  %v1263_v36 = vsel %vm396_vm0, %v7748_v45, %v1183_v14  ;;  %v1262_v52 = vsel %vm396_vm0, %v7751_v25, %v1181_v53  ;;  %v5718_v14 = vpop.f32.mrf.mxu0  ;;  %s351_s26 = scalar_lea.vmem [#allocation2], %s3379_s12 }
 0x2dd   : > { %v1356_v51 = vmul.f32 %v1263_v36, %v7749_v27  ;;  %v1357_v23 = vmul.f32 %v1255_v39, %v7750_v29  ;;  %7752 = vst [vmem:[#allocation18_spill] sm:$0xff] %v5718_v14  ;;  %s3316_s27 = sshll.u32 %s351_s26, 4  ;;  %s3317_s27 = int_to_ptr.vmem [resolvable:$true] %s3316_s27 }
 0x2de   : > { %v1678_v37 = vpack.c.bf16 %v1645_v11, %v1644_v15 }
 0x2df   : > { %v1390_v25 = vpack.c.bf16 %v1357_v23, %v1356_v51  ;;  %v2203_v23 = vld [vmem:[%s7248_s7 + $0x18] sm:$0xff] }
 0x2e0   : > { %v2124_v34 = vunpack.c.l.b16 %v1678_v37  ;;  %v2125_v57 = vunpack.c.h.b16 %v1678_v37  ;;  %v5724_v37 = vpop.f32.mrf.mxu1 }
 0x2e1   : > { %2240 = vperm.xlu1 %3544, %v2206_v3   ;;  %2245 = vperm.xlu2 %3545, %v2207_v5   ;;  %7753 = vst [vmem:[#allocation19_spill] sm:$0xff] %v5724_v37  ;;  %v1348_v3 = vmul.f32 %v1262_v52, %v7749_v27  ;;  %v5730_v5 = vpop.f32.mrf.mxu2 }
 0x2e2   : > { %2230 = vperm.xlu0 %3536, %v2204_v18   ;;  %v5720_v15 = vpop.permute.xlu1 %1196  ;;  %v2156_v26 = vpack.c.b16 %v2124_v34, %v2116_v42  ;;  %v2157_v45 = vpack.c.b16 %v2125_v57, %v2117_v12  ;;  %7754 = vst [vmem:[#allocation12_spill] sm:$0xff] %v5730_v5  ;;  %v2205_v42 = vld [vmem:[%s7248_s7 + $0x28] sm:$0xff]  ;;  %v7756_v57 = vld [vmem:[#allocation51_spill] sm:$0xff] }
 0x2e3   : > { %v5722_v11 = vpop.permute.xlu2 %1476  ;;  %v1254_v39 = vsel %vm396_vm0, %v1181_v53, %v5720_v15  ;;  %v1481_v36 = vpop.permute.xlu0 %1480  ;;  %v2202_v53 = vld [vmem:[%s7248_s7 + $0x10] sm:$0xff] }
 0x2e4   : > { %v1349_v18 = vmul.f32 %v1254_v39, %v7750_v29  ;;  %2562 = vmatpush.bf16.msra.mxu3 %v2156_v26  ;;  %2620 = vmatpush.bf16.msra.mxu2 %v2157_v45  ;;  %v1532_v34 = vsel %vm446_vm1, %v1481_v36, %v5660_v47  ;;  %v1540_v51 = vsel %vm446_vm1, %v7756_v57, %v1481_v36  ;;  %v1804_v26 = vunpack.c.l.b16 %v1390_v25  ;;  %v7757_v57 = vld [vmem:[#allocation6_spill] sm:$0xff] }
 0x2e5   : > { %v1805_v39 = vunpack.c.h.b16 %v1390_v25 }
 0x2e6   : > { %v1386_v12 = vpack.c.bf16 %v1349_v18, %v1348_v3  ;;  %v1620_v3 = vmul.f32 %v1540_v51, %v7741_v21  ;;  %v1621_v18 = vmul.f32 %v1532_v34, %v7742_v7 }
 0x2e8   : > { %v1796_v52 = vunpack.c.l.b16 %v1386_v12  ;;  %v1797_v45 = vunpack.c.h.b16 %v1386_v12  ;;  %v5765_v34 = vpop.f32.mrf.mxu1  ;;  %v1666_v51 = vpack.c.bf16 %v1621_v18, %v1620_v3 }
 0x2e9   : > { %2235 = vperm.xlu1 %3544, %v2205_v42   ;;  %2220 = vperm.xlu2 %3545, %v2202_v53   ;;  %v5759_v53 = vpop.f32.mrf.mxu0  ;;  %7759 = vst [vmem:[#allocation76_spill] sm:$0xff] %v5765_v34 }
 0x2ea   : > { %2225 = vperm.xlu0 %3536, %v2203_v23   ;;  %v1483_v33 = vpop.permute.xlu1 %1482  ;;  %v1836_v6 = vpack.c.b16 %v1804_v26, %v1796_v52  ;;  %v1837_v36 = vpack.c.b16 %v1805_v39, %v1797_v45  ;;  %7758 = vst [vmem:[#allocation28_spill] sm:$0xff] %v5759_v53  ;;  %v2200_v52 = vld [vmem:[%s7248_s7] sm:$0xff]  ;;  %v2201_v26 = vld [vmem:[%s7248_s7 + $0x8] sm:$0xff]  ;;  %v5776_v45 = vpop.f32.mrf.mxu3  ;;  %v2101_v3 = vunpack.c.h.b16 %v1666_v51 }
 0x2eb   : > { %v5752_v19 = vpop.permute.xlu2 %1494  ;;  %v1541_v37 = vsel %vm446_vm1, %v7757_v57, %v1483_v33  ;;  %v5757_v42 = vpop.permute.xlu0 %1498  ;;  %7761 = vst [vmem:[#allocation36_spill] sm:$0xff] %v5776_v45 }
 0x2ec   : > { %v1628_v25 = vmul.f32 %v1541_v37, %v7741_v21  ;;  %v1533_v12 = vsel %vm446_vm1, %v1483_v33, %v5757_v42  ;;  %2533 = vmatpush.bf16.msra.mxu1 %v1836_v6  ;;  %2591 = vmatpush.bf16.msra.mxu0 %v1837_v36  ;;  %v5774_v37 = vpop.f32.mrf.mxu2  ;;  %v2100_v6 = vunpack.c.l.b16 %v1666_v51 }
 0x2ed   : > { %v1629_v23 = vmul.f32 %v1533_v12, %v7742_v7  ;;  %7760 = vst [vmem:[#allocation79_spill] sm:$0xff] %v5774_v37 }
 0x2ef   : > { %v1670_v33 = vpack.c.bf16 %v1629_v23, %v1628_v25 }
 0x2f0   : > { %v5790_v51 = vpop.f32.mrf.mxu1 }
 0x2f1   : > { %2210 = vperm.xlu1 %3544, %v2200_v52   ;;  %2215 = vperm.xlu2 %3545, %v2201_v26   ;;  %v2108_v39 = vunpack.c.l.b16 %v1670_v33  ;;  %v2109_v18 = vunpack.c.h.b16 %v1670_v33  ;;  %v5788_v23 = vpop.f32.mrf.mxu0  ;;  %7764 = vst [vmem:[#allocation38_spill] sm:$0xff] %v5790_v51 }
 0x2f2   : > { %7763 = vst [vmem:[#allocation34_spill] sm:$0xff] %v5788_v23 }
 0x2f3   : > { %v1177_v36 = vpop.permute.xlu1 %1176  ;;  %v5778_v57 = vpop.permute.xlu2 %1188  ;;  %v2148_v30 = vpack.c.b16 %v2108_v39, %v2100_v6  ;;  %v2149_v34 = vpack.c.b16 %v2109_v18, %v2101_v3  ;;  %v7766_v6 = vld [vmem:[#allocation20_spill] sm:$0xff] }
 0x2f4   : > { %v5780_v12 = vpop.permute.xlu0 %1192  ;;  %v1260_v14 = vsel %vm396_vm0, %v7762_v54, %v1177_v36  ;;  %v5794_v33 = vpop.f32.mrf.mxu2  ;;  %v1261_v54 = vsel %vm396_vm0, %v7766_v6, %v5689_v0 }
 0x2f5   : > { %v1252_v25 = vsel %vm396_vm0, %v1177_v36, %v5780_v12  ;;  %2563 = vmatpush.bf16.msra.mxu3 %v2148_v30  ;;  %2621 = vmatpush.bf16.msra.mxu2 %v2149_v34  ;;  %v1332_v52 = vmul.f32 %v1260_v14, %v7749_v27  ;;  %7765 = vst [vmem:[#allocation32_spill] sm:$0xff] %v5794_v33  ;;  %v5800_v39 = vpop.f32.mrf.mxu3 }
 0x2f6   : > { %v1333_v26 = vmul.f32 %v1252_v25, %v7750_v29  ;;  %7767 = vst [vmem:[#allocation40_spill] sm:$0xff] %v5800_v39  ;;  %v1340_v36 = vmul.f32 %v1261_v54, %v7749_v27 }
 0x2f8   : > { %v1378_v34 = vpack.c.bf16 %v1333_v26, %v1332_v52  ;;  %v5826_v37 = vpop.f32.mrf.mxu1 }
 0x2f9   : > { %v5818_v55 = vpop.f32.mrf.mxu0  ;;  %7771 = vst [vmem:[#allocation80_spill] sm:$0xff] %v5826_v37 }
 0x2fa   : > { %v1780_v52 = vunpack.c.l.b16 %v1378_v34  ;;  %v1781_v26 = vunpack.c.h.b16 %v1378_v34  ;;  %7769 = vst [vmem:[#allocation81_spill] sm:$0xff] %v5818_v55 }
 0x2fb   : > { %v5802_v3 = vpop.permute.xlu1 %1194  ;;  %v5804_v30 = vpop.permute.xlu2 %1474 }
 0x2fc   : > { %v1253_v14 = vsel %vm396_vm0, %v5689_v0, %v5802_v3  ;;  %v1479_v18 = vpop.permute.xlu0 %1478  ;;  %v5828_v51 = vpop.f32.mrf.mxu2 }
 0x2fd   : > { %v1341_v25 = vmul.f32 %v1253_v14, %v7750_v29  ;;  %v1531_v6 = vsel %vm446_vm1, %v1479_v18, %v5752_v19  ;;  %v1539_v53 = vsel %vm446_vm1, %v7768_v24, %v1479_v18  ;;  %v7770_v14 = vld [vmem:[#allocation7_spill] sm:$0xff]  ;;  %7772 = vst [vmem:[#allocation74_spill] sm:$0xff] %v5828_v51  ;;  %v7777_v51 = vld [vmem:[#allocation9_spill] sm:$0xff] }
 0x2fe   : > { %v1612_v0 = vmul.f32 %v1539_v53, %v7741_v21  ;;  %v1613_v45 = vmul.f32 %v1531_v6, %v7742_v7  ;;  %v1538_v44 = vsel %vm446_vm1, %v7770_v14, %v5722_v11 }
 0x2ff   : > { %v1382_v9 = vpack.c.bf16 %v1341_v25, %v1340_v36  ;;  %v5832_v36 = vpop.f32.mrf.mxu3  ;;  %v1604_v25 = vmul.f32 %v1538_v44, %v7741_v21 }
 0x300   : > { %7773 = vst [vmem:[#allocation26_spill] sm:$0xff] %v5832_v36  ;;  %v1662_v6 = vpack.c.bf16 %v1613_v45, %v1612_v0 }
 0x301   : > { %v1788_v54 = vunpack.c.l.b16 %v1382_v9  ;;  %v1789_v5 = vunpack.c.h.b16 %v1382_v9 }
 0x302   : > { %v2093_v44 = vunpack.c.h.b16 %v1662_v6 }
 0x303   : > { %v5830_v24 = vpop.permute.xlu1 %1492  ;;  %v1828_v34 = vpack.c.b16 %v1788_v54, %v1780_v52  ;;  %v1829_v18 = vpack.c.b16 %v1789_v5, %v1781_v26  ;;  %v5839_v14 = vpop.permute.xlu2 %1168  ;;  %v7774_v52 = vld [vmem:[#allocation8_spill] sm:$0xff]  ;;  %v2092_v54 = vunpack.c.l.b16 %v1662_v6 }
 0x304   : > { %v1530_v9 = vsel %vm446_vm1, %v5722_v11, %v5830_v24  ;;  %v1173_v53 = vpop.permute.xlu0 %1172 }
 0x305   : > { %v1605_v37 = vmul.f32 %v1530_v9, %v7742_v7  ;;  %2534 = vmatpush.bf16.msra.mxu1 %v1828_v34  ;;  %2592 = vmatpush.bf16.msra.mxu0 %v1829_v18  ;;  %v1250_v5 = vsel %vm396_vm0, %v1173_v53, %v5778_v57  ;;  %v1258_v26 = vsel %vm396_vm0, %v7774_v52, %v1173_v53  ;;  %v5850_v9 = vpop.f32.mrf.mxu0 }
 0x306   : > { %v1316_v45 = vmul.f32 %v1258_v26, %v7749_v27  ;;  %v1317_v0 = vmul.f32 %v1250_v5, %v7750_v29  ;;  %7775 = vst [vmem:[#allocation30_spill] sm:$0xff] %v5850_v9  ;;  %v5863_v5 = vpop.f32.mrf.mxu2 }
 0x307   : > { %v1658_v55 = vpack.c.bf16 %v1605_v37, %v1604_v25  ;;  %v5852_v25 = vpop.f32.mrf.mxu1  ;;  %7778 = vst [vmem:[#allocation49_spill] sm:$0xff] %v5863_v5  ;;  %v5865_v52 = vpop.f32.mrf.mxu3 }
 0x308   : > { %7776 = vst [vmem:[#allocation56_spill] sm:$0xff] %v5852_v25  ;;  %v7780_v25 = vld [vmem:[#allocation16_spill] sm:$0xff] }
 0x309   : > { %v2084_v11 = vunpack.c.l.b16 %v1658_v55  ;;  %v2085_v36 = vunpack.c.h.b16 %v1658_v55  ;;  %7779 = vst [vmem:[#allocation57_spill] sm:$0xff] %v5865_v52 }
 0x30b   : > { %v1175_v34 = vpop.permute.xlu1 %1174  ;;  %v2140_v37 = vpack.c.b16 %v2092_v54, %v2084_v11  ;;  %v2141_v18 = vpack.c.b16 %v2093_v44, %v2085_v36  ;;  %v1370_v36 = vpack.c.bf16 %v1317_v0, %v1316_v45  ;;  %v5868_v11 = vpop.permute.xlu2 %1186 }
 0x30c   : > { %v1259_v39 = vsel %vm396_vm0, %v7777_v51, %v1175_v34  ;;  %v5857_v53 = vpop.permute.xlu0 %1190 }
 0x30d   : > { %v1324_v55 = vmul.f32 %v1259_v39, %v7749_v27  ;;  %v1251_v6 = vsel %vm396_vm0, %v1175_v34, %v5857_v53  ;;  %2564 = vmatpush.bf16.msra.mxu3 %v2140_v37  ;;  %2622 = vmatpush.bf16.msra.mxu2 %v2141_v18  ;;  %v1764_v54 = vunpack.c.l.b16 %v1370_v36  ;;  %v1765_v34 = vunpack.c.h.b16 %v1370_v36  ;;  %v5872_v37 = vpop.f32.mrf.mxu0 }
 0x30e   : > { %v1325_v26 = vmul.f32 %v1251_v6, %v7750_v29  ;;  %v5882_v6 = vpop.f32.mrf.mxu2 }
 0x30f   : > { %v5874_v18 = vpop.f32.mrf.mxu1 }
 0x310   : > { %v1374_v51 = vpack.c.bf16 %v1325_v26, %v1324_v55  ;;  %v5884_v26 = vpop.f32.mrf.mxu3 }
 0x312   : > { %v1772_v44 = vunpack.c.l.b16 %v1374_v51  ;;  %v1773_v63 = vunpack.c.h.b16 %v1374_v51 }
 0x313   : > { %v1473_v39 = vpop.permute.xlu1 %1472  ;;  %v5886_v36 = vpop.permute.xlu2 %1212 }
 0x314   : > { %v5870_v23 = vpop.permute.xlu0 %1488  ;;  %v1820_v33 = vpack.c.b16 %v1772_v44, %v1764_v54  ;;  %v1536_v45 = vsel %vm446_vm1, %v7780_v25, %v1473_v39  ;;  %v1821_v55 = vpack.c.b16 %v1773_v63, %v1765_v34  ;;  %v7781_v44 = vld [vmem:[#allocation66_spill] sm:$0xff]  ;;  %v1707_v63 = vpack.c.bf16 %v7728_v32, %v5358_v28 }
 0x315   : > { %v1528_v0 = vsel %vm446_vm1, %v1473_v39, %v5870_v23  ;;  %v1588_v51 = vmul.f32 %v1536_v45, %v7741_v21  ;;  %v1537_v25 = vsel %vm446_vm1, %v7781_v44, %v5804_v30 }
 0x316   : > { %2535 = vmatpush.bf16.msra.mxu1 %v1820_v33  ;;  %2593 = vmatpush.bf16.msra.mxu0 %v1821_v55  ;;  %v1589_v54 = vmul.f32 %v1528_v0, %v7742_v7  ;;  %v1711_v33 = vpack.c.bf16 %v7729_v49, %v5414_v10  ;;  %v1596_v45 = vmul.f32 %v1537_v25, %v7741_v21  ;;  %v5912_v10 = vpop.f32.mrf.mxu0 }
 0x317   : > { %7782 = vst [vmem:[#allocation68_spill] sm:$0xff] %v5912_v10  ;;  %v5914_v49 = vpop.f32.mrf.mxu1 }
 0x318   : > { %v1650_v0 = vpack.c.bf16 %v1589_v54, %v1588_v51  ;;  %7783 = vst [vmem:[#allocation37_spill] sm:$0xff] %v5914_v49  ;;  %v1958_v51 = vunpack.c.l.b16 %v1707_v63  ;;  %v1966_v54 = vunpack.c.l.b16 %v1711_v33  ;;  %v1959_v49 = vunpack.c.h.b16 %v1707_v63 }
 0x319   : > { %v1967_v5 = vunpack.c.h.b16 %v1711_v33 }
 0x31b   : > { %v5894_v52 = vpop.permute.xlu1 %1490 }
 0x31c   : > { %v1529_v39 = vsel %vm446_vm1, %v5804_v30, %v5894_v52  ;;  %v1171_v34 = vpop.permute.xlu0 %1170 }
 0x31d   : > { %v1597_v55 = vmul.f32 %v1529_v39, %v7742_v7  ;;  %v1249_v44 = vsel %vm396_vm0, %v1171_v34, %v5868_v11  ;;  %v1257_v28 = vsel %vm396_vm0, %v5488_v38, %v1171_v34  ;;  %v2068_v7 = vunpack.c.l.b16 %v1650_v0  ;;  %v5922_v34 = vpop.f32.mrf.mxu3 }
 0x31e   : > { %v1308_v30 = vmul.f32 %v1257_v28, %v7749_v27  ;;  %v1309_v21 = vmul.f32 %v1249_v44, %v7750_v29  ;;  %v2069_v39 = vunpack.c.h.b16 %v1650_v0  ;;  %v1256_v38 = vsel %vm396_vm0, %v5442_v59, %v5839_v14  ;;  %7784 = vst [vmem:[#allocation35_spill] sm:$0xff] %v5922_v34  ;;  %v1515_v28 = vpop.permute.xlu2 %1514 }
 0x31f   : > { %v1654_v32 = vpack.c.bf16 %v1597_v55, %v1596_v45  ;;  %v5924_v45 = vpop.f32.mrf.mxu2  ;;  %v5928_v55 = vpack.c.bf16 %v7731_v2, %v5504_v22  ;;  %v5932_v44 = vpack.c.bf16 %v7730_v48, %v5502_v56  ;;  %v1998_v22 = vpack.c.b16 %v1966_v54, %v1958_v51  ;;  %v5970_v51 = vpop.f32.mrf.mxu0  ;;  %v7788_v54 = vld [vmem:[#allocation25_spill] sm:$0xff] }
 0x320   : > { %7785 = vst [vmem:[#allocation41_spill] sm:$0xff] %v5924_v45  ;;  %v1366_v59 = vpack.c.bf16 %v1309_v21, %v1308_v30  ;;  %v1300_v2 = vmul.f32 %v1256_v38, %v7749_v27  ;;  %v5944_v48 = vpack.c.bf16 %v7732_v43, %v5572_v50  ;;  %v1999_v50 = vpack.c.b16 %v1967_v5, %v1959_v49  ;;  %v7787_v5 = vld [vmem:[#allocation11_spill] sm:$0xff] }
 0x321   : > { %v2076_v25 = vunpack.c.l.b16 %v1654_v32  ;;  %v2077_v9 = vunpack.c.h.b16 %v1654_v32  ;;  %v1942_v27 = vunpack.c.l.b16 %v5928_v55  ;;  %v5960_v43 = vpack.c.bf16 %v7738_v13, %v5594_v1 }
 0x322   : > { %v1951_v21 = vunpack.c.h.b16 %v5932_v44  ;;  %v1927_v38 = vunpack.c.h.b16 %v5944_v48 }
 0x323   : > { %v5934_v0 = vpop.permute.xlu1 %1184  ;;  %v2132_v32 = vpack.c.b16 %v2076_v25, %v2068_v7  ;;  %v2133_v10 = vpack.c.b16 %v2077_v9, %v2069_v39  ;;  %v5948_v9 = vpack.c.bf16 %v7733_v31, %v5570_v16  ;;  %v5964_v16 = vpack.c.bf16 %v7743_v20, %v5610_v61  ;;  %v5976_v20 = vpop.f32.mrf.mxu1 }
 0x324   : > { %v1248_v45 = vsel %vm396_vm0, %v5839_v14, %v5934_v0  ;;  %v1517_v34 = vpop.permute.xlu0 %1516  ;;  %v7786_v14 = vld [vmem:[#allocation48_spill] sm:$0xff]  ;;  %v1756_v31 = vunpack.c.l.b16 %v1366_v59  ;;  %v1926_v25 = vunpack.c.l.b16 %v5944_v48  ;;  %v1525_v48 = vsel %vm446_vm1, %v5757_v42, %v1515_v28 }
 0x325   : > { %v1301_v56 = vmul.f32 %v1248_v45, %v7750_v29  ;;  %2565 = vmatpush.bf16.msra.mxu3 %v2132_v32  ;;  %v1526_v63 = vsel %vm446_vm1, %v5662_v41, %v1517_v34  ;;  %v1582_v33 = vsel %vm446_vm1, %v1517_v34, %v7786_v14  ;;  %2623 = vmatpush.bf16.msra.mxu2 %v2133_v10  ;;  %v1950_v29 = vunpack.c.l.b16 %v5932_v44  ;;  %v7789_v34 = vld [vmem:[#allocation50_spill] sm:$0xff]  ;;  %v7790_v14 = vld [vmem:[#allocation44_spill] sm:$0xff] }
 0x326   : > { %v1757_v41 = vunpack.c.h.b16 %v1366_v59  ;;  %v1943_v10 = vunpack.c.h.b16 %v5928_v55  ;;  %v1638_v49 = vmul.f32 %v1526_v63, %v7787_v5  ;;  %v1639_v1 = vmul.f32 %v1582_v33, %v7788_v54 }
 0x327   : > { %v1362_v30 = vpack.c.bf16 %v1301_v56, %v1300_v2  ;;  %v1990_v7 = vpack.c.b16 %v1950_v29, %v1942_v27  ;;  %v1934_v39 = vunpack.c.l.b16 %v5948_v9  ;;  %v1238_v45 = vsel %vm396_vm0, %v5886_v36, %v7789_v34  ;;  %v5986_v2 = vpop.f32.mrf.mxu3  ;;  %v6001_v27 = vpop.f32.mrf.mxu2  ;;  %v7791_v29 = vld [vmem:[#allocation53_spill] sm:$0xff] }
 0x328   : > { %3429 = vmatmul.msk.bf16.vlgmr.msra.gmra.mxu3 %vm2284_vm2, %v5080_v60  ;;  %3433 = vmatmul.msk.bf16.vlgmr.msra.gmra.mxu2 %vm2284_vm2, %v5080_v60  ;;  %v1935_v59 = vunpack.c.h.b16 %v5948_v9  ;;  %v1246_v56 = vsel %vm396_vm0, %v5720_v15, %v5886_v36  ;;  %v1509_v15 = vpop.permute.xlu2 %1508  ;;  %v1675_v36 = vpack.c.bf16 %v1639_v1, %v1638_v49  ;;  %v7793_v1 = vld [vmem:[#allocation61_spill] sm:$0xff] }
 0x329   : > { %v1748_v61 = vunpack.c.l.b16 %v1362_v30  ;;  %v1749_v13 = vunpack.c.h.b16 %v1362_v30  ;;  %v1581_v30 = vsel %vm446_vm1, %v1515_v28, %v7791_v29  ;;  %v1918_v28 = vunpack.c.l.b16 %v5964_v16 }
 0x32a   : > { %v1630_v29 = vmul.f32 %v1525_v48, %v7787_v5 }
 0x32b   : > { %v1519_v55 = vpop.permute.xlu1 %1518  ;;  %v1812_v44 = vpack.c.b16 %v1756_v31, %v1748_v61  ;;  %v1813_v32 = vpack.c.b16 %v1757_v41, %v1749_v13  ;;  %v7792_v41 = vld [vmem:[#allocation54_spill] sm:$0xff]  ;;  %v1910_v13 = vunpack.c.l.b16 %v5960_v43 }
 0x32c   : > { %v1527_v63 = vsel %vm446_vm1, %v5687_v8, %v1519_v55  ;;  %v1583_v33 = vsel %vm446_vm1, %v1519_v55, %v7790_v14  ;;  %v1215_v9 = vpop.permute.xlu0 %1214  ;;  %v7794_v55 = vld [vmem:[#allocation24_spill] sm:$0xff]  ;;  %v1350_v14 = vmul.f32 %v1246_v56, %v7793_v1 }
 0x32d   : > { %v1646_v31 = vmul.f32 %v1527_v63, %v7787_v5  ;;  %v1647_v42 = vmul.f32 %v1583_v33, %v7788_v54  ;;  %2536 = vmatpush.bf16.msra.mxu1 %v1812_v44  ;;  %v1239_v8 = vsel %vm396_vm0, %v1215_v9, %v7792_v41  ;;  %v1247_v61 = vsel %vm396_vm0, %v5644_v4, %v1215_v9 }
 0x32e   : > { %2594 = vmatpush.bf16.msra.mxu0 %v1813_v32  ;;  %v1358_v34 = vmul.f32 %v1247_v61, %v7793_v1  ;;  %v1359_v63 = vmul.f32 %v1239_v8, %v7794_v55  ;;  %v1991_v44 = vpack.c.b16 %v1951_v21, %v1943_v10  ;;  %v1351_v33 = vmul.f32 %v1238_v45, %v7794_v55  ;;  %v6026_v21 = vpop.f32.mrf.mxu0  ;;  %v6028_v8 = vpop.f32.mrf.mxu1 }
 0x32f   : > { %v1679_v49 = vpack.c.bf16 %v1647_v42, %v1646_v31  ;;  %v1631_v4 = vmul.f32 %v1581_v30, %v7788_v54  ;;  %v2119_v32 = vunpack.c.h.b16 %v1675_v36  ;;  %v1919_v10 = vunpack.c.h.b16 %v5964_v16 }
 0x330   : > { %2537 = vmatmul.bf16.vlgmr.msra.gmra.mxu1 %v5073_v46  ;;  %v1391_v45 = vpack.c.bf16 %v1359_v63, %v1358_v34  ;;  %v1982_v42 = vpack.c.b16 %v1934_v39, %v1926_v25  ;;  %v1387_v41 = vpack.c.bf16 %v1351_v33, %v1350_v14  ;;  %v1983_v61 = vpack.c.b16 %v1935_v59, %v1927_v38  ;;  %v6038_v39 = vpop.f32.mrf.mxu3  ;;  %v6046_v59 = vpop.f32.mrf.mxu2 }
 0x331   : > { %2645 = vmatpush.bf16.msrb.mxu1 %v1998_v22  ;;  %v2118_v22 = vunpack.c.l.b16 %v1675_v36  ;;  %v2126_v9 = vunpack.c.l.b16 %v1679_v49  ;;  %v2127_v31 = vunpack.c.h.b16 %v1679_v49  ;;  %2595 = vmatmul.bf16.vlgmr.msra.gmra.mxu0 %v5073_v46  ;;  %v1671_v49 = vpack.c.bf16 %v1631_v4, %v1630_v29  ;;  %v1207_v29 = vpop.permute.xlu2 %1206 }
 0x332   : > { %2703 = vmatpush.bf16.msrb.mxu0 %v1999_v50  ;;  %v1911_v50 = vunpack.c.h.b16 %v5960_v43  ;;  %v1974_v25 = vpack.c.b16 %v1918_v28, %v1910_v13  ;;  %v1522_v33 = vsel %vm446_vm1, %v5830_v24, %v1509_v15  ;;  %v7797_v13 = vld [vmem:[#allocation67_spill] sm:$0xff] }
 0x333   : > { %v1513_v56 = vpop.permute.xlu1 %1512  ;;  %v2158_v48 = vpack.c.b16 %v2126_v9, %v2118_v22  ;;  %v2159_v30 = vpack.c.b16 %v2127_v31, %v2119_v32  ;;  %v1578_v28 = vsel %vm446_vm1, %v1509_v15, %v7797_v13  ;;  %v1806_v22 = vunpack.c.l.b16 %v1391_v45 }
 0x334   : > { %v1524_v36 = vsel %vm446_vm1, %v5660_v47, %v1513_v56  ;;  %v1209_v16 = vpop.permute.xlu0 %1208  ;;  %v1975_v38 = vpack.c.b16 %v1919_v10, %v1911_v50  ;;  %v1798_v9 = vunpack.c.l.b16 %v1387_v41  ;;  %v1807_v31 = vunpack.c.h.b16 %v1391_v45 }
 0x335   : > { %2646 = vmatpush.bf16.msrb.mxu1 %v1990_v7  ;;  %v7795_v7 = vld [vmem:[#allocation58_spill] sm:$0xff]  ;;  %v1622_v34 = vmul.f32 %v1524_v36, %v7787_v5  ;;  %2678 = vmatpush.bf16.msrb.mxu3 %v2158_v48  ;;  %v1244_v47 = vsel %vm396_vm0, %v5780_v12, %v1209_v16  ;;  %v2110_v50 = vunpack.c.l.b16 %v1671_v49  ;;  %v2111_v15 = vunpack.c.h.b16 %v1671_v49 }
 0x336   : > { %2704 = vmatpush.bf16.msrb.mxu0 %v1991_v44  ;;  %v1580_v43 = vsel %vm446_vm1, %v1513_v56, %v7795_v7  ;;  %v7796_v44 = vld [vmem:[#allocation60_spill] sm:$0xff]  ;;  %2736 = vmatpush.bf16.msrb.mxu2 %v2159_v30  ;;  %v1334_v32 = vmul.f32 %v1244_v47, %v7793_v1  ;;  %v1606_v56 = vmul.f32 %v1522_v33, %v7787_v5  ;;  %v7798_v30 = vld [vmem:[#allocation5_spill] sm:$0xff]  ;;  %v1799_v36 = vunpack.c.h.b16 %v1387_v41  ;;  %v7800_v33 = vld [vmem:[#allocation62_spill] sm:$0xff] }
 0x337   : > { %v1623_v63 = vmul.f32 %v1580_v43, %v7788_v54  ;;  %v1236_v14 = vsel %vm396_vm0, %v1209_v16, %v7796_v44  ;;  %v1607_v48 = vmul.f32 %v1578_v28, %v7788_v54  ;;  %v1243_v45 = vsel %vm396_vm0, %v5857_v53, %v1207_v29  ;;  %v6084_v28 = vpop.f32.mrf.mxu1 }
 0x338   : > { %v1335_v12 = vmul.f32 %v1236_v14, %v7794_v55  ;;  %3430 = vmatmul.msk.bf16.gmra.mxu3 %vm2284_vm2, %v7722_v35  ;;  %3434 = vmatmul.msk.bf16.gmra.mxu2 %vm2284_vm2, %v7722_v35  ;;  %v1839_v41 = vpack.c.b16 %v1807_v31, %v1799_v36  ;;  %v6074_v14 = vpop.f32.mrf.mxu0  ;;  %v6093_v31 = vpop.f32.mrf.mxu2 }
 0x339   : > { %2647 = vmatpush.bf16.msrb.mxu1 %v1982_v42  ;;  %v1667_v4 = vpack.c.bf16 %v1623_v63, %v1622_v34  ;;  %v1235_v42 = vsel %vm396_vm0, %v1207_v29, %v7798_v30  ;;  %v7799_v34 = vld [vmem:[#allocation63_spill] sm:$0xff] }
 0x33a   : > { %2705 = vmatpush.bf16.msrb.mxu0 %v1983_v61  ;;  %v1838_v61 = vpack.c.b16 %v1806_v22, %v1798_v9  ;;  %v1379_v49 = vpack.c.bf16 %v1335_v12, %v1334_v32  ;;  %v1326_v22 = vmul.f32 %v1243_v45, %v7793_v1  ;;  %v1327_v32 = vmul.f32 %v1235_v42, %v7794_v55 }
 0x33b   : > { %v2102_v24 = vunpack.c.l.b16 %v1667_v4  ;;  %v2103_v10 = vunpack.c.h.b16 %v1667_v4  ;;  %v1211_v7 = vpop.permute.xlu1 %1210 }
 0x33c   : > { %v1237_v63 = vsel %vm396_vm0, %v1211_v7, %v7799_v34  ;;  %v1245_v44 = vsel %vm396_vm0, %v5802_v3, %v1211_v7  ;;  %v1659_v3 = vpack.c.bf16 %v1607_v48, %v1606_v56  ;;  %v1201_v56 = vpop.permute.xlu2 %1200  ;;  %v1375_v45 = vpack.c.bf16 %v1327_v32, %v1326_v22 }
 0x33d   : > { %2648 = vmatpush.bf16.msrb.mxu1 %v1974_v25  ;;  %v2150_v43 = vpack.c.b16 %v2110_v50, %v2102_v24  ;;  %v2151_v16 = vpack.c.b16 %v2111_v15, %v2103_v10  ;;  %v1511_v25 = vpop.permute.xlu0 %1510  ;;  %v1342_v53 = vmul.f32 %v1245_v44, %v7793_v1  ;;  %v1343_v47 = vmul.f32 %v1237_v63, %v7794_v55 }
 0x33e   : > { %2706 = vmatpush.bf16.msrb.mxu0 %v1975_v38  ;;  %v1523_v38 = vsel %vm446_vm1, %v5752_v19, %v1511_v25  ;;  %v1579_v13 = vsel %vm446_vm1, %v1511_v25, %v7800_v33  ;;  %v6090_v19 = vpop.f32.mrf.mxu3  ;;  %v1782_v24 = vunpack.c.l.b16 %v1379_v49  ;;  %v1783_v10 = vunpack.c.h.b16 %v1379_v49 }
 0x33f   : > { %2679 = vmatpush.bf16.msrb.mxu3 %v2150_v43  ;;  %v1614_v29 = vmul.f32 %v1523_v38, %v7787_v5  ;;  %v1615_v4 = vmul.f32 %v1579_v13, %v7788_v54  ;;  %2737 = vmatpush.bf16.msrb.mxu2 %v2151_v16  ;;  %v1383_v12 = vpack.c.bf16 %v1343_v47, %v1342_v53  ;;  %v2086_v48 = vunpack.c.l.b16 %v1659_v3  ;;  %v7802_v38 = vld [vmem:[#allocation77_spill] sm:$0xff] }
 0x340   : > { %2542 = vmatmul.bf16.gmra.mxu1 %v7723_v58  ;;  %v2087_v42 = vunpack.c.h.b16 %v1659_v3  ;;  %v6110_v13 = vpop.f32.mrf.mxu0 }
 0x341   : > { %2649 = vmatpush.bf16.msrb.mxu1 %v1838_v61  ;;  %v1663_v9 = vpack.c.bf16 %v1615_v4, %v1614_v29  ;;  %2600 = vmatmul.bf16.gmra.mxu0 %v7723_v58  ;;  %v1790_v50 = vunpack.c.l.b16 %v1383_v12  ;;  %v1791_v15 = vunpack.c.h.b16 %v1383_v12  ;;  %v7801_v61 = vld [vmem:[#allocation78_spill] sm:$0xff]  ;;  %v1240_v29 = vsel %vm396_vm0, %v5934_v0, %v1201_v56 }
 0x342   : > { %2707 = vmatpush.bf16.msrb.mxu0 %v1839_v41  ;;  %v1302_v0 = vmul.f32 %v1240_v29, %v7793_v1 }
 0x343   : > { %v2094_v30 = vunpack.c.l.b16 %v1663_v9  ;;  %v2095_v36 = vunpack.c.h.b16 %v1663_v9  ;;  %v1205_v7 = vpop.permute.xlu1 %1204  ;;  %v1830_v43 = vpack.c.b16 %v1790_v50, %v1782_v24  ;;  %v1831_v16 = vpack.c.b16 %v1791_v15, %v1783_v10 }
 0x344   : > { %v1234_v34 = vsel %vm396_vm0, %v1205_v7, %v7801_v61  ;;  %v1242_v63 = vsel %vm396_vm0, %v5778_v57, %v1205_v7  ;;  %v7803_v57 = vld [vmem:[#allocation33_spill] sm:$0xff]  ;;  %v1774_v9 = vunpack.c.l.b16 %v1375_v45  ;;  %v1775_v50 = vunpack.c.h.b16 %v1375_v45 }
 0x345   : > { %v1505_v44 = vpop.permute.xlu0 %1504  ;;  %v2142_v49 = vpack.c.b16 %v2094_v30, %v2086_v48  ;;  %v2143_v25 = vpack.c.b16 %v2095_v36, %v2087_v42  ;;  %v1318_v41 = vmul.f32 %v1242_v63, %v7793_v1  ;;  %v1319_v53 = vmul.f32 %v1234_v34, %v7794_v55  ;;  %2650 = vmatpush.bf16.msrb.mxu1 %v1830_v43  ;;  %v6132_v36 = vpop.permute.xlu2 %2245 }
 0x346   : > { %v1520_v47 = vsel %vm446_vm1, %v5870_v23, %v1505_v44  ;;  %v1576_v33 = vsel %vm446_vm1, %v1505_v44, %v7802_v38  ;;  %2708 = vmatpush.bf16.msrb.mxu0 %v1831_v16  ;;  %v1232_v3 = vsel %vm396_vm0, %v1201_v56, %v7803_v57  ;;  %v6118_v23 = vpop.f32.mrf.mxu1  ;;  %v6126_v10 = vpop.f32.mrf.mxu3  ;;  %v7804_v16 = vld [vmem:[#allocation29_spill] sm:$0xff]  ;;  %v7805_v44 = vld [vmem:[#allocation39_spill] sm:$0xff] }
 0x347   : > { %2680 = vmatpush.bf16.msrb.mxu3 %v2142_v49  ;;  %v1371_v4 = vpack.c.bf16 %v1319_v53, %v1318_v41  ;;  %2738 = vmatpush.bf16.msrb.mxu2 %v2143_v25  ;;  %v1590_v22 = vmul.f32 %v1520_v47, %v7787_v5  ;;  %v1591_v32 = vmul.f32 %v1576_v33, %v7788_v54  ;;  %v6130_v56 = vpop.f32.mrf.mxu2 }
 0x348   : > { %3431 = vmatmul.msk.bf16.gmra.mxu3 %vm2284_vm2, %v7724_v62  ;;  %3435 = vmatmul.msk.bf16.gmra.mxu2 %vm2284_vm2, %v7724_v62  ;;  %v1303_v15 = vmul.f32 %v1232_v3, %v7794_v55  ;;  %v2492_v33 = vpop.f32.mrf.mxu0 }
 0x349   : > { %v1766_v12 = vunpack.c.l.b16 %v1371_v4  ;;  %v1767_v24 = vunpack.c.h.b16 %v1371_v4  ;;  %v1651_v7 = vpack.c.bf16 %v1591_v32, %v1590_v22 }
 0x34a   : > { %v1363_v41 = vpack.c.bf16 %v1303_v15, %v1302_v0 }
 0x34b   : > { %v1507_v48 = vpop.permute.xlu1 %1506  ;;  %v1822_v30 = vpack.c.b16 %v1774_v9, %v1766_v12  ;;  %v1823_v42 = vpack.c.b16 %v1775_v50, %v1767_v24  ;;  %v2071_v3 = vunpack.c.h.b16 %v1651_v7 }
 0x34c   : > { %v1521_v43 = vsel %vm446_vm1, %v5894_v52, %v1507_v48  ;;  %v1577_v45 = vsel %vm446_vm1, %v1507_v48, %v7804_v16  ;;  %v1751_v22 = vunpack.c.h.b16 %v1363_v41  ;;  %v7806_v48 = vld [vmem:[#allocation49_spill] sm:$0xff] }
 0x34d   : > { %v1203_v61 = vpop.permute.xlu0 %1202  ;;  %v1598_v34 = vmul.f32 %v1521_v43, %v7787_v5  ;;  %v1599_v63 = vmul.f32 %v1577_v45, %v7788_v54  ;;  %2651 = vmatpush.bf16.msrb.mxu1 %v1822_v30  ;;  %2709 = vmatpush.bf16.msrb.mxu0 %v1823_v42  ;;  %v2382_v5 = vadd.f32 %v5882_v6, %v6132_v36  ;;  %v7807_v42 = vld [vmem:[#allocation30_spill] sm:$0xff] }
 0x34e   : > { %v1233_v49 = vsel %vm396_vm0, %v1203_v61, %v7805_v44  ;;  %v1241_v25 = vsel %vm396_vm0, %v5868_v11, %v1203_v61  ;;  %v2324_v54 = vadd.f32 %v5872_v37, %v6132_v36  ;;  %v2070_v11 = vunpack.c.l.b16 %v1651_v7  ;;  %v2434_v29 = vpop.f32.mrf.mxu1  ;;  %v2463_v16 = vpop.f32.mrf.mxu3 }
 0x34f   : > { %v1310_v52 = vmul.f32 %v1241_v25, %v7793_v1  ;;  %v1311_v53 = vmul.f32 %v1233_v49, %v7794_v55  ;;  %v1655_v47 = vpack.c.bf16 %v1599_v63, %v1598_v34  ;;  %v1750_v55 = vunpack.c.l.b16 %v1363_v41  ;;  %v2521_v43 = vpop.f32.mrf.mxu2  ;;  %v7810_v63 = vld [vmem:[#allocation32_spill] sm:$0xff]  ;;  %v7811_v49 = vld [vmem:[#allocation34_spill] sm:$0xff]  ;;  %v7812_v41 = vld [vmem:[#allocation23_spill] sm:$0xff] }
 0x350   : > { %2547 = vmatmul.bf16.gmra.mxu1 %v7725_v17  ;;  %v6159_v37 = vadd.f32 %v5884_v26, %v2382_v5  ;;  %v6162_v24 = vadd.f32 %v5874_v18, %v2324_v54  ;;  %v7808_v26 = vld [vmem:[#allocation57_spill] sm:$0xff]  ;;  %v7809_v18 = vld [vmem:[#allocation56_spill] sm:$0xff] }
 0x351   : > { %v1367_v38 = vpack.c.bf16 %v1311_v53, %v1310_v52  ;;  %2605 = vmatmul.bf16.gmra.mxu0 %v7725_v17  ;;  %v2078_v57 = vunpack.c.l.b16 %v1655_v47  ;;  %v2079_v1 = vunpack.c.h.b16 %v1655_v47 }
 0x352   : > { %v7442_v53 = vmax.f32 %v6159_v37, 0.0  ;;  %v2817_v5 = vmax.f32 %v6162_v24, 0.0 }
 0x353   : > { %v1758_v4 = vunpack.c.l.b16 %v1367_v38  ;;  %v1759_v32 = vunpack.c.h.b16 %v1367_v38  ;;  %v6156_v12 = vpop.permute.xlu1 %2240  ;;  %v2134_v6 = vpack.c.b16 %v2078_v57, %v2070_v11  ;;  %v2135_v9 = vpack.c.b16 %v2079_v1, %v2071_v3  ;;  %v2495_v11 = vpop.f32.mrf.mxu0  ;;  %v7813_v1 = vld [vmem:[#allocation40_spill] sm:$0xff] }
 0x354   : > { %v2380_v30 = vadd.f32 %v7806_v48, %v6156_v12  ;;  %v2322_v7 = vadd.f32 %v7807_v42, %v6156_v12 }
 0x355   : > { %v6164_v50 = vpop.permute.xlu0 %2230  ;;  %v1814_v0 = vpack.c.b16 %v1758_v4, %v1750_v55  ;;  %v1815_v15 = vpack.c.b16 %v1759_v32, %v1751_v22  ;;  %2681 = vmatpush.bf16.msrb.mxu3 %v2134_v6  ;;  %2739 = vmatpush.bf16.msrb.mxu2 %v2135_v9  ;;  %v7814_v4 = vld [vmem:[#allocation38_spill] sm:$0xff] }
 0x356   : > { %v6171_v45 = vadd.f32 %v7808_v26, %v2380_v30  ;;  %v6174_v61 = vadd.f32 %v7809_v18, %v2322_v7  ;;  %v2433_v34 = vadd.f32 %v6118_v23, %v6164_v50  ;;  %v2375_v44 = vadd.f32 %v7810_v63, %v6164_v50  ;;  %v6190_v23 = vpop.permute.xlu2 %2220  ;;  %v2437_v32 = vpop.f32.mrf.mxu1  ;;  %v7817_v26 = vld [vmem:[#allocation26_spill] sm:$0xff] }
 0x357   : > { %2652 = vmatpush.bf16.msrb.mxu1 %v1814_v0  ;;  %2710 = vmatpush.bf16.msrb.mxu0 %v1815_v15  ;;  %v2317_v25 = vadd.f32 %v7811_v49, %v6164_v50  ;;  %v7815_v0 = vld [vmem:[#allocation74_spill] sm:$0xff]  ;;  %v2486_v30 = vadd.f32 %v6026_v21, %v6190_v23  ;;  %v2491_v21 = vadd.f32 %v6110_v13, %v6164_v50  ;;  %v7822_v13 = vld [vmem:[#allocation12_spill] sm:$0xff] }
 0x358   : > { %3432 = vmatmul.msk.bf16.gmra.mxu3 %vm2284_vm2, %v7812_v41  ;;  %v7441_v52 = vmax.f32 %v6171_v45, 0.0  ;;  %v2809_v47 = vmax.f32 %v6174_v61, 0.0  ;;  %3436 = vmatmul.msk.bf16.gmra.mxu2 %vm2284_vm2, %v7812_v41  ;;  %v6203_v3 = vadd.f32 %v6126_v10, %v2433_v34  ;;  %v6206_v55 = vadd.f32 %v7813_v1, %v2375_v44  ;;  %v7816_v10 = vld [vmem:[#allocation81_spill] sm:$0xff]  ;;  %v7818_v34 = vld [vmem:[#allocation80_spill] sm:$0xff]  ;;  %v2524_v44 = vpop.f32.mrf.mxu2 }
 0x359   : > { %v6209_v22 = vadd.f32 %v7814_v4, %v2317_v25 }
 0x35a   : > { %v3546_v54 = vpack.i.bf16 %v7442_v53, %v7441_v52  ;;  %v3551_v38 = vpack.i.bf16 %v2817_v5, %v2809_v47  ;;  %v7438_v49 = vmax.f32 %v6203_v3, 0.0  ;;  %v7440_v25 = vmax.f32 %v6206_v55, 0.0 }
 0x35b   : > { %v6200_v57 = vpop.permute.xlu1 %2235 }
 0x35c   : > { %3547 = vrot.lane.b32.xlu0 %v3546_v54, %s3777_s11  ;;  %3552 = vrot.lane.b32.xlu2 %v3551_v38, %s3777_s11  ;;  %v2435_v9 = vadd.f32 %v2434_v29, %v6200_v57  ;;  %v2377_v15 = vadd.f32 %v7815_v0, %v6200_v57  ;;  %v2319_v48 = vadd.f32 %v7816_v10, %v6200_v57  ;;  %v2466_v54 = vpop.f32.mrf.mxu3  ;;  %v7820_v38 = vld [vmem:[#allocation64_spill] sm:$0xff] }
 0x35d   : > { %v6211_v6 = vpop.permute.xlu0 %2225  ;;  %v2493_v29 = vadd.f32 %v2492_v33, %v6200_v57  ;;  %v7462_v33 = vmax.f32 %v6209_v22, 0.0 }
 0x35e   : > { %v2488_v42 = vadd.f32 %v6074_v14, %v6211_v6  ;;  %v6224_v7 = vadd.f32 %v2463_v16, %v2435_v9  ;;  %v6227_v18 = vadd.f32 %v7817_v26, %v2377_v15  ;;  %v6230_v63 = vadd.f32 %v7818_v34, %v2319_v48  ;;  %v7819_v14 = vld [vmem:[#allocation79_spill] sm:$0xff]  ;;  %v7824_v34 = vld [vmem:[#allocation36_spill] sm:$0xff] }
 0x35f   : > { %v2372_v16 = vadd.f32 %v7819_v14, %v6211_v6  ;;  %v2370_v15 = vadd.f32 %v7822_v13, %v6190_v23  ;;  %v6272_v13 = vadd.f32 %v6046_v59, %v2486_v30  ;;  %v7829_v30 = vld [vmem:[#allocation35_spill] sm:$0xff] }
 0x360   : > { %2552 = vmatmul.bf16.gmra.mxu1 %v7820_v38  ;;  %v7437_v1 = vmax.f32 %v6224_v7, 0.0  ;;  %v7439_v4 = vmax.f32 %v6227_v18, 0.0  ;;  %v7443_v9 = vmax.f32 %v6230_v63, 0.0  ;;  %v6246_v0 = vadd.f32 %v6093_v31, %v2488_v42 }
 0x361   : > { %2610 = vmatmul.bf16.gmra.mxu0 %v7820_v38  ;;  %v6262_v31 = vadd.f32 %v2521_v43, %v2493_v29  ;;  %v6267_v14 = vadd.f32 %v7824_v34, %v2372_v16  ;;  %7825 = vst [vmem:[#allocation47_spill] sm:$0xff] %v6272_v13  ;;  %v2497_v43 = vpop.f32.mrf.mxu0  ;;  %v7828_v29 = vld [vmem:[#allocation17_spill] sm:$0xff]  ;;  %v2496_v16 = vadd.f32 %v2495_v11, %v6156_v12  ;;  %v7445_v11 = vmax.f32 %v6272_v13, 0.0 }
 0x362   : > { %7821 = vst [vmem:[#allocation42_spill] sm:$0xff] %v6246_v0  ;;  %v3566_v10 = vpack.i.bf16 %v7437_v1, %v7438_v49  ;;  %v3556_v48 = vpack.i.bf16 %v7439_v4, %v7440_v25  ;;  %v3561_v26 = vpack.i.bf16 %v7443_v9, %v7462_v33  ;;  %v6275_v1 = vadd.f32 %v6130_v56, %v2491_v21  ;;  %v7827_v49 = vld [vmem:[#allocation37_spill] sm:$0xff] }
 0x363   : > { %7823 = vst [vmem:[#allocation45_spill] sm:$0xff] %v6262_v31  ;;  %v6264_v42 = vpop.permute.xlu1 %2210  ;;  %v6281_v25 = vadd.f32 %v7828_v29, %v2370_v15  ;;  %v7446_v59 = vmax.f32 %v6262_v31, 0.0  ;;  %v2430_v56 = vadd.f32 %v6084_v28, %v6211_v6  ;;  %v2498_v15 = vadd.f32 %v2497_v43, %v6132_v36 }
 0x364   : > { %3567 = vrot.lane.b32.xlu0 %v3566_v10, %s3777_s11  ;;  %3557 = vrot.lane.b32.xlu2 %v3556_v48, %s3777_s11  ;;  %7826 = vst [vmem:[#allocation52_spill] sm:$0xff] %v6275_v1  ;;  %v2423_v4 = vadd.f32 %v7827_v49, %v6264_v42  ;;  %v2439_v10 = vpop.f32.mrf.mxu1  ;;  %v7444_v48 = vmax.f32 %v6246_v0, 0.0  ;;  %v7448_v49 = vmax.f32 %v6267_v14, 0.0  ;;  %v7447_v34 = vmax.f32 %v6275_v1, 0.0 }
 0x365   : > { %3562 = vrot.lane.b32.xlu1 %v3561_v26, %s3777_s11  ;;  %v2438_v26 = vadd.f32 %v2437_v32, %v6156_v12  ;;  %v2428_v29 = vadd.f32 %v6028_v8, %v6190_v23  ;;  %v2440_v28 = vadd.f32 %v2439_v10, %v6132_v36  ;;  %v7457_v32 = vmax.f32 %v6281_v25, 0.0 }
 0x366   : > { %v6289_v21 = vadd.f32 %v7829_v30, %v2423_v4  ;;  %v2526_v4 = vpop.f32.mrf.mxu2  ;;  %v2468_v30 = vpop.f32.mrf.mxu3  ;;  %v3591_v43 = vpack.i.bf16 %v7444_v48, %v7445_v11  ;;  %v3571_v52 = vpack.i.bf16 %v7446_v59, %v7447_v34  ;;  %v6312_v8 = vadd.f32 %v2524_v44, %v2496_v16  ;;  %v7837_v59 = vld [vmem:[#allocation22_spill] sm:$0xff] }
 0x367   : > { %v6315_v10 = vadd.f32 %v6090_v19, %v2430_v56  ;;  %v6321_v53 = vadd.f32 %v2466_v54, %v2438_v26  ;;  %v6323_v9 = vadd.f32 %v2526_v4, %v2498_v15  ;;  %v6328_v48 = vadd.f32 %v6038_v39, %v2428_v29  ;;  %v6332_v19 = vpop.permute.xlu2 %2215  ;;  %v7833_v56 = vld [vmem:[#allocation75_spill] sm:$0xff]  ;;  %v7834_v15 = vld [vmem:[#allocation28_spill] sm:$0xff] }
 0x368   : > { %7830 = vst [vmem:[#allocation31_spill] sm:$0xff] %v6289_v21  ;;  %3437 = vmatmul.msk.bf16.vlgmr.msrb.gmra.mxu3 %vm2284_vm2, %v5080_v60  ;;  %3441 = vmatmul.msk.bf16.vlgmr.msrb.gmra.mxu2 %vm2284_vm2, %v5080_v60  ;;  %v3576_v60 = vpack.i.bf16 %v7448_v49, %v7457_v32  ;;  %v6330_v44 = vadd.f32 %v2468_v30, %v2440_v28  ;;  %v7449_v16 = vmax.f32 %v6312_v8, 0.0  ;;  %v7835_v28 = vld [vmem:[#allocation10_spill] sm:$0xff] }
 0x369   : > { %7831 = vst [vmem:[#allocation73_spill] sm:$0xff] %v6312_v8  ;;  %v7451_v54 = vmax.f32 %v6315_v10, 0.0  ;;  %v2365_v26 = vadd.f32 %v7833_v56, %v6264_v42  ;;  %v2314_v4 = vadd.f32 %v7834_v15, %v6211_v6  ;;  %v7450_v39 = vmax.f32 %v6323_v9, 0.0 }
 0x36a   : > { %7832 = vst [vmem:[#allocation70_spill] sm:$0xff] %v6323_v9  ;;  %v7456_v29 = vmax.f32 %v6328_v48, 0.0  ;;  %v2367_v30 = vadd.f32 %v7835_v28, %v6332_v19  ;;  %v7459_v11 = vmax.f32 %v6330_v44, 0.0  ;;  %v2425_v56 = vadd.f32 %v5976_v20, %v6332_v19  ;;  %v7839_v20 = vld [vmem:[#allocation27_spill] sm:$0xff] }
 0x36b   : > { %v3601_v15 = vpack.i.bf16 %v7450_v39, %v7449_v16  ;;  %v6362_v34 = vadd.f32 %v7837_v59, %v2365_v26  ;;  %v7840_v39 = vld [vmem:[#allocation19_spill] sm:$0xff] }
 0x36c   : > { %3592 = vrot.lane.b32.xlu0 %v3591_v43, %s3777_s11  ;;  %3572 = vrot.lane.b32.xlu2 %v3571_v52, %s3777_s11  ;;  %v7458_v52 = vmax.f32 %v6321_v53, 0.0  ;;  %v7836_v43 = vld [vmem:[#allocation18_spill] sm:$0xff]  ;;  %v3581_v28 = vpack.i.bf16 %v7451_v54, %v7456_v29  ;;  %v6374_v16 = vadd.f32 %v7839_v20, %v2367_v30  ;;  %v6381_v59 = vadd.f32 %v5986_v2, %v2425_v56 }
 0x36d   : > { %3577 = vrot.lane.b32.xlu1 %v3576_v60, %s3777_s11  ;;  %v2312_v60 = vadd.f32 %v7836_v43, %v6190_v23  ;;  %v7838_v43 = vld [vmem:[#allocation76_spill] sm:$0xff]  ;;  %v7455_v26 = vmax.f32 %v6362_v34, 0.0 }
 0x36e   : > { %v6365_v49 = vadd.f32 %v7838_v43, %v2314_v4  ;;  %7841 = vst [vmem:[#allocation55_spill] sm:$0xff] %v6381_v59  ;;  %v7453_v43 = vmax.f32 %v6289_v21, 0.0  ;;  %v7454_v30 = vmax.f32 %v6374_v16, 0.0 }
 0x36f   : > { %v6377_v54 = vadd.f32 %v7840_v39, %v2312_v60  ;;  %v7452_v39 = vmax.f32 %v6381_v59, 0.0 }
 0x370   : > { %2653 = vmatmul.bf16.vlgmr.msrb.gmra.mxu1 %v5073_v46  ;;  %v7460_v4 = vmax.f32 %v6365_v49, 0.0  ;;  %v3606_v2 = vpack.i.bf16 %v7454_v30, %v7455_v26 }
 0x371   : > { %2711 = vmatmul.bf16.vlgmr.msrb.gmra.mxu0 %v5073_v46  ;;  %v3596_v46 = vpack.i.bf16 %v7459_v11, %v7458_v52  ;;  %v3611_v56 = vpack.i.bf16 %v7452_v39, %v7453_v43 }
 0x374   : > { %3602 = vrot.lane.b32.xlu0 %v3601_v15, %s3777_s11  ;;  %3582 = vrot.lane.b32.xlu2 %v3581_v28, %s3777_s11  ;;  %v7461_v15 = vmax.f32 %v6377_v54, 0.0 }
 0x375   : > { %3597 = vrot.lane.b32.xlu1 %v3596_v46, %s3777_s11 }
 0x376   : > { %v3586_v60 = vpack.i.bf16 %v7460_v4, %v7461_v15 }
 0x378   : > { %3438 = vmatmul.msk.bf16.gmra.mxu3 %vm2284_vm2, %v7722_v35  ;;  %3442 = vmatmul.msk.bf16.gmra.mxu2 %vm2284_vm2, %v7722_v35 }
 0x37c   : > { %3607 = vrot.lane.b32.xlu0 %v3606_v2, %s3777_s11  ;;  %3587 = vrot.lane.b32.xlu2 %v3586_v60, %s3777_s11 }
 0x37d   : > { %3612 = vrot.lane.b32.xlu1 %v3611_v56, %s3777_s11 }
 0x380   : > { %2658 = vmatmul.bf16.gmra.mxu1 %v7723_v58 }
 0x381   : > { %2716 = vmatmul.bf16.gmra.mxu0 %v7723_v58 }
 0x388   : > { %3439 = vmatmul.msk.bf16.gmra.mxu3 %vm2284_vm2, %v7724_v62  ;;  %3443 = vmatmul.msk.bf16.gmra.mxu2 %vm2284_vm2, %v7724_v62 }
 0x390   : > { %2663 = vmatmul.bf16.gmra.mxu1 %v7725_v17 }
 0x391   : > { %2721 = vmatmul.bf16.gmra.mxu0 %v7725_v17 }
 0x398   : > { %3440 = vmatmul.msk.bf16.gmra.mxu3 %vm2284_vm2, %v7812_v41  ;;  %3444 = vmatmul.msk.bf16.gmra.mxu2 %vm2284_vm2, %v7812_v41 }
 0x3a0   : > { %2668 = vmatmul.bf16.gmra.mxu1 %v7820_v38 }
 0x3a1   : > { %2726 = vmatmul.bf16.gmra.mxu0 %v7820_v38 }
 0x3ab   : > { %v2567_v35 = vpop.f32.mrf.mxu3  ;;  %v2625_v58 = vpop.f32.mrf.mxu2 }
 0x3ad   : > { %v2538_v28 = vpop.f32.mrf.mxu1 }
 0x3ae   : > { %v2539_v46 = vadd.f32 %v2538_v28, %v6264_v42  ;;  %v2596_v62 = vpop.f32.mrf.mxu0 }
 0x3af   : > { %v2597_v20 = vadd.f32 %v2596_v62, %v6264_v42 }
 0x3b0   : > { %v6424_v2 = vadd.f32 %v2567_v35, %v2539_v46 }
 0x3b1   : > { %v6426_v17 = vadd.f32 %v2625_v58, %v2597_v20 }
 0x3b3   : > { %v2569_v60 = vpop.f32.mrf.mxu3  ;;  %v2627_v56 = vpop.f32.mrf.mxu2 }
 0x3b5   : > { %v2540_v39 = vpop.f32.mrf.mxu1 }
 0x3b6   : > { %v2541_v41 = vadd.f32 %v2540_v39, %v6332_v19  ;;  %v2598_v43 = vpop.f32.mrf.mxu0  ;;  %v6429_v30 = vpop.permute.xlu2 %3552 }
 0x3b7   : > { %7842 = vst [vmem:[#allocation43_spill] sm:$0xff] %v6429_v30  ;;  %v2599_v38 = vadd.f32 %v2598_v43, %v6332_v19 }
 0x3b8   : > { %v6432_v26 = vadd.f32 %v2569_v60, %v2541_v41 }
 0x3b9   : > { %v6434_v28 = vadd.f32 %v2627_v56, %v2599_v38 }
 0x3bb   : > { %v2572_v29 = vpop.f32.mrf.mxu3  ;;  %v2630_v62 = vpop.f32.mrf.mxu2 }
 0x3bd   : > { %v2543_v35 = vpop.f32.mrf.mxu1 }
 0x3be   : > { %v2601_v46 = vpop.f32.mrf.mxu0  ;;  %v6437_v20 = vpop.permute.xlu2 %3557  ;;  %v2544_v39 = vadd.f32 %v2543_v35, %v6190_v23 }
 0x3bf   : > { %v2602_v58 = vadd.f32 %v2601_v46, %v6190_v23  ;;  %v7478_v61 = vunpack.i.h.bf16 %v6437_v20  ;;  %v7487_v24 = vunpack.i.l.bf16 %v6437_v20 }
 0x3c0   : > { %v6442_v43 = vadd.f32 %v2572_v29, %v2544_v39 }
 0x3c1   : > { %v6439_v32 = vadd.f32 %v2630_v62, %v2602_v58 }
 0x3c2   : > { %7843 = vst [vmem:[#allocation46_spill] sm:$0xff] %v6442_v43  ;;  %v7464_v62 = vmax.f32 %v6442_v43, 0.0 }
 0x3c3   : > { %v2574_v52 = vpop.f32.mrf.mxu3  ;;  %v2632_v11 = vpop.f32.mrf.mxu2 }
 0x3c5   : > { %v2545_v4 = vpop.f32.mrf.mxu1 }
 0x3c6   : > { %v2546_v60 = vadd.f32 %v2545_v4, %v6211_v6  ;;  %v2603_v56 = vpop.f32.mrf.mxu0  ;;  %v6448_v15 = vpop.permute.xlu2 %3572 }
 0x3c7   : > { %v2604_v41 = vadd.f32 %v2603_v56, %v6211_v6 }
 0x3c8   : > { %v6446_v38 = vadd.f32 %v2574_v52, %v2546_v60  ;;  %v7469_v52 = vunpack.i.l.bf16 %v6429_v30 }
 0x3c9   : > { %v6450_v46 = vadd.f32 %v2632_v11, %v2604_v41  ;;  %v7476_v11 = vunpack.i.h.bf16 %v6429_v30 }
 0x3ca   : > { %7844 = vst [vmem:[#allocation69_spill] sm:$0xff] %v6446_v38  ;;  %v7463_v35 = vmax.f32 %v6446_v38, 0.0 }
 0x3cb   : > { %v2577_v58 = vpop.f32.mrf.mxu3  ;;  %v2635_v4 = vpop.f32.mrf.mxu2 }
 0x3cc   : > { %v3616_v29 = vpack.i.bf16 %v7463_v35, %v7464_v62 }
 0x3cd   : > { %v2548_v39 = vpop.f32.mrf.mxu1 }
 0x3ce   : > { %v2606_v33 = vpop.f32.mrf.mxu0  ;;  %v6458_v56 = vpop.permute.xlu0 %3547  ;;  %3617 = vrot.lane.b32.xlu1 %v3616_v29, %s3777_s11  ;;  %v2549_v21 = vadd.f32 %v2548_v39, %v6164_v50 }
 0x3cf   : > { %v7479_v60 = vunpack.i.h.bf16 %v6458_v56  ;;  %v7470_v41 = vunpack.i.l.bf16 %v6458_v56  ;;  %v6481_v43 = vpop.permute.xlu2 %3582 }
 0x3d1   : > { %v3007_v35 = vsel %vm446_vm1, %v7469_v52, %v7470_v41  ;;  %v3008_v29 = vsel %vm446_vm1, %v7476_v11, %v7479_v60  ;;  %v2607_v52 = vadd.f32 %v2606_v33, %v6164_v50 }
 0x3d2   : > { %v3065_v62 = vmax.f32 %v2809_v47, %v3007_v35  ;;  %v3073_v38 = vmax.f32 %v2817_v5, %v3008_v29  ;;  %v6493_v35 = vadd.f32 %v2577_v58, %v2549_v21 }
 0x3d3   : > { %v2579_v59 = vpop.f32.mrf.mxu3  ;;  %v2637_v0 = vpop.f32.mrf.mxu2  ;;  %v6495_v33 = vadd.f32 %v2635_v4, %v2607_v52  ;;  %v7848_v4 = vmax.f32 %v6209_v22, 0.0  ;;  %v7849_v52 = vmax.f32 %v6230_v63, 0.0 }
 0x3d4   : > { %v3109_v41 = vpack.c.bf16 %v3073_v38, %v3065_v62 }
 0x3d5   : > { %v2550_v13 = vpop.f32.mrf.mxu1  ;;  %7846 = vst [vmem:[#allocation21_spill] sm:$0xff] %v6495_v33 }
 0x3d6   : > { %v2551_v30 = vadd.f32 %v2550_v13, %v6200_v57  ;;  %v2608_v31 = vpop.f32.mrf.mxu0  ;;  %v6486_v11 = vpop.permute.xlu0 %3567  ;;  %3149 = vmatpush.bf16.xpose.msra.mxu1 %v3109_v41 }
 0x3d7   : > { %v2609_v47 = vadd.f32 %v2608_v31, %v6200_v57  ;;  %v6491_v5 = vpop.permute.xlu1 %3562 }
 0x3d8   : > { %7845 = vst [vmem:[#allocation59_spill] sm:$0xff] %v6491_v5  ;;  %v7477_v38 = vunpack.i.h.bf16 %v6491_v5  ;;  %v7482_v13 = vunpack.i.l.bf16 %v6491_v5  ;;  %v6511_v21 = vadd.f32 %v2579_v59, %v2551_v30  ;;  %v6523_v59 = vpop.permute.xlu2 %3587 }
 0x3d9   : > { %v6513_v58 = vadd.f32 %v2637_v0, %v2609_v47  ;;  %7850 = vst [vmem:[#allocation6_spill] sm:$0xff] %v6523_v59 }
 0x3da   : > { %v3006_v62 = vsel %vm446_vm1, %v7477_v38, %v7478_v61  ;;  %v3005_v31 = vsel %vm446_vm1, %v7482_v13, %v7487_v24  ;;  %v7486_v38 = vmax.f32 %v6493_v35, 0.0  ;;  %v7484_v61 = vmax.f32 %v6495_v33, 0.0 }
 0x3db   : > { %7847 = vst [vmem:[#allocation51_spill] sm:$0xff] %v6513_v58  ;;  %v3049_v39 = vmax.f32 %v7848_v4, %v3005_v31  ;;  %v3057_v41 = vmax.f32 %v7849_v52, %v3006_v62  ;;  %v2582_v29 = vpop.f32.mrf.mxu3  ;;  %v7485_v60 = vmax.f32 %v6511_v21, 0.0  ;;  %v7483_v5 = vmax.f32 %v6513_v58, 0.0  ;;  %v2640_v13 = vpop.f32.mrf.mxu2 }
 0x3dc   : > { %v7495_v4 = vunpack.i.h.bf16 %v6523_v59 }
 0x3dd   : > { %v2553_v0 = vpop.f32.mrf.mxu1  ;;  %v3101_v30 = vpack.c.bf16 %v3057_v41, %v3049_v39  ;;  %v3621_v22 = vpack.i.bf16 %v7485_v60, %v7486_v38  ;;  %v3626_v63 = vpack.i.bf16 %v7483_v5, %v7484_v61  ;;  %v7490_v39 = vunpack.i.l.bf16 %v6523_v59 }
 0x3de   : > { %v2611_v47 = vpop.f32.mrf.mxu0  ;;  %v6533_v62 = vpop.permute.xlu0 %3592  ;;  %v7851_v61 = vmax.f32 %v6377_v54, 0.0  ;;  %v3570_v59 = vunpack.i.h.bf16 %v6486_v11 }
 0x3df   : > { %v6535_v31 = vpop.permute.xlu1 %3577  ;;  %3150 = vmatpush.bf16.xpose.msra.mxu1 %v3101_v30  ;;  %3622 = vrot.lane.b32.xlu0 %v3621_v22, %s3777_s11  ;;  %v2554_v22 = vadd.f32 %v2553_v0, %v6156_v12  ;;  %v2612_v58 = vadd.f32 %v2611_v47, %v6156_v12 }
 0x3e0   : > { %v7496_v52 = vunpack.i.h.bf16 %v6535_v31  ;;  %v7491_v41 = vunpack.i.l.bf16 %v6535_v31  ;;  %3627 = vrot.lane.b32.xlu2 %v3626_v63, %s3777_s11  ;;  %v7852_v63 = vmax.f32 %v6365_v49, 0.0 }
 0x3e1   : > { %v6566_v54 = vadd.f32 %v2582_v29, %v2554_v22  ;;  %v7853_v29 = vunpack.i.l.bf16 %v6448_v15 }
 0x3e2   : > { %v3003_v5 = vsel %vm446_vm1, %v7490_v39, %v7491_v41  ;;  %v3004_v30 = vsel %vm446_vm1, %v7495_v4, %v7496_v52  ;;  %v3569_v39 = vunpack.i.l.bf16 %v6486_v11 }
 0x3e3   : > { %v3033_v60 = vmax.f32 %v7851_v61, %v3003_v5  ;;  %v3041_v38 = vmax.f32 %v7852_v63, %v3004_v30  ;;  %v2584_v24 = vpop.f32.mrf.mxu3  ;;  %v2642_v33 = vpop.f32.mrf.mxu2  ;;  %v6571_v30 = vadd.f32 %v2640_v13, %v2612_v58  ;;  %v7854_v13 = vunpack.i.h.bf16 %v6458_v56 }
 0x3e4   : > { %v7855_v58 = vunpack.i.l.bf16 %v6458_v56 }
 0x3e5   : > { %v2555_v41 = vpop.f32.mrf.mxu1  ;;  %v3093_v1 = vpack.c.bf16 %v3041_v38, %v3033_v60  ;;  %v7503_v56 = vmax.f32 %v6571_v30, 0.0 }
 0x3e6   : > { %v2556_v4 = vadd.f32 %v2555_v41, %v6132_v36  ;;  %v2613_v52 = vpop.f32.mrf.mxu0  ;;  %v6564_v0 = vpop.permute.xlu0 %3602 }
 0x3e7   : > { %v2614_v49 = vadd.f32 %v2613_v52, %v6132_v36  ;;  %v7497_v61 = vunpack.i.h.bf16 %v6564_v0  ;;  %v7499_v5 = vunpack.i.l.bf16 %v6564_v0  ;;  %v3598_v47 = vpop.permute.xlu1 %3597  ;;  %3151 = vmatpush.bf16.xpose.msra.mxu1 %v3093_v1  ;;  %v2989_v52 = vsel %vm446_vm1, %v3569_v39, %v7853_v29 }
 0x3e8   : > { %v3600_v60 = vunpack.i.h.bf16 %v3598_v47  ;;  %v3599_v38 = vunpack.i.l.bf16 %v3598_v47  ;;  %v6573_v63 = vadd.f32 %v2584_v24, %v2556_v4  ;;  %v7856_v4 = vmax.f32 %v6159_v37, 0.0 }
 0x3e9   : > { %v6581_v22 = vadd.f32 %v2642_v33, %v2614_v49  ;;  %v7857_v47 = vmax.f32 %v6330_v44, 0.0 }
 0x3ea   : > { %v2992_v1 = vsel %vm446_vm1, %v3600_v60, %v7497_v61  ;;  %v3000_v24 = vsel %vm446_vm1, %v7854_v13, %v3600_v60  ;;  %v2991_v11 = vsel %vm446_vm1, %v3599_v38, %v7499_v5  ;;  %v2999_v33 = vsel %vm446_vm1, %v7855_v58, %v3599_v38 }
 0x3eb   : > { %v3074_v49 = vmax.f32 %v7856_v4, %v3000_v24  ;;  %v3075_v29 = vmax.f32 %v7857_v47, %v2992_v1  ;;  %v7858_v61 = vmax.f32 %v6171_v45, 0.0  ;;  %v7859_v60 = vmax.f32 %v6321_v53, 0.0  ;;  %v2683_v8 = vpop.f32.mrf.mxu3  ;;  %v2741_v37 = vpop.f32.mrf.mxu2 }
 0x3ec   : > { %v7511_v5 = vmax.f32 %v6566_v54, 0.0  ;;  %v2821_v9 = vmax.f32 %v6573_v63, 0.0  ;;  %v7504_v38 = vmax.f32 %v6581_v22, 0.0  ;;  %v7860_v24 = vunpack.i.h.bf16 %v6448_v15 }
 0x3ed   : > { %v3066_v41 = vmax.f32 %v7858_v61, %v2999_v33  ;;  %v3067_v13 = vmax.f32 %v7859_v60, %v2991_v11  ;;  %v7861_v45 = vunpack.i.l.bf16 %v6437_v20  ;;  %v2654_v61 = vpop.f32.mrf.mxu1  ;;  %v7862_v58 = vunpack.i.h.bf16 %v6437_v20 }
 0x3ee   : > { %v2990_v44 = vsel %vm446_vm1, %v3570_v59, %v7860_v24  ;;  %v3631_v4 = vpack.i.bf16 %v2821_v9, %v7511_v5  ;;  %v3636_v47 = vpack.i.bf16 %v7504_v38, %v7503_v56  ;;  %v2712_v60 = vpop.f32.mrf.mxu0  ;;  %v7891_v63 = vunpack.i.h.bf16 %v6448_v15 }
 0x3ef   : > { %v2997_v53 = vsel %vm446_vm1, %v7861_v45, %v3569_v39  ;;  %v3110_v1 = vpack.c.bf16 %v3074_v49, %v3066_v41  ;;  %v3111_v11 = vpack.c.bf16 %v3075_v29, %v3067_v13  ;;  %v2998_v33 = vsel %vm446_vm1, %v7862_v58, %v3570_v59 }
 0x3f0   : > { %v2655_v39 = vadd.f32 %v2654_v61, %v6264_v42  ;;  %v2713_v41 = vadd.f32 %v2712_v60, %v6264_v42  ;;  %3637 = vrot.lane.b32.xlu0 %v3636_v47, %s3777_s11  ;;  %3632 = vrot.lane.b32.xlu1 %v3631_v4, %s3777_s11  ;;  %v7863_v59 = vmax.f32 %v6206_v55, 0.0  ;;  %v7864_v13 = vmax.f32 %v6227_v18, 0.0 }
 0x3f1   : > { %3162 = vmatpush.bf16.xpose.msra.mxu3 %v3110_v1  ;;  %3175 = vmatpush.bf16.xpose.msra.mxu0 %v3111_v11  ;;  %v7865_v45 = vmax.f32 %v6203_v3, 0.0  ;;  %v7866_v1 = vmax.f32 %v6224_v7, 0.0  ;;  %v7510_v58 = vunpack.i.h.bf16 %v6533_v62  ;;  %v7509_v4 = vunpack.i.l.bf16 %v6533_v62 }
 0x3f2   : > { %v6635_v20 = vadd.f32 %v2683_v8, %v2655_v39  ;;  %v3050_v49 = vmax.f32 %v7863_v59, %v2997_v53  ;;  %v6639_v29 = vadd.f32 %v2741_v37, %v2713_v41  ;;  %v3058_v24 = vmax.f32 %v7864_v13, %v2998_v33  ;;  %v6671_v41 = vpop.permute.xlu0 %3607  ;;  %v6673_v59 = vpop.permute.xlu1 %3612 }
 0x3f3   : > { %v3051_v61 = vmax.f32 %v7865_v45, %v2989_v52  ;;  %v3059_v11 = vmax.f32 %v7866_v1, %v2990_v44  ;;  %v3584_v8 = vunpack.i.l.bf16 %v6481_v43  ;;  %v6650_v47 = vpop.f32.mrf.mxu3  ;;  %v3585_v55 = vunpack.i.h.bf16 %v6481_v43  ;;  %v2743_v37 = vpop.f32.mrf.mxu2 }
 0x3f4   : > { %v7867_v18 = vunpack.i.l.bf16 %v6535_v31  ;;  %v3102_v7 = vpack.c.bf16 %v3058_v24, %v3050_v49  ;;  %v7868_v33 = vunpack.i.h.bf16 %v6535_v31  ;;  %v7869_v13 = vmax.f32 %v6281_v25, 0.0 }
 0x3f5   : > { %v6657_v52 = vpop.f32.mrf.mxu1  ;;  %v3103_v44 = vpack.c.bf16 %v3059_v11, %v3051_v61  ;;  %v2987_v53 = vsel %vm446_vm1, %v3584_v8, %v7509_v4  ;;  %v2988_v43 = vsel %vm446_vm1, %v3585_v55, %v7510_v58  ;;  %v7870_v61 = vmax.f32 %v6267_v14, 0.0 }
 0x3f6   : > { %v2995_v3 = vsel %vm446_vm1, %v7867_v18, %v3584_v8  ;;  %v2996_v39 = vsel %vm446_vm1, %v7868_v33, %v3585_v55  ;;  %v2714_v60 = vpop.f32.mrf.mxu0  ;;  %v7871_v1 = vmax.f32 %v6328_v48, 0.0  ;;  %v7872_v8 = vmax.f32 %v6315_v10, 0.0 }
 0x3f7   : > { %v2715_v49 = vadd.f32 %v2714_v60, %v6332_v19  ;;  %v3034_v24 = vmax.f32 %v7869_v13, %v2995_v3  ;;  %v3042_v31 = vmax.f32 %v7870_v61, %v2996_v39  ;;  %v7502_v18 = vunpack.i.h.bf16 %v6671_v41 }
 0x3f8   : > { %v3035_v11 = vmax.f32 %v7871_v1, %v2987_v53  ;;  %v3043_v55 = vmax.f32 %v7872_v8, %v2988_v43  ;;  %v7501_v33 = vunpack.i.l.bf16 %v6671_v41  ;;  %v7505_v25 = vunpack.i.l.bf16 %v6673_v59 }
 0x3f9   : > { %3163 = vmatpush.bf16.xpose.msra.mxu3 %v3102_v7  ;;  %3176 = vmatpush.bf16.xpose.msra.mxu0 %v3103_v44  ;;  %v6678_v45 = vadd.f32 %v2743_v37, %v2715_v49  ;;  %v7506_v7 = vunpack.i.h.bf16 %v6673_v59  ;;  %v3094_v14 = vpack.c.bf16 %v3042_v31, %v3034_v24  ;;  %v7873_v43 = vmax.f32 %v6362_v34, 0.0 }
 0x3fa   : > { %v3095_v39 = vpack.c.bf16 %v3043_v55, %v3035_v11  ;;  %v2993_v10 = vsel %vm446_vm1, %v7501_v33, %v7505_v25  ;;  %v7874_v49 = vmax.f32 %v6374_v16, 0.0 }
 0x3fb   : > { %v2688_v3 = vpop.f32.mrf.mxu3  ;;  %v6690_v37 = vpop.f32.mrf.mxu2  ;;  %v2994_v48 = vsel %vm446_vm1, %v7502_v18, %v7506_v7  ;;  %v3018_v60 = vmax.f32 %v7873_v43, %v2993_v10 }
 0x3fc   : > { %v3026_v13 = vmax.f32 %v7874_v49, %v2994_v48 }
 0x3fd   : > { %v2659_v44 = vpop.f32.mrf.mxu1 }
 0x3fe   : > { %v6704_v53 = vpop.f32.mrf.mxu0  ;;  %v3086_v1 = vpack.c.bf16 %v3026_v13, %v3018_v60 }
 0x401   : > { %3164 = vmatpush.bf16.xpose.msra.mxu3 %v3094_v14  ;;  %3177 = vmatpush.bf16.xpose.msra.mxu0 %v3095_v39 }
 0x403   : > { %v2690_v24 = vpop.f32.mrf.mxu3  ;;  %v6710_v61 = vpop.f32.mrf.mxu2 }
 0x405   : > { %v2661_v31 = vpop.f32.mrf.mxu1 }
 0x406   : > { %v6712_v11 = vpop.f32.mrf.mxu0 }
 0x409   : > { %3165 = vmatpush.bf16.xpose.msra.mxu3 %v3086_v1 }
 0x40b   : > { %v2693_v8 = vpop.f32.mrf.mxu3  ;;  %v6714_v55 = vpop.f32.mrf.mxu2 }
 0x40d   : > { %v2664_v33 = vpop.f32.mrf.mxu1 }
 0x40e   : > { %v6716_v14 = vpop.f32.mrf.mxu0  ;;  %v2665_v34 = vadd.f32 %v2664_v33, %v6164_v50 }
 0x410   : > { %v6721_v48 = vadd.f32 %v2693_v8, %v2665_v34  ;;  %v7512_v8 = vmax.f32 %v6432_v26, 0.0  ;;  %v2662_v34 = vadd.f32 %v2661_v31, %v6211_v6 }
 0x412   : > { %v7508_v13 = vmax.f32 %v6721_v48, 0.0 }
 0x413   : > { %v2695_v39 = vpop.f32.mrf.mxu3  ;;  %v6719_v10 = vpop.f32.mrf.mxu2 }
 0x415   : > { %v2666_v16 = vpop.f32.mrf.mxu1 }
 0x416   : > { %v2667_v43 = vadd.f32 %v2666_v16, %v6200_v57  ;;  %v2724_v60 = vpop.f32.mrf.mxu0  ;;  %v2660_v16 = vadd.f32 %v2659_v44, %v6190_v23 }
 0x418   : > { %v6724_v49 = vadd.f32 %v2695_v39, %v2667_v43  ;;  %v7513_v39 = vmax.f32 %v6424_v2, 0.0  ;;  %v6745_v4 = vadd.f32 %v2688_v3, %v2660_v16 }
 0x41a   : > { %v7507_v1 = vmax.f32 %v6724_v49, 0.0 }
 0x41b   : > { %v2756_v18 = vpop.f32.mrf.mxu2  ;;  %v2698_v38 = vpop.f32.mrf.mxu3 }
 0x41c   : > { %v3641_v33 = vpack.i.bf16 %v7507_v1, %v7508_v13  ;;  %v3666_v1 = vpack.i.bf16 %v7512_v8, %v7513_v39  ;;  %v6743_v13 = vadd.f32 %v2690_v24, %v2662_v34  ;;  %v2657_v24 = vadd.f32 %v6657_v52, %v6332_v19  ;;  %v7877_v52 = vld [vmem:[#allocation71_spill] sm:$0xff] }
 0x41d   : > { %v2669_v56 = vpop.f32.mrf.mxu1  ;;  %v2725_v39 = vadd.f32 %v2724_v60, %v6200_v57 }
 0x41e   : > { %v2727_v25 = vpop.f32.mrf.mxu0  ;;  %3642 = vrot.lane.b32.xlu0 %v3641_v33, %s3777_s11  ;;  %v2670_v43 = vadd.f32 %v2669_v56, %v6156_v12  ;;  %v7514_v34 = vmax.f32 %v6743_v13, 0.0 }
 0x41f   : > { %v2728_v7 = vadd.f32 %v2727_v25, %v6156_v12  ;;  %v6818_v57 = vadd.f32 %v6719_v10, %v2725_v39  ;;  %v2720_v10 = vadd.f32 %v6712_v11, %v6211_v6 }
 0x420   : > { %v6747_v58 = vadd.f32 %v2698_v38, %v2670_v43  ;;  %v7875_v38 = vld [vmem:[#allocation13_spill] sm:$0xff] }
 0x421   : > { %v6751_v44 = vadd.f32 %v2756_v18, %v2728_v7  ;;  %v2307_v16 = vadd.f32 %v7875_v38, %v6264_v42  ;;  %v7521_v18 = vmax.f32 %v6745_v4, 0.0  ;;  %v2309_v7 = vadd.f32 %v7877_v52, %v6332_v19 }
 0x422   : > { %v7524_v39 = vmax.f32 %v6818_v57, 0.0 }
 0x423   : > { %v2758_v56 = vpop.f32.mrf.mxu2  ;;  %v2700_v25 = vpop.f32.mrf.mxu3 }
 0x425   : > { %v2671_v33 = vpop.f32.mrf.mxu1 }
 0x426   : > { %v2672_v31 = vadd.f32 %v2671_v33, %v6132_v36  ;;  %v2729_v5 = vpop.f32.mrf.mxu0  ;;  %3667 = vrot.lane.b32.xlu0 %v3666_v1, %s3777_s11  ;;  %v7876_v1 = vld [vmem:[#allocation68_spill] sm:$0xff] }
 0x427   : > { %v2730_v12 = vadd.f32 %v2729_v5, %v6132_v36  ;;  %v2481_v33 = vadd.f32 %v7876_v1, %v6264_v42  ;;  %v7533_v36 = vmax.f32 %v6747_v58, 0.0  ;;  %v3681_v42 = vpack.i.bf16 %v7514_v34, %v7521_v18  ;;  %v7878_v1 = vld [vmem:[#allocation15_spill] sm:$0xff] }
 0x428   : > { %v6757_v3 = vadd.f32 %v2700_v25, %v2672_v31  ;;  %v2816_v31 = vmax.f32 %v6751_v44, 0.0  ;;  %v6786_v52 = vadd.f32 %v7878_v1, %v2307_v16  ;;  %v7882_v18 = vmax.f32 %v6511_v21, 0.0 }
 0x429   : > { %v6761_v43 = vadd.f32 %v2758_v56, %v2730_v12  ;;  %v2483_v56 = vadd.f32 %v5970_v51, %v6332_v19  ;;  %v6775_v12 = vadd.f32 %v6650_v47, %v2657_v24  ;;  %v7879_v19 = vld [vmem:[#allocation41_spill] sm:$0xff]  ;;  %v7880_v24 = vld [vmem:[#allocation14_spill] sm:$0xff] }
 0x42a   : > { %v7532_v5 = vmax.f32 %v6757_v3, 0.0  ;;  %v6793_v47 = vadd.f32 %v7879_v19, %v2481_v33  ;;  %v6798_v8 = vadd.f32 %v7880_v24, %v2309_v7  ;;  %v7529_v34 = vmax.f32 %v6786_v52, 0.0 }
 0x42b   : > { %v2824_v25 = vmax.f32 %v6761_v43, 0.0  ;;  %v6802_v16 = vadd.f32 %v6001_v27, %v2483_v56  ;;  %v7515_v1 = vmax.f32 %v6775_v12, 0.0  ;;  %v7526_v56 = vmax.f32 %v6450_v46, 0.0 }
 0x42c   : > { %v3646_v38 = vpack.i.bf16 %v7532_v5, %v7533_v36  ;;  %v2764_v33 = vmax.f32 %v6793_v47, 0.0  ;;  %v7528_v7 = vmax.f32 %v6798_v8, 0.0  ;;  %v2718_v19 = vadd.f32 %v6704_v53, %v6190_v23  ;;  %v7887_v5 = vld [vmem:[#allocation73_spill] sm:$0xff] }
 0x42d   : > { %v3656_v51 = vpack.i.bf16 %v2824_v25, %v2816_v31  ;;  %v7522_v53 = vmax.f32 %v6434_v28, 0.0  ;;  %v7888_v36 = vmax.f32 %v7887_v5, 0.0 }
 0x42e   : > { %3682 = vrot.lane.b32.xlu0 %v3681_v42, %s3777_s11  ;;  %3647 = vrot.lane.b32.xlu1 %v3646_v38, %s3777_s11  ;;  %v7516_v42 = vmax.f32 %v6635_v20, 0.0  ;;  %v2723_v38 = vadd.f32 %v6716_v14, %v6164_v50  ;;  %v3651_v60 = vpack.i.bf16 %v7528_v7, %v7529_v34  ;;  %v6854_v11 = vadd.f32 %v6690_v37, %v2718_v19 }
 0x42f   : > { %3657 = vrot.lane.b32.xlu2 %v3656_v51, %s3777_s11  ;;  %v2772_v51 = vmax.f32 %v6802_v16, 0.0  ;;  %v7520_v19 = vmax.f32 %v6639_v29, 0.0 }
 0x430   : > { %v3696_v27 = vpack.i.bf16 %v7515_v1, %v7516_v42  ;;  %v6829_v14 = vadd.f32 %v6714_v55, %v2723_v38  ;;  %v7527_v55 = vmax.f32 %v6439_v32, 0.0  ;;  %v6843_v38 = vadd.f32 %v6710_v61, %v2720_v10 }
 0x431   : > { %v3661_v50 = vpack.i.bf16 %v2772_v51, %v2764_v33  ;;  %v7518_v61 = vmax.f32 %v6854_v11, 0.0  ;;  %v7519_v10 = vmax.f32 %v6678_v45, 0.0 }
 0x432   : > { %v7525_v24 = vmax.f32 %v6829_v14, 0.0  ;;  %v3676_v6 = vpack.i.bf16 %v7526_v56, %v7527_v55  ;;  %v7517_v23 = vmax.f32 %v6843_v38, 0.0 }
 0x436   : > { %3697 = vrot.lane.b32.xlu0 %v3696_v27, %s3777_s11  ;;  %3652 = vrot.lane.b32.xlu1 %v3651_v60, %s3777_s11  ;;  %v3671_v27 = vpack.i.bf16 %v7524_v39, %v7525_v24  ;;  %v7523_v60 = vmax.f32 %v6426_v17, 0.0 }
 0x437   : > { %3662 = vrot.lane.b32.xlu2 %v3661_v50, %s3777_s11  ;;  %v3686_v50 = vpack.i.bf16 %v7517_v23, %v7518_v61 }
 0x438   : > { %v3691_v37 = vpack.i.bf16 %v7522_v53, %v7523_v60 }
 0x43e   : > { %3672 = vrot.lane.b32.xlu1 %v3671_v27, %s3777_s11  ;;  %v3701_v27 = vpack.i.bf16 %v7519_v10, %v7520_v19 }
 0x43f   : > { %3677 = vrot.lane.b32.xlu2 %v3676_v6, %s3777_s11  ;;  %v6879_v6 = vpop.permute.xlu2 %3627 }
 0x440   : > { %v7530_v42 = vunpack.i.h.bf16 %v6879_v6  ;;  %v6901_v60 = vpop.permute.xlu1 %3617 }
 0x446   : > { %3687 = vrot.lane.b32.xlu1 %v3686_v50, %s3777_s11  ;;  %v7531_v50 = vunpack.i.l.bf16 %v6879_v6 }
 0x447   : > { %3692 = vrot.lane.b32.xlu2 %v3691_v37, %s3777_s11 }
 0x44e   : > { %3702 = vrot.lane.b32.xlu1 %v3701_v27, %s3777_s11  ;;  %v7881_v27 = vmax.f32 %v6493_v35, 0.0 }
 0x451   : > { %v3623_v1 = vpop.permute.xlu0 %3622 }
 0x452   : > { %v3625_v23 = vunpack.i.h.bf16 %v3623_v1  ;;  %v3624_v37 = vunpack.i.l.bf16 %v3623_v1  ;;  %v7885_v1 = vld [vmem:[#allocation70_spill] sm:$0xff] }
 0x453   : > { %v7886_v34 = vmax.f32 %v7885_v1, 0.0  ;;  %v7894_v1 = vld [vmem:[#allocation45_spill] sm:$0xff] }
 0x454   : > { %v2973_v61 = vsel %vm446_vm1, %v3624_v37, %v7531_v50  ;;  %v2974_v10 = vsel %vm446_vm1, %v3625_v23, %v7530_v42 }
 0x455   : > { %v6893_v19 = vmax.f32 %v7881_v27, %v2973_v61  ;;  %v6897_v53 = vmax.f32 %v7882_v18, %v2974_v10  ;;  %v7883_v18 = vunpack.i.h.bf16 %v6564_v0  ;;  %v7884_v27 = vunpack.i.l.bf16 %v6564_v0 }
 0x462   : > { %v6903_v39 = vpop.permute.xlu0 %3637  ;;  %v3633_v24 = vpop.permute.xlu1 %3632 }
 0x463   : > { %v7534_v56 = vunpack.i.h.bf16 %v6903_v39  ;;  %v7535_v55 = vunpack.i.l.bf16 %v6903_v39  ;;  %v3635_v7 = vunpack.i.h.bf16 %v3633_v24  ;;  %v3634_v35 = vunpack.i.l.bf16 %v3633_v24 }
 0x465   : > { %v2976_v21 = vsel %vm446_vm1, %v3635_v7, %v7534_v56  ;;  %v2984_v61 = vsel %vm446_vm1, %v7883_v18, %v3635_v7  ;;  %v2975_v10 = vsel %vm446_vm1, %v3634_v35, %v7535_v55  ;;  %v2983_v24 = vsel %vm446_vm1, %v7884_v27, %v3634_v35 }
 0x466   : > { %v3076_v42 = vmax.f32 %v7886_v34, %v2984_v61  ;;  %v6927_v50 = vmax.f32 %v2821_v9, %v2976_v21  ;;  %v3068_v7 = vmax.f32 %v7888_v36, %v2983_v24  ;;  %v7889_v18 = vmax.f32 %v6566_v54, 0.0  ;;  %v7892_v36 = vld [vmem:[#allocation52_spill] sm:$0xff]  ;;  %v7898_v24 = vld [vmem:[#allocation47_spill] sm:$0xff] }
 0x467   : > { %v7890_v35 = vunpack.i.l.bf16 %v6448_v15  ;;  %v2982_v9 = vsel %vm446_vm1, %v7891_v63, %v3625_v23  ;;  %v7893_v5 = vmax.f32 %v7892_v36, 0.0  ;;  %v7895_v21 = vmax.f32 %v7894_v1, 0.0 }
 0x468   : > { %v6933_v56 = vmax.f32 %v7889_v18, %v2975_v10  ;;  %v3112_v55 = vpack.c.bf16 %v3076_v42, %v3068_v7  ;;  %v3620_v61 = vunpack.i.h.bf16 %v6901_v60  ;;  %v7536_v10 = vunpack.i.l.bf16 %v6901_v60 }
 0x469   : > { %v2981_v34 = vsel %vm446_vm1, %v7890_v35, %v3624_v37  ;;  %v3060_v42 = vmax.f32 %v7895_v21, %v2982_v9  ;;  %v7896_v37 = vunpack.i.h.bf16 %v6533_v62  ;;  %v7899_v7 = vmax.f32 %v7898_v24, 0.0  ;;  %v7900_v35 = vld [vmem:[#allocation42_spill] sm:$0xff] }
 0x46a   : > { %v3113_v0 = vpack.c.bf16 %v6927_v50, %v6933_v56  ;;  %3188 = vmatpush.bf16.xpose.msra.mxu2 %v3112_v55  ;;  %v3052_v54 = vmax.f32 %v7893_v5, %v2981_v34  ;;  %v7897_v55 = vunpack.i.l.bf16 %v6533_v62  ;;  %v7901_v34 = vmax.f32 %v7900_v35, 0.0 }
 0x46b   : > { %v2980_v15 = vsel %vm446_vm1, %v7896_v37, %v3620_v61  ;;  %v7902_v37 = vunpack.i.h.bf16 %v6673_v59 }
 0x46c   : > { %v3104_v27 = vpack.c.bf16 %v3060_v42, %v3052_v54  ;;  %v2979_v23 = vsel %vm446_vm1, %v7897_v55, %v7536_v10  ;;  %v3044_v63 = vmax.f32 %v7901_v34, %v2980_v15  ;;  %v7903_v55 = vunpack.i.l.bf16 %v6673_v59 }
 0x46d   : > { %v3036_v18 = vmax.f32 %v7899_v7, %v2979_v23  ;;  %v7904_v23 = vld [vmem:[#allocation31_spill] sm:$0xff] }
 0x46e   : > { %v7905_v24 = vmax.f32 %v7904_v23, 0.0 }
 0x46f   : > { %v3096_v9 = vpack.c.bf16 %v3044_v63, %v3036_v18  ;;  %v7906_v18 = vld [vmem:[#allocation55_spill] sm:$0xff] }
 0x470   : > { %v7907_v35 = vmax.f32 %v7906_v18, 0.0 }
 0x472   : > { %3189 = vmatpush.bf16.xpose.msra.mxu2 %v3104_v27 }
 0x47a   : > { %3190 = vmatpush.bf16.xpose.msra.mxu2 %v3096_v9  ;;  %v7908_v9 = vld [vmem:[#allocation43_spill] sm:$0xff] }
 0x47b   : > { %v7910_v10 = vunpack.i.l.bf16 %v7908_v9 }
 0x489   : > { %v3658_v36 = vpop.permute.xlu2 %3657 }
 0x48a   : > { %v3660_v42 = vunpack.i.h.bf16 %v3658_v36  ;;  %v3659_v62 = vunpack.i.l.bf16 %v3658_v36 }
 0x48c   : > { %v3015_v59 = vsel %vm446_vm1, %v3659_v62, %v7910_v10 }
 0x48d   : > { %v3072_v23 = vmax.f32 %v2816_v31, %v3015_v59  ;;  %v3082_v31 = vld [vmem:[%s7911_s1 + $0x8] sm:$0xff]  ;;  %v7913_v59 = vmax.f32 %v6581_v22, 0.0 }
 0x490   : > { %v6967_v5 = vpop.permute.xlu0 %3642 }
 0x491   : > { %v3663_v54 = vpop.permute.xlu2 %3662  ;;  %v3645_v47 = vunpack.i.h.bf16 %v6967_v5  ;;  %v3644_v16 = vunpack.i.l.bf16 %v6967_v5 }
 0x492   : > { %v3665_v1 = vunpack.i.h.bf16 %v3663_v54  ;;  %v3664_v21 = vunpack.i.l.bf16 %v3663_v54  ;;  %v7909_v54 = vunpack.i.h.bf16 %v7908_v9 }
 0x494   : > { %v2986_v27 = vsel %vm446_vm1, %v7902_v37, %v3665_v1  ;;  %v2985_v15 = vsel %vm446_vm1, %v7903_v55, %v3664_v21  ;;  %v3016_v36 = vsel %vm446_vm1, %v3660_v42, %v7909_v54 }
 0x495   : > { %v3019_v7 = vmax.f32 %v7905_v24, %v2985_v15  ;;  %v3027_v34 = vmax.f32 %v7907_v35, %v2986_v27  ;;  %v3080_v27 = vmax.f32 %v2824_v25, %v3016_v36  ;;  %v3124_v35 = vunpack.c.h.b16 %v3082_v31 }
 0x497   : > { %v3087_v63 = vpack.c.bf16 %v3027_v34, %v3019_v7  ;;  %v7008_v7 = vld [vmem:[%s7911_s1] sm:$0xff]  ;;  %v3116_v18 = vpack.c.bf16 %v3080_v27, %v3072_v23  ;;  %v3132_v36 = vpack.c.b16 %v3124_v35, %v3124_v35 }
 0x498   : > { %v6989_v37 = vpop.permute.xlu0 %3667  ;;  %v3122_v25 = vunpack.c.h.b16 %v7008_v7 }
 0x499   : > { %v3670_v55 = vunpack.i.h.bf16 %v6989_v37  ;;  %v3669_v15 = vunpack.i.l.bf16 %v6989_v37  ;;  %3178 = vmatpush.bf16.xpose.msra.mxu0 %v3087_v63 }
 0x49b   : > { %v2977_v24 = vsel %vm446_vm1, %v3664_v21, %v3669_v15  ;;  %v2978_v10 = vsel %vm446_vm1, %v3665_v1, %v3670_v55  ;;  %v3130_v1 = vpack.c.b16 %v3122_v25, %v3122_v25  ;;  %v7916_v25 = vmax.f32 %v6571_v30, 0.0 }
 0x49c   : > { %v3020_v43 = vmax.f32 %v2764_v33, %v2977_v24  ;;  %v3028_v44 = vmax.f32 %v2772_v51, %v2978_v10  ;;  %v7912_v33 = vunpack.i.h.bf16 %v6903_v39  ;;  %v7914_v24 = vunpack.i.l.bf16 %v6903_v39 }
 0x49d   : > { %3166 = vmatmul.bf16.vlgmr.msra.gmra.mxu3 %v3130_v1  ;;  %v7915_v10 = vmax.f32 %v6747_v58, 0.0  ;;  %v7918_v1 = vunpack.i.l.bf16 %v6879_v6  ;;  %v7919_v58 = vunpack.i.h.bf16 %v6879_v6 }
 0x49e   : > { %v3088_v21 = vpack.c.bf16 %v3028_v44, %v3020_v43 }
 0x49f   : > { %v2965_v39 = vsel %vm446_vm1, %v7918_v1, %v3644_v16 }
 0x4a0   : > { %v3648_v34 = vpop.permute.xlu1 %3647  ;;  %3191 = vmatpush.bf16.xpose.msra.mxu2 %v3088_v21  ;;  %v7036_v44 = vpop.permute.xlu0 %3682  ;;  %v7917_v21 = vmax.f32 %v6757_v3, 0.0 }
 0x4a1   : > { %v3650_v63 = vunpack.i.h.bf16 %v3648_v34  ;;  %v3649_v9 = vunpack.i.l.bf16 %v3648_v34  ;;  %v2966_v34 = vsel %vm446_vm1, %v7919_v58, %v3645_v47  ;;  %v3685_v6 = vunpack.i.h.bf16 %v7036_v44 }
 0x4a3   : > { %v2968_v51 = vsel %vm446_vm1, %v7912_v33, %v3650_v63  ;;  %v2959_v54 = vsel %vm446_vm1, %v3649_v9, %v3659_v62  ;;  %v2960_v23 = vsel %vm446_vm1, %v3650_v63, %v3660_v42  ;;  %v2967_v5 = vsel %vm446_vm1, %v7914_v24, %v3649_v9  ;;  %v3678_v63 = vpop.permute.xlu2 %3677 }
 0x4a4   : > { %v3078_v27 = vmax.f32 %v7913_v59, %v2968_v51  ;;  %v3071_v43 = vmax.f32 %v7915_v10, %v2959_v54  ;;  %v3070_v62 = vmax.f32 %v7916_v25, %v2967_v5  ;;  %v3079_v22 = vmax.f32 %v7917_v21, %v2960_v23  ;;  %v7920_v51 = vld [vmem:[#allocation21_spill] sm:$0xff]  ;;  %v7924_v5 = vld [vmem:[#allocation51_spill] sm:$0xff] }
 0x4a5   : > { %v3684_v33 = vunpack.i.l.bf16 %v7036_v44  ;;  %v7921_v54 = vmax.f32 %v7920_v51, 0.0  ;;  %v7922_v59 = vunpack.i.h.bf16 %v6671_v41  ;;  %v7923_v23 = vunpack.i.l.bf16 %v6671_v41 }
 0x4a6   : > { %v3114_v42 = vpack.c.bf16 %v3078_v27, %v3070_v62  ;;  %v3115_v35 = vpack.c.bf16 %v3079_v22, %v3071_v43  ;;  %v7925_v10 = vmax.f32 %v7924_v5, 0.0  ;;  %v3679_v25 = vunpack.i.l.bf16 %v3678_v63 }
 0x4a7   : > { %3192 = vmatmul.bf16.vlgmr.msra.gmra.mxu2 %v3132_v36  ;;  %v3054_v36 = vmax.f32 %v7921_v54, %v2965_v39  ;;  %v7926_v44 = vmax.f32 %v6786_v52, 0.0  ;;  %v7927_v21 = vmax.f32 %v6798_v8, 0.0  ;;  %v3121_v39 = vunpack.c.l.b16 %v7008_v7 }
 0x4a8   : > { %3240 = vmatpush.bf16.xpose.msrb.mxu2 %v3116_v18  ;;  %v3123_v18 = vunpack.c.l.b16 %v3082_v31  ;;  %v7050_v30 = vpop.permute.xlu1 %3652  ;;  %3214 = vmatpush.bf16.xpose.msrb.mxu3 %v3114_v42  ;;  %v3062_v43 = vmax.f32 %v7925_v10, %v2966_v34  ;;  %v2963_v1 = vsel %vm446_vm1, %v3679_v25, %v3684_v33  ;;  %v7928_v8 = vmax.f32 %v6439_v32, 0.0 }
 0x4a9   : > { %3227 = vmatpush.bf16.xpose.msrb.mxu0 %v3115_v35  ;;  %v3655_v3 = vunpack.i.h.bf16 %v7050_v30  ;;  %v3654_v31 = vunpack.i.l.bf16 %v7050_v30  ;;  %v7081_v35 = vpop.permute.xlu0 %3697 }
 0x4aa   : > { %v3131_v9 = vpack.c.b16 %v3123_v18, %v3123_v18  ;;  %v3680_v18 = vunpack.i.h.bf16 %v3678_v63  ;;  %v3106_v58 = vpack.c.bf16 %v3062_v43, %v3054_v36  ;;  %v3038_v63 = vmax.f32 %v7928_v8, %v2963_v1  ;;  %v7941_v8 = vld [vmem:[#allocation46_spill] sm:$0xff] }
 0x4ab   : > { %v3002_v27 = vsel %vm446_vm1, %v3655_v3, %v7922_v59  ;;  %v3001_v24 = vsel %vm446_vm1, %v3654_v31, %v7923_v23  ;;  %v3693_v51 = vpop.permute.xlu2 %3692  ;;  %v3700_v7 = vunpack.i.h.bf16 %v7081_v35  ;;  %v3699_v54 = vunpack.i.l.bf16 %v7081_v35 }
 0x4ac   : > { %3179 = vmatmul.bf16.vlgmr.msra.gmra.mxu0 %v3131_v9  ;;  %v3017_v62 = vmax.f32 %v7926_v44, %v3001_v24  ;;  %v3025_v22 = vmax.f32 %v7927_v21, %v3002_v27  ;;  %v2964_v42 = vsel %vm446_vm1, %v3680_v18, %v3685_v6  ;;  %v7929_v59 = vmax.f32 %v6450_v46, 0.0  ;;  %v7930_v24 = vld [vmem:[#allocation59_spill] sm:$0xff] }
 0x4ad   : > { %v3129_v27 = vpack.c.b16 %v3121_v39, %v3121_v39  ;;  %v7931_v5 = vunpack.i.h.bf16 %v7930_v24  ;;  %v7932_v50 = vunpack.i.l.bf16 %v7930_v24  ;;  %v7933_v46 = vmax.f32 %v6721_v48, 0.0  ;;  %v7945_v24 = vld [vmem:[#allocation6_spill] sm:$0xff] }
 0x4ae   : > { %v3085_v41 = vpack.c.bf16 %v3025_v22, %v3017_v62  ;;  %v3046_v36 = vmax.f32 %v7929_v59, %v2964_v42  ;;  %v7934_v43 = vmax.f32 %v6724_v49, 0.0  ;;  %v7936_v21 = vmax.f32 %v6818_v57, 0.0  ;;  %v7943_v59 = vld [vmem:[#allocation69_spill] sm:$0xff] }
 0x4af   : > { %v3695_v1 = vunpack.i.h.bf16 %v3693_v51  ;;  %v7937_v48 = vunpack.i.l.bf16 %v6901_v60  ;;  %v7938_v60 = vpack.c.bf16 %v6897_v53, %v6893_v19 }
 0x4b0   : > { %v3673_v34 = vpop.permute.xlu1 %3672  ;;  %3152 = vmatpush.bf16.xpose.msra.mxu1 %v3085_v41  ;;  %3215 = vmatpush.bf16.xpose.msrb.mxu3 %v3106_v58  ;;  %v3694_v41 = vunpack.i.l.bf16 %v3693_v51  ;;  %v3098_v35 = vpack.c.bf16 %v3046_v36, %v3038_v63  ;;  %v7942_v51 = vmax.f32 %v7941_v8, 0.0  ;;  %v7944_v36 = vmax.f32 %v7943_v59, 0.0  ;;  %v3476_v8 = vld [vmem:[%s7249_s8 + $0x10] sm:$0xff]  ;;  %v3475_v59 = vld [vmem:[%s7249_s8 + $0x8] sm:$0xff] }
 0x4b1   : > { %v3675_v52 = vunpack.i.h.bf16 %v3673_v34  ;;  %v3674_v9 = vunpack.i.l.bf16 %v3673_v34  ;;  %v2971_v49 = vsel %vm446_vm1, %v7937_v48, %v3679_v25  ;;  %v2962_v57 = vsel %vm446_vm1, %v3695_v1, %v3700_v7 }
 0x4b2   : > { %v7939_v25 = vmax.f32 %v6426_v17, 0.0  ;;  %v3037_v63 = vmax.f32 %v7942_v51, %v2971_v49  ;;  %v7954_v48 = vmax.f32 %v6635_v20, 0.0  ;;  %v7955_v49 = vmax.f32 %v6775_v12, 0.0 }
 0x4b3   : > { %v2958_v23 = vsel %vm446_vm1, %v3645_v47, %v3675_v52  ;;  %v3014_v56 = vsel %vm446_vm1, %v3675_v52, %v7931_v5  ;;  %v2957_v32 = vsel %vm446_vm1, %v3644_v16, %v3674_v9  ;;  %v7935_v47 = vmax.f32 %v6829_v14, 0.0 }
 0x4b4   : > { %v3055_v10 = vmax.f32 %v7933_v46, %v2957_v32  ;;  %v3063_v44 = vmax.f32 %v7934_v43, %v2958_v23  ;;  %v3064_v22 = vmax.f32 %v7936_v21, %v3014_v56  ;;  %v2972_v16 = vsel %vm446_vm1, %v3620_v61, %v3680_v18 }
 0x4b5   : > { %v2961_v14 = vsel %vm446_vm1, %v3694_v41, %v3699_v54  ;;  %v7940_v52 = vmax.f32 %v6434_v28, 0.0  ;;  %v7946_v5 = vunpack.i.h.bf16 %v7945_v24  ;;  %v7947_v28 = vunpack.i.l.bf16 %v7945_v24 }
 0x4b6   : > { %v3107_v39 = vpack.c.bf16 %v3063_v44, %v3055_v10  ;;  %v3022_v34 = vmax.f32 %v7939_v25, %v2961_v14  ;;  %v7948_v56 = vmax.f32 %v6745_v4, 0.0  ;;  %v7951_v10 = vmax.f32 %v6843_v38, 0.0 }
 0x4b7   : > { %3153 = vmatmul.bf16.vlgmr.msra.gmra.mxu1 %v3129_v27  ;;  %v3045_v27 = vmax.f32 %v7944_v36, %v2972_v16  ;;  %v2970_v4 = vsel %vm446_vm1, %v3670_v55, %v3695_v1  ;;  %v7953_v55 = vmax.f32 %v6432_v26, 0.0 }
 0x4b8   : > { %3201 = vmatpush.bf16.xpose.msrb.mxu1 %v3113_v0  ;;  %v3013_v0 = vsel %vm446_vm1, %v3674_v9, %v7932_v50  ;;  %v3688_v58 = vpop.permute.xlu1 %3687  ;;  %3228 = vmatpush.bf16.xpose.msrb.mxu0 %v3107_v39  ;;  %v3030_v9 = vmax.f32 %v7940_v52, %v2962_v57  ;;  %v7949_v50 = vmax.f32 %v6743_v13, 0.0  ;;  %v2969_v13 = vsel %vm446_vm1, %v3669_v15, %v3694_v41 }
 0x4b9   : > { %v3056_v62 = vmax.f32 %v7935_v47, %v3013_v0  ;;  %3216 = vmatpush.bf16.xpose.msrb.mxu3 %v3098_v35  ;;  %v3690_v61 = vunpack.i.h.bf16 %v3688_v58  ;;  %v3689_v18 = vunpack.i.l.bf16 %v3688_v58  ;;  %v7952_v39 = vmax.f32 %v6424_v2, 0.0 }
 0x4ba   : > { %v3029_v1 = vmax.f32 %v7953_v55, %v2970_v4 }
 0x4bb   : > { %v3108_v42 = vpack.c.bf16 %v3064_v22, %v3056_v62  ;;  %v2956_v23 = vsel %vm446_vm1, %v3685_v6, %v3690_v61  ;;  %v3012_v53 = vsel %vm446_vm1, %v3690_v61, %v7946_v5  ;;  %v2955_v17 = vsel %vm446_vm1, %v3684_v33, %v3689_v18  ;;  %v3083_v33 = vld [vmem:[%s7911_s1 + $0x10] sm:$0xff] }
 0x4bc   : > { %v3011_v19 = vsel %vm446_vm1, %v3689_v18, %v7947_v28  ;;  %v3039_v32 = vmax.f32 %v7948_v56, %v2955_v17  ;;  %v3047_v0 = vmax.f32 %v7949_v50, %v2956_v23  ;;  %v7950_v6 = vmax.f32 %v6854_v11, 0.0 }
 0x4bd   : > { %3241 = vmatpush.bf16.xpose.msrb.mxu2 %v3108_v42  ;;  %v3048_v43 = vmax.f32 %v7951_v10, %v3012_v53  ;;  %v3090_v11 = vpack.c.bf16 %v3030_v9, %v3022_v34  ;;  %v3097_v62 = vpack.c.bf16 %v3045_v27, %v3037_v63  ;;  %v3126_v16 = vunpack.c.h.b16 %v3083_v33  ;;  %v3474_v27 = vld [vmem:[%s7249_s8] sm:$0xff] }
 0x4be   : > { %v3040_v46 = vmax.f32 %v7950_v6, %v3011_v19  ;;  %v3099_v44 = vpack.c.bf16 %v3047_v0, %v3039_v32  ;;  %v3021_v42 = vmax.f32 %v7952_v39, %v2969_v13  ;;  %v3125_v12 = vunpack.c.l.b16 %v3083_v33  ;;  %v3706_v33 = vld [vmem:[%s7250_s9] ss:$0 sm:$0xff] }
 0x4bf   : > { %v3134_v30 = vpack.c.b16 %v3126_v16, %v3126_v16 }
 0x4c0   : > { %3202 = vmatpush.bf16.xpose.msrb.mxu1 %v7938_v60  ;;  %v3100_v47 = vpack.c.bf16 %v3048_v43, %v3040_v46  ;;  %v3703_v38 = vpop.permute.xlu1 %3702  ;;  %3229 = vmatpush.bf16.xpose.msrb.mxu0 %v3099_v44  ;;  %v3133_v60 = vpack.c.b16 %v3125_v12, %v3125_v12 }
 0x4c1   : > { %3217 = vmatpush.bf16.xpose.msrb.mxu3 %v3090_v11  ;;  %v3705_v21 = vunpack.i.h.bf16 %v3703_v38  ;;  %v3704_v22 = vunpack.i.l.bf16 %v3703_v38 }
 0x4c3   : > { %v2954_v37 = vsel %vm446_vm1, %v3700_v7, %v3705_v21  ;;  %v2953_v15 = vsel %vm446_vm1, %v3699_v54, %v3704_v22  ;;  %v3009_v41 = vsel %vm446_vm1, %v3704_v22, %v3654_v31  ;;  %v3010_v2 = vsel %vm446_vm1, %v3705_v21, %v3655_v3  ;;  %v3084_v31 = vld [vmem:[%s7911_s1 + $0x18] sm:$0xff]  ;;  %s3725_s1 = scalar_lea.hbm %s3724_s0, 8 }
 0x4c4   : > { %v3023_v26 = vmax.f32 %v7954_v48, %v2953_v15  ;;  %v3031_v14 = vmax.f32 %v7955_v49, %v2954_v37  ;;  %v7956_v7 = vmax.f32 %v6639_v29, 0.0  ;;  %v7957_v54 = vmax.f32 %v6678_v45, 0.0  ;;  %v3477_v45 = vld [vmem:[%s7249_s8 + $0x18] sm:$0xff]  ;;  %p3726_p11 = scmp.ne.s32.totalorder %s3724_s0, %s3725_s1  ;;  %p3731_p1 = scmp.lt.s32.totalorder %s3729_s18, %s3725_s1 }
 0x4c5   : > { %3242 = vmatpush.bf16.xpose.msrb.mxu2 %v3100_v47  ;;  %v3089_v3 = vpack.c.bf16 %v3029_v1, %v3021_v42  ;;  %v3128_v61 = vunpack.c.h.b16 %v3084_v31  ;;  %v3127_v20 = vunpack.c.l.b16 %v3084_v31 }
 0x4c6   : > { %v3024_v57 = vmax.f32 %v7956_v7, %v3009_v41  ;;  %v3032_v35 = vmax.f32 %v7957_v54, %v3010_v2  ;;  %v3091_v58 = vpack.c.bf16 %v3031_v14, %v3023_v26  ;;  %p3727_p12 = pnand %p3726_p11, %p3868_p5  ;;  %p3732_p2 = por %p3731_p1, %p3730_p0 }
 0x4c7   : > { %v3136_v29 = vpack.c.b16 %v3128_v61, %v3128_v61  ;;  %v3135_v18 = vpack.c.b16 %v3127_v20, %v3127_v20 }
 0x4c8   : > { %3203 = vmatpush.bf16.xpose.msrb.mxu1 %v3097_v62  ;;  %v3092_v40 = vpack.c.bf16 %v3032_v35, %v3024_v57  ;;  %3230 = vmatpush.bf16.xpose.msrb.mxu0 %v3091_v58  ;;  %p3728_p13 = pneg %p3727_p12 }
 0x4c9   : > { %3218 = vmatmul.bf16.vlgmr.msrb.gmra.mxu3 %v3134_v30 }
 0x4ca   : > { %p3733_p3 = pnand %p3732_p2, %p3728_p13 }
 0x4cd   : > { %3243 = vmatpush.bf16.xpose.msrb.mxu2 %v3092_v40 }
 0x4cf   : > { %3231 = vmatmul.bf16.vlgmr.msrb.gmra.mxu0 %v3135_v18 }
 0x4d0   : > { %3204 = vmatpush.bf16.xpose.msrb.mxu1 %v3089_v3 }
 0x4d4   : > { %3244 = vmatmul.bf16.vlgmr.msrb.gmra.mxu2 %v3136_v29 }
 0x4d7   : > { %3205 = vmatmul.bf16.vlgmr.msrb.gmra.mxu1 %v3133_v60 }
 0x4d8   : > { %3293 = vmatpush.bf16.msra.mxu1 %v3477_v45 }
 0x4dc   : > { %3294 = vmatpush.bf16.msra.mxu1 %v3476_v8 }
 0x4e0   : > { %3295 = vmatpush.bf16.msra.mxu1 %v3475_v59 }
 0x4e4   : > { %3296 = vmatpush.bf16.msra.mxu1 %v3474_v27 }
 0x520   : > { %v3167_v25 = vpop.f32.mrf.mxu3 }
 0x528   : > { %v3169_v9 = vpop.f32.mrf.mxu3 }
 0x529   : > { %v3180_v34 = vpop.f32.mrf.mxu0 }
 0x52a   : > { %v3193_v52 = vpop.f32.mrf.mxu2 }
 0x531   : > { %v3182_v51 = vpop.f32.mrf.mxu0 }
 0x532   : > { %v3195_v63 = vpop.f32.mrf.mxu2 }
 0x534   : > { %v3154_v36 = vpop.f32.mrf.mxu1 }
 0x535   : > { %v3168_v24 = vadd.f32 %v3167_v25, %v3154_v36 }
 0x537   : > { %v3181_v5 = vadd.f32 %v3180_v34, %v3168_v24 }
 0x539   : > { %v3194_v53 = vadd.f32 %v3193_v52, %v3181_v5 }
 0x53c   : > { %v3156_v23 = vpop.f32.mrf.mxu1 }
 0x54c   : > { %v3219_v17 = vpop.f32.mrf.mxu3  ;;  %v3232_v28 = vpop.f32.mrf.mxu0 }
 0x554   : > { %v3206_v19 = vpop.f32.mrf.mxu1  ;;  %v3221_v46 = vpop.f32.mrf.mxu3 }
 0x555   : > { %v3207_v56 = vadd.f32 %v3206_v19, %v3194_v53  ;;  %v3234_v10 = vpop.f32.mrf.mxu0 }
 0x557   : > { %v3220_v32 = vadd.f32 %v3219_v17, %v3207_v56  ;;  %v3245_v0 = vpop.f32.mrf.mxu2 }
 0x559   : > { %v3233_v50 = vadd.f32 %v3232_v28, %v3220_v32 }
 0x55b   : > { %v3246_v6 = vadd.f32 %v3245_v0, %v3233_v50 }
 0x55c   : > { %v3208_v43 = vpop.f32.mrf.mxu1 }
 0x55d   : > { %v3249_v44 = vpack.c.bf16 %v3246_v6, %v3246_v6 }
 0x55f   : > { %3461 = vmatmul.msk.bf16.vlgmr.msra.gmra.mxu1 %vm2284_vm2, %v3249_v44  ;;  %v3247_v47 = vpop.f32.mrf.mxu2 }
 0x5dc   : > { %v3298_v4 = vpop.f32.mrf.mxu1 }
 0x5dd   : > { %v3299_v13 = vadd.f32 %v3706_v33, %v3298_v4 }
 0x5df   : > { %3302 = vst [vmem:[%s351_s26] sm:$0xff] %v3299_v13 }
 0x5e0   : > { %3736 = shalt.err (!%p3733_p3)
}
 0x5e1   : > { %3478 = dma.vmem_to_hbm [thread:$0]  (%p3868_p5), %s3317_s27, 128, %s3319_s28, %s3304_s29  }
 0x5e4   : > { %v3300_v11 = vpop.f32.mrf.mxu1 }
 0x5e5 PF: > { %p3484_p4 = scmp.ge.s32.totalorder %s3771_s16, 2  ;;  %s3330_s30 = sand.u32 1, %s3759_s13  }
 0x5e6   : > { %s3331_s20 = scalar_lea.sflag [#allocation3], %s3330_s30 }
 0x5e7   : > { %p3481_p7 = pnand %p3484_p4, %p3872_p6 }
 0x5e9   : > { %p3482_p8 = pneg %p3481_p7 }
 0x5eb   : > { %3754 = dma.done.wait (%p3482_p8), %s3331_s20, 128  }
 0x5ec   : > { %3756 = vsyncadd (%p3482_p8), %s3331_s20, 4294967168  ;;  %p20_p9 = scmp.ge.s32.totalorder %s3856_s19, 4   ;;  %s7958_s13 = smov %s3763_s14 }
 0x5ed   : > { %s7959_s14 = smov %s3767_s15  ;;  %s7960_s15 = smov %s3866_s22 }
 0x5ee   : > { %s7961_s16 = smov %s3856_s19  ;;  %22 = sbr.rel (!%p20_p9) target bundleno = 6 (0x6), region = 95 }
 0x5f3   :  { %3337 = vsyncpa [#allocation3], 1 }
 0x5f4   :  { %3339 = vsyncpa [#allocation3 + $0x1], 1 }

</bundles_post_ra>
